<compile_context>
chip_gen: v6e
topology: v6e:2x2x1
jax: 0.10.0
libtpu: 0.0.40
codegen_flags: <defaults>
</compile_context>

<pallas_src>
import jax
import jax.numpy as jnp
from jax.experimental import pallas as pl
from jax.experimental.pallas import tpu as pltpu

N_CLASSES = 10
CHANNELS = 1
IMG_SIZE = 32
IMG_FEATS = CHANNELS * IMG_SIZE * IMG_SIZE          # 1024
IN_FEATS = N_CLASSES + IMG_FEATS                    # 1034
HIDDEN = 512
TBL_ROWS = 16                                       # 10 classes padded to 16


def _round_up(x, m):
    return ((x + m - 1) // m) * m


def _mlp_kernel(x_ref, lab_ref, tbl_ref, w1_ref, w2_ref, b2_ref,
                w3_ref, b3_ref, w4t_ref, b4_ref, o_ref):
    bb = x_ref.shape[0]

    # Label path of layer 1: exact gather via one-hot f32 MXU matmul
    # (tbl_ref rows already contain emb@w1_lab + b1; padded rows are zero).
    onehot = (lab_ref[...] ==
              jax.lax.broadcasted_iota(jnp.int32, (bb, TBL_ROWS), 1)
              ).astype(jnp.float32)
    lab_proj = jnp.dot(onehot, tbl_ref[...],
                       preferred_element_type=jnp.float32)       # (bb, 512)

    # Layer 1 image path: f32 block cast to bf16 on the VPU (filler under the
    # MXU), clean K = 1024 matmul; bias (+label) add and ReLU in f32.
    h = jnp.dot(x_ref[...].astype(jnp.bfloat16), w1_ref[...],
                preferred_element_type=jnp.float32)
    h = jnp.maximum(h + lab_proj, 0.0)

    # Layer 2: Linear(512 -> 512) + Dropout(identity, eval) + ReLU.
    h = jnp.dot(h.astype(jnp.bfloat16), w2_ref[...],
                preferred_element_type=jnp.float32)
    h = jnp.maximum(h + b2_ref[...], 0.0)

    # Layer 3: Linear(512 -> 512) + Dropout(identity, eval) + ReLU.
    h = jnp.dot(h.astype(jnp.bfloat16), w3_ref[...],
                preferred_element_type=jnp.float32)
    h = jnp.maximum(h + b3_ref[...], 0.0)

    # Layer 4: Linear(512 -> 1) as VPU multiply + lane reduction.
    o_ref[...] = (jnp.sum(h * w4t_ref[...], axis=-1, keepdims=True)
                  + b4_ref[...])


def discriminator_forward(img, labels, params, *, block_b=None):
    """img: (B, 1, 32, 32) f32, labels: (B,) int -> validity (B, 1) f32."""
    B = img.shape[0]
    f32, bf16 = jnp.float32, jnp.bfloat16

    # ---- Batch tile selection ------------------------------------------------
    if block_b is None:
        if B >= 1024:
            block_b = 512                                   # big tile, amortizes step tax
        elif B >= 32:
            block_b = _round_up(pl.cdiv(B, 2), 16)          # >=2 grid steps (v7x 2 TCs)
        else:
            block_b = _round_up(max(B, 1), 8)
    else:
        block_b = _round_up(max(block_b, 8), 8)
    B_pad = _round_up(B, block_b)
    grid = (B_pad // block_b,)

    # ---- Wrapper glue (no HBM round-trip of the image) -----------------------
    img_flat = img.reshape(B, IMG_FEATS)                     # f32 view, no copy
    labels_2d = labels.reshape(B, 1).astype(jnp.int32)       # (B, 1)
    if B_pad != B:
        img_flat = jnp.pad(img_flat, ((0, B_pad - B), (0, 0)))
        labels_2d = jnp.pad(labels_2d, ((0, B_pad - B), (0, 0)))

    w1 = params["w1"]                                        # (1034, 512)
    # torch.cat((img.view(B,-1), label_emb), -1): w1[:1024]=image, w1[1024:]=label.
    w1_img = w1[:IMG_FEATS].astype(bf16)                     # (1024, 512)
    lab_tbl = params["emb"] @ w1[IMG_FEATS:] + params["b1"]  # (10, 512) f32, b1 folded
    lab_tbl = jnp.pad(lab_tbl, ((0, TBL_ROWS - N_CLASSES), (0, 0)))  # (16, 512)

    w2 = params["w2"].astype(bf16)
    w3 = params["w3"].astype(bf16)
    w4_t = params["w4"].reshape(1, HIDDEN).astype(f32)       # (1, 512)
    b2, b3, b4 = params["b2"], params["b3"], params["b4"]

    flops = 2 * B_pad * (TBL_ROWS * HIDDEN + IMG_FEATS * HIDDEN
                         + 2 * HIDDEN * HIDDEN + HIDDEN)
    bytes_accessed = (
        B_pad * IMG_FEATS * 4 + B_pad * 4                    # f32 image + labels
        + TBL_ROWS * HIDDEN * 4                              # label table (f32)
        + (w1_img.size + w2.size + w3.size) * 2              # bf16 weights
        + (3 * HIDDEN + 1) * 4                               # w4_t, b2, b3, b4
        + B_pad * 4)                                         # output

    out = pl.pallas_call(
        _mlp_kernel,
        out_shape=jax.ShapeDtypeStruct((B_pad, 1), f32),
        grid=grid,
        in_specs=[
            # Batch-tiled activations (double-buffered across grid steps).
            pl.BlockSpec((block_b, IMG_FEATS), lambda i: (i, 0)),
            pl.BlockSpec((block_b, 1), lambda i: (i, 0)),
            # Weights / tables / biases: constant index_map -> VMEM-resident.
            pl.BlockSpec((TBL_ROWS, HIDDEN), lambda i: (0, 0)),
            pl.BlockSpec((IMG_FEATS, HIDDEN), lambda i: (0, 0)),
            pl.BlockSpec((HIDDEN, HIDDEN), lambda i: (0, 0)),
            pl.BlockSpec((1, HIDDEN), lambda i: (0, 0)),
            pl.BlockSpec((HIDDEN, HIDDEN), lambda i: (0, 0)),
            pl.BlockSpec((1, HIDDEN), lambda i: (0, 0)),
            pl.BlockSpec((1, HIDDEN), lambda i: (0, 0)),
            pl.BlockSpec((1, 1), lambda i: (0, 0)),
        ],
        out_specs=pl.BlockSpec((block_b, 1), lambda i: (i, 0)),
        compiler_params=pltpu.CompilerParams(
            dimension_semantics=("parallel",)),
        cost_estimate=pl.CostEstimate(
            flops=flops, transcendentals=0, bytes_accessed=bytes_accessed),
    )(img_flat, labels_2d, lab_tbl, w1_img, w2, b2, w3, b3, w4_t, b4)
    return out[:B]


def init_params(key):
    """Deterministic synthetic parameters matching the PyTorch module shapes."""
    ks = jax.random.split(key, 9)

    def lin(kw, fan_in, fan_out):
        bound = 1.0 / jnp.sqrt(fan_in)
        return jax.random.uniform(kw, (fan_in, fan_out), jnp.float32,
                                  -bound, bound)

    def bias(kb, fan_in, fan_out):
        bound = 1.0 / jnp.sqrt(fan_in)
        return jax.random.uniform(kb, (1, fan_out), jnp.float32, -bound, bound)

    return {
        "emb": jax.random.normal(ks[0], (N_CLASSES, N_CLASSES), jnp.float32),
        "w1": lin(ks[1], IN_FEATS, HIDDEN), "b1": bias(ks[2], IN_FEATS, HIDDEN),
        "w2": lin(ks[3], HIDDEN, HIDDEN),   "b2": bias(ks[4], HIDDEN, HIDDEN),
        "w3": lin(ks[5], HIDDEN, HIDDEN),   "b3": bias(ks[6], HIDDEN, HIDDEN),
        "w4": lin(ks[7], HIDDEN, 1),        "b4": bias(ks[8], HIDDEN, 1),
    }


if __name__ == "__main__":
    key = jax.random.PRNGKey(0)
    k_img, k_lab, k_par = jax.random.split(key, 3)

    B = 64
    img = jax.random.normal(k_img, (B, CHANNELS, IMG_SIZE, IMG_SIZE), jnp.float32)
    labels = jax.random.randint(k_lab, (B,), 0, N_CLASSES, jnp.int32)
    params = init_params(k_par)

    validity = discriminator_forward(img, labels, params)
    validity = jax.block_until_ready(validity)
    assert validity.shape == (B, 1)

    # Pure-JAX reference using the same bf16 weight/activation quantization
    # and the same embedding-fold, so the kernel math is checked exactly.
    x_bf = img.reshape(B, IMG_FEATS).astype(jnp.bfloat16)
    w1_img_bf = params["w1"][:IMG_FEATS].astype(jnp.bfloat16)
    lab_proj = jnp.take(params["emb"] @ params["w1"][IMG_FEATS:] + params["b1"],
                        labels, axis=0)
    h = jnp.maximum(
        jnp.dot(x_bf, w1_img_bf, preferred_element_type=jnp.float32) + lab_proj,
        0.0)
    h = jnp.maximum(
        jnp.dot(h.astype(jnp.bfloat16), params["w2"].astype(jnp.bfloat16),
                preferred_element_type=jnp.float32) + params["b2"], 0.0)
    h = jnp.maximum(
        jnp.dot(h.astype(jnp.bfloat16), params["w3"].astype(jnp.bfloat16),
                preferred_element_type=jnp.float32) + params["b3"], 0.0)
    ref = jnp.sum(h * params["w4"].reshape(1, HIDDEN), axis=-1,
                  keepdims=True) + params["b4"]

    assert jnp.allclose(validity, ref, atol=1e-2, rtol=1e-2), \
        "mismatch vs reference"

    print("KERNEL_OK")
</pallas_src>

<mosaic_0001>
module attributes {stable_mosaic.version = 11 : i64} {
  func.func @_mlp_kernel(%arg0: i32, %arg1: memref<32x1024xf32, #tpu.memory_space<vmem>>, %arg2: memref<32x1xi32, #tpu.memory_space<vmem>>, %arg3: memref<16x512xf32, #tpu.memory_space<vmem>>, %arg4: memref<1024x512xbf16, #tpu.memory_space<vmem>>, %arg5: memref<512x512xbf16, #tpu.memory_space<vmem>>, %arg6: memref<1x512xf32, #tpu.memory_space<vmem>>, %arg7: memref<512x512xbf16, #tpu.memory_space<vmem>>, %arg8: memref<1x512xf32, #tpu.memory_space<vmem>>, %arg9: memref<1x512xf32, #tpu.memory_space<vmem>>, %arg10: memref<1x1xf32, #tpu.memory_space<vmem>>, %arg11: memref<32x1xf32, #tpu.memory_space<vmem>>) attributes {dimension_semantics = [#tpu.dimension_semantics<parallel>], iteration_bounds = array<i64: 2>, scalar_prefetch = 0 : i64, scratch_operands = 0 : i64, tpu.core_type = #tpu.core_type<tc>, window_params = [{transform_indices = @transform_0, window_bounds = array<i64: 32, 1024>}, {transform_indices = @transform_1, window_bounds = array<i64: 32, 1>}, {pipeline_mode = #tpu.pipeline_mode<synchronous>, transform_indices = @transform_2, window_bounds = array<i64: 16, 512>}, {pipeline_mode = #tpu.pipeline_mode<synchronous>, transform_indices = @transform_3, window_bounds = array<i64: 1024, 512>}, {pipeline_mode = #tpu.pipeline_mode<synchronous>, transform_indices = @transform_4, window_bounds = array<i64: 512, 512>}, {pipeline_mode = #tpu.pipeline_mode<synchronous>, transform_indices = @transform_5, window_bounds = array<i64: 1, 512>}, {pipeline_mode = #tpu.pipeline_mode<synchronous>, transform_indices = @transform_6, window_bounds = array<i64: 512, 512>}, {pipeline_mode = #tpu.pipeline_mode<synchronous>, transform_indices = @transform_7, window_bounds = array<i64: 1, 512>}, {pipeline_mode = #tpu.pipeline_mode<synchronous>, transform_indices = @transform_8, window_bounds = array<i64: 1, 512>}, {pipeline_mode = #tpu.pipeline_mode<synchronous>, transform_indices = @transform_9, window_bounds = array<i64: 1, 1>}, {transform_indices = @transform_10, window_bounds = array<i64: 32, 1>}]} {
    %c0 = arith.constant 0 : index
    %c0_0 = arith.constant 0 : index
    %0 = vector.load %arg2[%c0, %c0_0] : memref<32x1xi32, #tpu.memory_space<vmem>>, vector<32x1xi32>
    %1 = tpu.iota {dimensions = array<i32: 1>} : vector<32x16xi32>
    %2 = vector.broadcast %0 : vector<32x1xi32> to vector<32x16xi32>
    %3 = arith.cmpi eq, %2, %1 : vector<32x16xi32>
    %4 = arith.extui %3 : vector<32x16xi1> to vector<32x16xi32>
    %5 = arith.sitofp %4 : vector<32x16xi32> to vector<32x16xf32>
    %c0_1 = arith.constant 0 : index
    %c0_2 = arith.constant 0 : index
    %6 = vector.load %arg3[%c0_1, %c0_2] : memref<16x512xf32, #tpu.memory_space<vmem>>, vector<16x512xf32>
    %cst = arith.constant dense<0.000000e+00> : vector<32x512xf32>
    %7 = tpu.matmul %5, %6, %cst {dimension_numbers = #tpu.dot_dimension_numbers<[1], [0], [0], [1], [0, 0, 1, 1], [], []>} : vector<32x16xf32>, vector<16x512xf32>, vector<32x512xf32> -> vector<32x512xf32>
    %c0_3 = arith.constant 0 : index
    %c0_4 = arith.constant 0 : index
    %8 = vector.load %arg1[%c0_3, %c0_4] : memref<32x1024xf32, #tpu.memory_space<vmem>>, vector<32x1024xf32>
    %9 = arith.truncf %8 : vector<32x1024xf32> to vector<32x1024xbf16>
    %c0_5 = arith.constant 0 : index
    %c0_6 = arith.constant 0 : index
    %10 = vector.load %arg4[%c0_5, %c0_6] : memref<1024x512xbf16, #tpu.memory_space<vmem>>, vector<1024x512xbf16>
    %cst_7 = arith.constant dense<0.000000e+00> : vector<32x512xf32>
    %11 = tpu.matmul %9, %10, %cst_7 {dimension_numbers = #tpu.dot_dimension_numbers<[1], [0], [0], [1], [0, 0, 1, 1], [], []>} : vector<32x1024xbf16>, vector<1024x512xbf16>, vector<32x512xf32> -> vector<32x512xf32>
    %12 = arith.addf %11, %7 : vector<32x512xf32>
    %cst_8 = arith.constant 0.000000e+00 : f32
    %13 = vector.broadcast %cst_8 : f32 to vector<32x512xf32>
    %14 = arith.maximumf %12, %13 : vector<32x512xf32>
    %15 = arith.truncf %14 : vector<32x512xf32> to vector<32x512xbf16>
    %c0_9 = arith.constant 0 : index
    %c0_10 = arith.constant 0 : index
    %16 = vector.load %arg5[%c0_9, %c0_10] : memref<512x512xbf16, #tpu.memory_space<vmem>>, vector<512x512xbf16>
    %cst_11 = arith.constant dense<0.000000e+00> : vector<32x512xf32>
    %17 = tpu.matmul %15, %16, %cst_11 {dimension_numbers = #tpu.dot_dimension_numbers<[1], [0], [0], [1], [0, 0, 1, 1], [], []>} : vector<32x512xbf16>, vector<512x512xbf16>, vector<32x512xf32> -> vector<32x512xf32>
    %c0_12 = arith.constant 0 : index
    %c0_13 = arith.constant 0 : index
    %18 = vector.load %arg6[%c0_12, %c0_13] : memref<1x512xf32, #tpu.memory_space<vmem>>, vector<1x512xf32>
    %19 = vector.broadcast %18 : vector<1x512xf32> to vector<32x512xf32>
    %20 = arith.addf %17, %19 : vector<32x512xf32>
    %cst_14 = arith.constant 0.000000e+00 : f32
    %21 = vector.broadcast %cst_14 : f32 to vector<32x512xf32>
    %22 = arith.maximumf %20, %21 : vector<32x512xf32>
    %23 = arith.truncf %22 : vector<32x512xf32> to vector<32x512xbf16>
    %c0_15 = arith.constant 0 : index
    %c0_16 = arith.constant 0 : index
    %24 = vector.load %arg7[%c0_15, %c0_16] : memref<512x512xbf16, #tpu.memory_space<vmem>>, vector<512x512xbf16>
    %cst_17 = arith.constant dense<0.000000e+00> : vector<32x512xf32>
    %25 = tpu.matmul %23, %24, %cst_17 {dimension_numbers = #tpu.dot_dimension_numbers<[1], [0], [0], [1], [0, 0, 1, 1], [], []>} : vector<32x512xbf16>, vector<512x512xbf16>, vector<32x512xf32> -> vector<32x512xf32>
    %c0_18 = arith.constant 0 : index
    %c0_19 = arith.constant 0 : index
    %26 = vector.load %arg8[%c0_18, %c0_19] : memref<1x512xf32, #tpu.memory_space<vmem>>, vector<1x512xf32>
    %27 = vector.broadcast %26 : vector<1x512xf32> to vector<32x512xf32>
    %28 = arith.addf %25, %27 : vector<32x512xf32>
    %cst_20 = arith.constant 0.000000e+00 : f32
    %29 = vector.broadcast %cst_20 : f32 to vector<32x512xf32>
    %30 = arith.maximumf %28, %29 : vector<32x512xf32>
    %c0_21 = arith.constant 0 : index
    %c0_22 = arith.constant 0 : index
    %31 = vector.load %arg9[%c0_21, %c0_22] : memref<1x512xf32, #tpu.memory_space<vmem>>, vector<1x512xf32>
    %32 = vector.broadcast %31 : vector<1x512xf32> to vector<32x512xf32>
    %33 = arith.mulf %30, %32 : vector<32x512xf32>
    %cst_23 = arith.constant dense<0.000000e+00> : vector<32xf32>
    %34 = vector.multi_reduction <add>, %33, %cst_23 [1] : vector<32x512xf32> to vector<32xf32>
    %35 = vector.shape_cast %34 : vector<32xf32> to vector<32x1xf32>
    %c0_24 = arith.constant 0 : index
    %c0_25 = arith.constant 0 : index
    %36 = vector.load %arg10[%c0_24, %c0_25] : memref<1x1xf32, #tpu.memory_space<vmem>>, vector<1x1xf32>
    %37 = vector.broadcast %36 : vector<1x1xf32> to vector<32x1xf32>
    %38 = arith.addf %35, %37 : vector<32x1xf32>
    %c0_26 = arith.constant 0 : index
    %c0_27 = arith.constant 0 : index
    %39 = vector.load %arg11[%c0_26, %c0_27] : memref<32x1xf32, #tpu.memory_space<vmem>>, vector<32x1xf32>
    tpu.vector_store %arg11[%c0_26, %c0_27], %38 {strides = array<i32>} : memref<32x1xf32, #tpu.memory_space<vmem>>, vector<32x1xf32>,
    return
  }
  func.func @transform_0(%arg0: i32) -> (i32, i32) {
    %c0_i32 = arith.constant 0 : i32
    %c0_i32_0 = arith.constant 0 : i32
    return %arg0, %c0_i32 : i32, i32
  }
  func.func @transform_1(%arg0: i32) -> (i32, i32) {
    %c0_i32 = arith.constant 0 : i32
    %c0_i32_0 = arith.constant 0 : i32
    return %arg0, %c0_i32 : i32, i32
  }
  func.func @transform_2(%arg0: i32) -> (i32, i32) {
    %c0_i32 = arith.constant 0 : i32
    %c0_i32_0 = arith.constant 0 : i32
    %c0_i32_1 = arith.constant 0 : i32
    return %c0_i32, %c0_i32_0 : i32, i32
  }
  func.func @transform_3(%arg0: i32) -> (i32, i32) {
    %c0_i32 = arith.constant 0 : i32
    %c0_i32_0 = arith.constant 0 : i32
    %c0_i32_1 = arith.constant 0 : i32
    return %c0_i32, %c0_i32_0 : i32, i32
  }
  func.func @transform_4(%arg0: i32) -> (i32, i32) {
    %c0_i32 = arith.constant 0 : i32
    %c0_i32_0 = arith.constant 0 : i32
    %c0_i32_1 = arith.constant 0 : i32
    return %c0_i32, %c0_i32_0 : i32, i32
  }
  func.func @transform_5(%arg0: i32) -> (i32, i32) {
    %c0_i32 = arith.constant 0 : i32
    %c0_i32_0 = arith.constant 0 : i32
    %c0_i32_1 = arith.constant 0 : i32
    return %c0_i32, %c0_i32_0 : i32, i32
  }
  func.func @transform_6(%arg0: i32) -> (i32, i32) {
    %c0_i32 = arith.constant 0 : i32
    %c0_i32_0 = arith.constant 0 : i32
    %c0_i32_1 = arith.constant 0 : i32
    return %c0_i32, %c0_i32_0 : i32, i32
  }
  func.func @transform_7(%arg0: i32) -> (i32, i32) {
    %c0_i32 = arith.constant 0 : i32
    %c0_i32_0 = arith.constant 0 : i32
    %c0_i32_1 = arith.constant 0 : i32
    return %c0_i32, %c0_i32_0 : i32, i32
  }
  func.func @transform_8(%arg0: i32) -> (i32, i32) {
    %c0_i32 = arith.constant 0 : i32
    %c0_i32_0 = arith.constant 0 : i32
    %c0_i32_1 = arith.constant 0 : i32
    return %c0_i32, %c0_i32_0 : i32, i32
  }
  func.func @transform_9(%arg0: i32) -> (i32, i32) {
    %c0_i32 = arith.constant 0 : i32
    %c0_i32_0 = arith.constant 0 : i32
    %c0_i32_1 = arith.constant 0 : i32
    return %c0_i32, %c0_i32_0 : i32, i32
  }
  func.func @transform_10(%arg0: i32) -> (i32, i32) {
    %c0_i32 = arith.constant 0 : i32
    %c0_i32_0 = arith.constant 0 : i32
    return %arg0, %c0_i32 : i32, i32
  }
}

</mosaic_0001>

<bundles_post_ra>
// kernel: tpu_custom_call.1
= control target key start
LH: loop header
LB: loop body
LE: loop exit
PB: predicated region body
PF: predicated region fallthrough
CT: control target
= control target key end

     0   :  { %s7026_s0 = inlined_call_operand.hbm [shape: f32[64,1024], index: 0, kind: input, shape index: {}]   ;;  %s7027_s1 = inlined_call_operand.vmem [shape: s32[64,1], index: 1, kind: input, shape index: {}]   ;;  %s7028_s2 = inlined_call_operand.vmem [shape: f32[16,512], index: 2, kind: input, shape index: {}]   ;;  %s7029_s3 = inlined_call_operand.hbm [shape: bf16[1024,512], index: 3, kind: input, shape index: {}]   ;;  %s7030_s4 = inlined_call_operand.hbm [shape: bf16[512,512], index: 4, kind: input, shape index: {}]   ;;  %s7031_s5 = inlined_call_operand.vmem [shape: f32[1,512], index: 5, kind: input, shape index: {}]   ;;  %s7032_s6 = inlined_call_operand.hbm [shape: bf16[512,512], index: 6, kind: input, shape index: {}]   ;;  %s7033_s7 = inlined_call_operand.vmem [shape: f32[1,512], index: 7, kind: input, shape index: {}]   ;;  %s7034_s8 = inlined_call_operand.vmem [shape: f32[1,512], index: 8, kind: input, shape index: {}]   ;;  %s7035_s9 = inlined_call_operand.<no memory space> [shape: f32[1,1], index: 9, kind: input, shape index: {}]   ;;  %s7036_s10 = inlined_call_operand.vmem [shape: f32[64,1], index: 10, kind: output, shape index: {}]  }
   0x1   :  { %v15_v0 = vstv %s7035_s9 }
   0x2   :  { %16 = vst [vmem:[#allocation2] sm:$0x1] %v15_v0 }
   0x3   :  { %17 = vsyncpa [#allocation4], 0 }
   0x4   :  { %19 = vsyncpa [#allocation4 + $0x1], 0 }
   0x5   :  { %20 = vsyncpa [#allocation6], 0 }
   0x6   :  { %21 = vsyncpa [#allocation9], 0  ;;  %s6551_s15 = smov 0   ;;  %s6553_s16 = smov 0  }
   0x7   :  { %s6555_s17 = smov 0   ;;  %s6557_s18 = smov 0  }
   0x8 LB: > { %s7040_s9 = sadd.s32 4294967295, %s6481_s18   ;;  %p47_p0 = scmp.ne.s32.totalorder %s6473_s16, %s6469_s15  ;;  %s6481_s18 = sphi %s6557_s18, %s7054_s18   ;;  %s6477_s17 = sphi %s6555_s17, %s7053_s17   ;;  %s6473_s16 = sphi %s6553_s16, %s7052_s16   ;;  %s6469_s15 = sphi %s6551_s15, %s7051_s15  }
   0x9   : > { %p6573_p1 = scmp.eq.s32.totalorder %s7040_s9, 0  ;;  %p4940_p2 = scmp.ge.s32.totalorder %s6481_s18, 1 }
   0xa   : > { %p278_p3 = scmp.lt.s32.totalorder %s6481_s18, 3  ;;  %s6483_s22 = smov [#allocation5]  }
   0xb   : > { %s7042_s19 = scalar_select %p6573_p1, 1, 0 }
   0xc   : > { %p6581_p4 = por %p6573_p1, %p47_p0  ;;  %p6585_p5 = pnand %p4940_p2, %p278_p3 }
   0xd   : > { %s293_s23 = sshll.u32 %s6483_s22, 4  ;;  %s6484_s25 = smov [#allocation7]   ;;  %s294_s23 = int_to_ptr.vmem [resolvable:$true] %s293_s23 }
   0xe   : > { %s7043_s20 = scalar_select %p6581_p4, 1, 0 }
   0xf   : > { %s7044_s21 = scalar_select %p6585_p5, 1, 0 }
  0x10   : > { %p5501_p6 = pneg %p6585_p5  ;;  %s306_s26 = sshll.u32 %s6484_s25, 4  ;;  %s307_s26 = int_to_ptr.vmem [resolvable:$true] %s306_s26 }
  0x11   : > { %s6485_s27 = smov [#allocation8]   ;;  %s6344_s29 = scalar_lea.vmem %s294_s23, 32768 }
  0x12   : > { %p6593_p7 = pnand %p5501_p6, %p6573_p1  ;;  %s322_s28 = sshll.u32 %s6485_s27, 4  ;;  %s323_s28 = int_to_ptr.vmem [resolvable:$true] %s322_s28 }
  0x13   : > { %p6345_p9 = scmp.ne.s32.totalorder %s294_s23, %s6344_s29  ;;  %p6352_p12 = scmp.lt.s32.totalorder %s294_s23, %s294_s23 }
  0x14   : > { %p6335_p8 = pneg %p6593_p7  ;;  %p6353_p13 = scmp.lt.s32.totalorder %s6344_s29, %s6344_s29 }
  0x16   : > { %p6347_p10 = pnand %p6345_p9, %p6335_p8  ;;  %p6354_p0 = por %p6353_p13, %p6352_p12 }
  0x18   : > { %p6348_p11 = pneg %p6347_p10 }
  0x1a   : > { %p6355_p2 = pnand %p6354_p0, %p6348_p11 }
  0x1c   : > { %6358 = shalt.err (!%p6355_p2)
}
  0x1d   : > { %s6486_s30 = smov 256   ;;  %s6487_s11 = smov 16  }
  0x1e   : > { %5504 = dma.hbm_to_vmem [thread:$0]  (!%p6593_p7), %s7029_s3, 32768, %s294_s23, [#allocation6], %s6486_s30, %s6486_s30, %s6487_s11  }
  0x1f   : > { %s6370_s14 = scalar_lea.vmem %s307_s26, 16384  ;;  %p6378_p10 = scmp.lt.s32.totalorder %s307_s26, %s307_s26 }
  0x20   : > { %p6371_p3 = scmp.ne.s32.totalorder %s307_s26, %s6370_s14  ;;  %p6379_p1 = scmp.lt.s32.totalorder %s6370_s14, %s6370_s14 }
  0x22   : > { %p6373_p6 = pnand %p6371_p3, %p6335_p8  ;;  %p6380_p12 = por %p6379_p1, %p6378_p10 }
  0x24   : > { %p6374_p9 = pneg %p6373_p6 }
  0x26   : > { %p6381_p11 = pnand %p6380_p12, %p6374_p9 }
  0x28   : > { %6384 = shalt.err (!%p6381_p11)
}
  0x29   : > { %5507 = dma.hbm_to_vmem [thread:$0]  (!%p6593_p7), %s7030_s4, 16384, %s307_s26, [#allocation6], %s6486_s30, %s6486_s30, %s6487_s11  }
  0x2a   : > { %s6396_s23 = scalar_lea.vmem %s323_s28, 16384  ;;  %p6404_p3 = scmp.lt.s32.totalorder %s323_s28, %s323_s28 }
  0x2b   : > { %p6397_p13 = scmp.ne.s32.totalorder %s323_s28, %s6396_s23  ;;  %p6405_p6 = scmp.lt.s32.totalorder %s6396_s23, %s6396_s23 }
  0x2d   : > { %p6399_p0 = pnand %p6397_p13, %p6335_p8  ;;  %p6406_p4 = por %p6405_p6, %p6404_p3 }
  0x2f   : > { %p6400_p2 = pneg %p6399_p0 }
  0x31   : > { %p6407_p1 = pnand %p6406_p4, %p6400_p2 }
  0x33   : > { %6410 = shalt.err (!%p6407_p1)
}
  0x34   : > { %5510 = dma.hbm_to_vmem [thread:$0]  (!%p6593_p7), %s7032_s6, 16384, %s323_s28, [#allocation9], %s6486_s30, %s6486_s30, %s6487_s11  }
  0x35   : > { %s6624_s26 = sadd.s32 1, %s6481_s18   ;;  %s34_s12 = sadd.s32 1, %s6477_s17 }
  0x36   : > { %s31_s29 = ssub.s32 %s6481_s18, %s6624_s26  ;;  %p41_p8 = scmp.ne.s32.totalorder %s6477_s17, %s6473_s16 }
  0x37   : > { %p32_p4 = scmp.eq.s32.totalorder %s31_s29, 0  ;;  %p42_p9 = scmp.eq.s32.totalorder %s6481_s18, 0 }
  0x38   : > { %p5518_p10 = scmp.lt.s32.totalorder %s6481_s18, 2  ;;  %s345_s13 = sand.u32 1, %s6477_s17  }
  0x39   : > { %s6634_s24 = scalar_select %p32_p4, %s6477_s17, %s34_s12  }
  0x3a   : > { %p43_p12 = por %p42_p9, %p41_p8  ;;  %s4945_s14 = sshll.u32 %s345_s13, 8 }
  0x3b   : > { %s5486_s15 = sshll.u32 %s6481_s18, 12  ;;  %s349_s28 = scalar_lea.vmem [#allocation3], %s4945_s14 }
  0x3c   : > { %s6641_s25 = scalar_lea.hbm %s7026_s0, %s5486_s15  ;;  %s357_s30 = sshll.u32 %s349_s28, 4  ;;  %s6643_s30 = int_to_ptr.vmem [resolvable:$true] %s357_s30 }
  0x3d   : > { %p6645_p7 = pnand %p5518_p10, %p43_p12  ;;  %s6649_s27 = scalar_lea.sflag [#allocation4], %s345_s13 }
  0x3e   : > { %s6411_s29 = scalar_lea.hbm %s6641_s25, 4096  ;;  %s6416_s14 = scalar_lea.hbm %s7026_s0, 8192 }
  0x3f   : > { %p6412_p11 = scmp.ne.s32.totalorder %s6641_s25, %s6411_s29  ;;  %p6413_p13 = pneg %p6645_p7 }
  0x40   : > { %p6417_p3 = scmp.lt.s32.totalorder %s6641_s25, %s7026_s0  ;;  %p6418_p6 = scmp.lt.s32.totalorder %s6416_s14, %s6411_s29 }
  0x41   : > { %p6414_p0 = pnand %p6413_p13, %p6412_p11 }
  0x42   : > { %p6419_p1 = por %p6418_p6, %p6417_p3 }
  0x43   : > { %p6415_p2 = pneg %p6414_p0 }
  0x45   : > { %p6420_p4 = pnand %p6419_p1, %p6415_p2 }
  0x47   : > { %6423 = shalt.err (!%p6420_p4)
}
  0x48   : > { %s6424_s13 = scalar_lea.vmem %s6643_s30, 4096  ;;  %s6488_s28 = smov [#allocation3]  }
  0x49   : > { %p6425_p8 = scmp.ne.s32.totalorder %s6643_s30, %s6424_s13  ;;  %s6429_s9 = sshll.u32 %s6488_s28, 4  ;;  %s6430_s9 = int_to_ptr.vmem [resolvable:$false] %s6429_s9 }
  0x4a   : > { %s6431_s12 = scalar_lea.vmem %s6430_s9, 8192  ;;  %p6432_p12 = scmp.lt.s32.totalorder %s6643_s30, %s6430_s9 }
  0x4b   : > { %p6427_p9 = pnand %p6425_p8, %p6413_p13  ;;  %p6433_p11 = scmp.lt.s32.totalorder %s6431_s12, %s6424_s13 }
  0x4d   : > { %p6428_p10 = pneg %p6427_p9  ;;  %p6434_p0 = por %p6433_p11, %p6432_p12 }
  0x4f   : > { %p6435_p5 = pnand %p6434_p0, %p6428_p10 }
  0x51   : > { %6438 = shalt.err (!%p6435_p5)
}
  0x52   : > { %s6489_s29 = smov 1024   ;;  %s6490_s15 = smov 64  }
  0x53   : > { %5514 = dma.hbm_to_vmem [thread:$0]  (!%p6645_p7), %s6641_s25, 4096, %s6643_s30, %s6649_s27, %s6489_s29, %s6489_s29, %s6490_s15  }
  0x54   : > { %p7047_p13 = scmp.ne.s32.totalorder %s7044_s21, 0 }
  0x55   : > { %s380_s14 = sand.u32 (!%p7047_p13), 1, %s6473_s16   ;;  %p7048_p2 = scmp.ne.s32.totalorder (!%p7047_p13), %s7043_s20, 0 }
  0x56   : > { %378 = sbr.rel (%p7047_p13) target bundleno = 1385 (0x569), region = 60  ;;  %s4950_s22 = sshll.u32 (!%p7047_p13), %s380_s14, 8 }
  0x57   : > { %s381_s9 = scalar_lea.sflag (!%p7047_p13), [#allocation4], %s380_s14  ;;  %s6673_s23 = scalar_lea.vmem (!%p7047_p13), [#allocation3], %s4950_s22 }
  0x5b   : > { %6456 = dma.done.wait (%p7048_p2), %s381_s9, 4096  }
  0x5c   : > { %6458 = vsyncadd (%p7048_p2), %s381_s9, 4294963200  ;;  %p7049_p5 = scmp.ne.s32.totalorder %s7042_s19, 0 }
  0x5e   : > { %6460 = dma.done.wait (%p7049_p5), [#allocation6], 49152  }
  0x5f   : > { %6462 = vsyncadd (%p7049_p5), [#allocation6], 4294918144 }
  0x60   : > { %6464 = dma.done.wait (%p7049_p5), [#allocation9], 16384  }
  0x61   : > { %6466 = vsyncadd (%p7049_p5), [#allocation9], 4294950912  ;;  %s7050_s21 = sadd.s32 4294967295, %s6481_s18   ;;  %v6491_v1 = vmov 0   ;;  %v6492_v2 = vmov 0.0   ;;  %v486_v7 = vld [vmem:[%s7028_s2 + $0x28] sm:$0xff]  ;;  %v455_v17 = vlaneseq }
  0x62   : > { %s4954_s25 = sshll.u32 %s7050_s21, 2  ;;  %5563 = vset.pattern.permute.xlu0 %v6491_v1  ;;  %5564 = vset.pattern.permute.xlu1 %v6491_v1  ;;  %v488_v8 = vld [vmem:[%s7028_s2 + $0x38] sm:$0xff]  ;;  %v485_v9 = vld [vmem:[%s7028_s2 + $0x20] sm:$0xff]  ;;  %v487_v10 = vld [vmem:[%s7028_s2 + $0x30] sm:$0xff]  ;;  %vm489_vm0 = vcmask 130048   ;;  %vm4825_vm5 = vcmask 7168  }
  0x63   : > { %p440_p7 = scmp.lt.s32.totalorder %s4954_s25, 7  ;;  %566 = vmatprep.mubr.f32.mxu0 %v6492_v2  ;;  %655 = vmatprep.mubr.f32.mxu1 %v6492_v2  ;;  %v482_v11 = vld [vmem:[%s7028_s2 + $0x8] sm:$0xff]  ;;  %v484_v12 = vld [vmem:[%s7028_s2 + $0x18] sm:$0xff]  ;;  %v481_v13 = vld [vmem:[%s7028_s2] sm:$0xff]  ;;  %v456_v18 = vand.u32 127, %v455_v17 }
  0x64   : > { %530 = vmatprep.subr.mxu0 %v486_v7  ;;  %619 = vmatprep.subr.mxu1 %v488_v8  ;;  %v483_v14 = vld [vmem:[%s7028_s2 + $0x10] sm:$0xff]  ;;  %v683_v40 = vld [vmem:[%s6673_s23 + $0x18] sm:$0xff] }
  0x65   : > { %s7056_s25 = smov (!%p440_p7, %s4954_s25), 7  ;;  %531 = vmatpush1.msra.mxu0 %v485_v9  ;;  %620 = vmatpush1.msra.mxu1 %v487_v10  ;;  %v5567_v15 = vld [vmem:[#allocation5 + $0xe4] ss:$16 sps:$4 sm:$0xff]   ;;  %v5565_v20 = vld [vmem:[#allocation5 + $0xe0] ss:$16 sps:$4 sm:$0xff]   ;;  %v681_v38 = vld [vmem:[%s6673_s23 + $0x8] sm:$0xff] }
  0x66   : > { %s4955_s20 = sshll.u32 %s7056_s25, 3  ;;  %532 = vmatprep.subr.mxu0 %v482_v11  ;;  %621 = vmatprep.subr.mxu1 %v484_v12  ;;  %v5570_v16 = vld [vmem:[#allocation5 + $0x2e4] ss:$16 sps:$4 sm:$0xff]   ;;  %v5568_v21 = vld [vmem:[#allocation5 + $0x2e0] ss:$16 sps:$4 sm:$0xff]   ;;  %v689_v39 = vld [vmem:[%s6673_s23 + $0x48] sm:$0xff] }
  0x67   : > { %s443_s18 = scalar_lea.vmem %s7027_s1, %s4955_s20  ;;  %533 = vmatpush1.msra.mxu0 %v481_v13  ;;  %622 = vmatpush1.msra.mxu1 %v483_v14  ;;  %v5573_v24 = vld [vmem:[#allocation5 + $0xc4] ss:$16 sps:$4 sm:$0xff]   ;;  %v5571_v27 = vld [vmem:[#allocation5 + $0xc0] ss:$16 sps:$4 sm:$0xff]   ;;  %v691_v41 = vld [vmem:[%s6673_s23 + $0x58] sm:$0xff]  ;;  %v6744_v47 = vpack.c.bf16 %v689_v39, %v681_v38  ;;  %s449_s9 = scalar_lea.vmem %s7036_s10, %s4955_s20 }
  0x68   : > { %v451_v3 = vld [vmem:[%s443_s18] sm:$0xff]  ;;  %v452_v4 = vld [vmem:[%s443_s18 + $0x8] sm:$0xff]  ;;  %v453_v5 = vld [vmem:[%s443_s18 + $0x10] sm:$0xff]  ;;  %2264 = vmatprep.subr.bf16.mxu0 %v5567_v15  ;;  %2317 = vmatprep.subr.bf16.mxu1 %v5570_v16  ;;  %v6746_v48 = vpack.c.bf16 %v691_v41, %v683_v40 }
  0x69   : > { %458 = vperm.xlu0 %5563, %v451_v3   ;;  %464 = vperm.xlu1 %5564, %v453_v5   ;;  %v454_v6 = vld [vmem:[%s443_s18 + $0x18] sm:$0xff]  ;;  %v5574_v28 = vld [vmem:[#allocation5 + $0x2c0] ss:$16 sps:$4 sm:$0xff]   ;;  %v697_v38 = vld [vmem:[%s6673_s23 + $0x88] sm:$0xff] }
  0x6a   : > { %v5576_v25 = vld [vmem:[#allocation5 + $0x2c4] ss:$16 sps:$4 sm:$0xff]   ;;  %v5577_v33 = vld [vmem:[#allocation5 + $0xa0] ss:$16 sps:$4 sm:$0xff]   ;;  %v705_v39 = vld [vmem:[%s6673_s23 + $0xc8] sm:$0xff] }
  0x6b   : > { %v5579_v29 = vld [vmem:[#allocation5 + $0xa4] ss:$16 sps:$4 sm:$0xff]   ;;  %v5580_v34 = vld [vmem:[#allocation5 + $0x2a0] ss:$16 sps:$4 sm:$0xff]   ;;  %v699_v40 = vld [vmem:[%s6673_s23 + $0x98] sm:$0xff] }
  0x6c   : > { %v5582_v30 = vld [vmem:[#allocation5 + $0x2a4] ss:$16 sps:$4 sm:$0xff]   ;;  %v5583_v42 = vld [vmem:[#allocation5 + $0x80] ss:$16 sps:$4 sm:$0xff]   ;;  %v707_v41 = vld [vmem:[%s6673_s23 + $0xd8] sm:$0xff] }
  0x6d   : > { %461 = vperm.xlu0 %5563, %v452_v4   ;;  %467 = vperm.xlu1 %5564, %v454_v6   ;;  %v5585_v36 = vld [vmem:[#allocation5 + $0x84] ss:$16 sps:$4 sm:$0xff]   ;;  %v5586_v43 = vld [vmem:[#allocation5 + $0x280] ss:$16 sps:$4 sm:$0xff]  }
  0x6e   : > { %v5588_v37 = vld [vmem:[#allocation5 + $0x284] ss:$16 sps:$4 sm:$0xff]   ;;  %v5589_v49 = vld [vmem:[#allocation5 + $0x60] ss:$16 sps:$4 sm:$0xff]  }
  0x6f   : > { %v5591_v45 = vld [vmem:[#allocation5 + $0x64] ss:$16 sps:$4 sm:$0xff]   ;;  %v5592_v50 = vld [vmem:[#allocation5 + $0x260] ss:$16 sps:$4 sm:$0xff]  }
  0x70   : > { %v5594_v46 = vld [vmem:[#allocation5 + $0x264] ss:$16 sps:$4 sm:$0xff]   ;;  %v5595_v53 = vld [vmem:[#allocation5 + $0x40] ss:$16 sps:$4 sm:$0xff]  }
  0x71   : > { %v5597_v51 = vld [vmem:[#allocation5 + $0x44] ss:$16 sps:$4 sm:$0xff]   ;;  %v5598_v54 = vld [vmem:[#allocation5 + $0x240] ss:$16 sps:$4 sm:$0xff]  }
  0x72   : > { %v5600_v52 = vld [vmem:[#allocation5 + $0x244] ss:$16 sps:$4 sm:$0xff]   ;;  %v5601_v57 = vld [vmem:[#allocation5 + $0x20] ss:$16 sps:$4 sm:$0xff]  }
  0x73   : > { %v5603_v55 = vld [vmem:[#allocation5 + $0x24] ss:$16 sps:$4 sm:$0xff]   ;;  %v5604_v58 = vld [vmem:[#allocation5 + $0x220] ss:$16 sps:$4 sm:$0xff]  }
  0x74   : > { %v5606_v56 = vld [vmem:[#allocation5 + $0x224] ss:$16 sps:$4 sm:$0xff]   ;;  %v5607_v61 = vld [vmem:[#allocation5] ss:$16 sps:$4 sm:$0xff]  }
  0x75   : > { %v5609_v59 = vld [vmem:[#allocation5 + $0x4] ss:$16 sps:$4 sm:$0xff]   ;;  %v5610_v62 = vld [vmem:[#allocation5 + $0x200] ss:$16 sps:$4 sm:$0xff]  }
  0x76   : > { %v5612_v60 = vld [vmem:[#allocation5 + $0x204] ss:$16 sps:$4 sm:$0xff]   ;;  %v5613_v1 = vld [vmem:[#allocation5 + $0x1e0] ss:$16 sps:$4 sm:$0xff]  }
  0x77   : > { %v5615_v63 = vld [vmem:[#allocation5 + $0x1e4] ss:$16 sps:$4 sm:$0xff]   ;;  %v5619_v5 = vld [vmem:[#allocation5 + $0x1c0] ss:$16 sps:$4 sm:$0xff]  }
  0x78   : > { %v5618_v0 = vld [vmem:[#allocation5 + $0x3e4] ss:$16 sps:$4 sm:$0xff]   ;;  %v5622_v6 = vld [vmem:[#allocation5 + $0x3c0] ss:$16 sps:$4 sm:$0xff]  }
  0x79   : > { %v5621_v3 = vld [vmem:[#allocation5 + $0x1c4] ss:$16 sps:$4 sm:$0xff]   ;;  %v5625_v9 = vld [vmem:[#allocation5 + $0x1a0] ss:$16 sps:$4 sm:$0xff]  }
  0x7a   : > { %v5624_v4 = vld [vmem:[#allocation5 + $0x3c4] ss:$16 sps:$4 sm:$0xff]   ;;  %v5628_v10 = vld [vmem:[#allocation5 + $0x3a0] ss:$16 sps:$4 sm:$0xff]  }
  0x7b   : > { %v5627_v7 = vld [vmem:[#allocation5 + $0x1a4] ss:$16 sps:$4 sm:$0xff]   ;;  %v5631_v13 = vld [vmem:[#allocation5 + $0x180] ss:$16 sps:$4 sm:$0xff]  }
  0x7c   : > { %v5630_v8 = vld [vmem:[#allocation5 + $0x3a4] ss:$16 sps:$4 sm:$0xff]   ;;  %v5634_v14 = vld [vmem:[#allocation5 + $0x380] ss:$16 sps:$4 sm:$0xff]  }
  0x7d   : > { %v5633_v11 = vld [vmem:[#allocation5 + $0x184] ss:$16 sps:$4 sm:$0xff]  }
  0x7e   : > { %v5636_v12 = vld [vmem:[#allocation5 + $0x384] ss:$16 sps:$4 sm:$0xff]  }
  0x7f   : > { %v5639_v15 = vld [vmem:[#allocation5 + $0x164] ss:$16 sps:$4 sm:$0xff]  }
  0x80   : > { %v5642_v16 = vld [vmem:[#allocation5 + $0x364] ss:$16 sps:$4 sm:$0xff]  }
  0xe4   : > { %v459_v19 = vpop.permute.xlu0 %458  ;;  %v465_v22 = vpop.permute.xlu1 %464 }
  0xe5   : > { %vm469_vm1 = vcmp.eq.s32.totalorder %v459_v19, %v456_v18  ;;  %vm471_vm3 = vcmp.eq.s32.totalorder %v465_v22, %v456_v18  ;;  %v5640_v19 = vld [vmem:[#allocation5 + $0x360] ss:$16 sps:$4 sm:$0xff]  }
  0xe6   : > { %v4958_v23 = vsel %vm469_vm1, 1.0, %v6492_v2  ;;  %v4960_v35 = vsel %vm471_vm3, 1.0, %v6492_v2  ;;  %v5643_v22 = vld [vmem:[#allocation5 + $0x140] ss:$16 sps:$4 sm:$0xff]  }
  0xe7   : > { %4962 = vmatmul.mubr.msk.f32.vlgmr.msra.gmra.mxu0 %vm489_vm0, %v4958_v23  ;;  %4966 = vmatmul.mubr.msk.f32.vlgmr.msra.gmra.mxu1 %vm489_vm0, %v4958_v23  ;;  %v5646_v23 = vld [vmem:[#allocation5 + $0x340] ss:$16 sps:$4 sm:$0xff]  }
  0xe8   : > { %2265 = vmatpush1.bf16.msra.mxu0 %v5565_v20  ;;  %2318 = vmatpush1.bf16.msra.mxu1 %v5568_v21  ;;  %v462_v26 = vpop.permute.xlu0 %461  ;;  %v468_v32 = vpop.permute.xlu1 %467  ;;  %v5645_v20 = vld [vmem:[#allocation5 + $0x144] ss:$16 sps:$4 sm:$0xff]  }
  0xe9   : > { %vm470_vm2 = vcmp.eq.s32.totalorder %v462_v26, %v456_v18  ;;  %572 = vmatprep.mubr.f32.mxu0 %v6492_v2  ;;  %661 = vmatprep.mubr.f32.mxu1 %v6492_v2  ;;  %vm472_vm4 = vcmp.eq.s32.totalorder %v468_v32, %v456_v18  ;;  %v5637_v18 = vld [vmem:[#allocation5 + $0x160] ss:$16 sps:$4 sm:$0xff]   ;;  %v5648_v21 = vld [vmem:[#allocation5 + $0x344] ss:$16 sps:$4 sm:$0xff]  }
  0xea   : > { %v4959_v31 = vsel %vm470_vm2, 1.0, %v6492_v2  ;;  %2266 = vmatprep.subr.bf16.mxu0 %v5573_v24  ;;  %2319 = vmatprep.subr.bf16.mxu1 %v5576_v25  ;;  %v4961_v44 = vsel %vm472_vm4, 1.0, %v6492_v2  ;;  %v5651_v24 = vld [vmem:[#allocation5 + $0x124] ss:$16 sps:$4 sm:$0xff]   ;;  %v5649_v26 = vld [vmem:[#allocation5 + $0x120] ss:$16 sps:$4 sm:$0xff]  }
  0xeb   : > { %4963 = vmatmul.mubr.msk.f32.gmra.mxu0 %vm489_vm0, %v4959_v31  ;;  %4967 = vmatmul.mubr.msk.f32.gmra.mxu1 %vm489_vm0, %v4959_v31  ;;  %v5654_v25 = vld [vmem:[#allocation5 + $0x324] ss:$16 sps:$4 sm:$0xff]   ;;  %v5658_v31 = vld [vmem:[#allocation5 + $0x300] ss:$16 sps:$4 sm:$0xff]  }
  0xec   : > { %2267 = vmatpush1.bf16.msra.mxu0 %v5571_v27  ;;  %2320 = vmatpush1.bf16.msra.mxu1 %v5574_v28  ;;  %v5652_v27 = vld [vmem:[#allocation5 + $0x320] ss:$16 sps:$4 sm:$0xff]   ;;  %v5657_v28 = vld [vmem:[#allocation5 + $0x104] ss:$16 sps:$4 sm:$0xff]  }
  0xed   : > { %2268 = vmatprep.subr.bf16.mxu0 %v5579_v29  ;;  %2321 = vmatprep.subr.bf16.mxu1 %v5582_v30  ;;  %v5660_v29 = vld [vmem:[#allocation5 + $0x304] ss:$16 sps:$4 sm:$0xff]   ;;  %v5655_v30 = vld [vmem:[#allocation5 + $0x100] ss:$16 sps:$4 sm:$0xff]  }
  0xee   : > { %578 = vmatprep.mubr.f32.mxu0 %v6492_v2  ;;  %667 = vmatprep.mubr.f32.mxu1 %v6492_v2  ;;  %v680_v32 = vld [vmem:[%s6673_s23] sm:$0xff] }
  0xef   : > { %4964 = vmatmul.mubr.msk.f32.gmra.mxu0 %vm489_vm0, %v4960_v35  ;;  %4968 = vmatmul.mubr.msk.f32.gmra.mxu1 %vm489_vm0, %v4960_v35  ;;  %v690_v35 = vld [vmem:[%s6673_s23 + $0x50] sm:$0xff] }
  0xf0   : > { %2269 = vmatpush1.bf16.msra.mxu0 %v5577_v33  ;;  %2322 = vmatpush1.bf16.msra.mxu1 %v5580_v34  ;;  %v688_v33 = vld [vmem:[%s6673_s23 + $0x40] sm:$0xff]  ;;  %v682_v34 = vld [vmem:[%s6673_s23 + $0x10] sm:$0xff] }
  0xf1   : > { %2270 = vmatprep.subr.bf16.mxu0 %v5585_v36  ;;  %2323 = vmatprep.subr.bf16.mxu1 %v5588_v37  ;;  %v5663_v36 = vld [vmem:[#allocation5 + $0x4e4] ss:$16 sps:$4 sm:$0xff]  }
  0xf2   : > { %584 = vmatprep.mubr.f32.mxu0 %v6492_v2  ;;  %673 = vmatprep.mubr.f32.mxu1 %v6492_v2  ;;  %v5616_v2 = vld [vmem:[#allocation5 + $0x3e0] ss:$16 sps:$4 sm:$0xff]   ;;  %v5666_v37 = vld [vmem:[#allocation5 + $0x6e4] ss:$16 sps:$4 sm:$0xff]  }
  0xf3   : > { %4965 = vmatmul.mubr.msk.f32.gmra.mxu0 %vm489_vm0, %v4961_v44  ;;  %4969 = vmatmul.mubr.msk.f32.gmra.mxu1 %vm489_vm0, %v4961_v44  ;;  %v6760_v44 = vpack.c.bf16 %v688_v33, %v680_v32  ;;  %v5720_v32 = vld [vmem:[#allocation5 + $0x7c4] ss:$16 sps:$4 sm:$0xff]   ;;  %v5715_v33 = vld [vmem:[#allocation5 + $0x5c0] ss:$16 sps:$4 sm:$0xff]  }
  0xf4   : > { %2271 = vmatpush1.bf16.msra.mxu0 %v5583_v42  ;;  %2324 = vmatpush1.bf16.msra.mxu1 %v5586_v43  ;;  %v5661_v42 = vld [vmem:[#allocation5 + $0x4e0] ss:$16 sps:$4 sm:$0xff]  }
  0xf5   : > { %2272 = vmatprep.subr.bf16.mxu0 %v5591_v45  ;;  %2325 = vmatprep.subr.bf16.mxu1 %v5594_v46  ;;  %v5664_v43 = vld [vmem:[#allocation5 + $0x6e0] ss:$16 sps:$4 sm:$0xff]   ;;  %v6762_v45 = vpack.c.bf16 %v690_v35, %v682_v34  ;;  %v5669_v46 = vld [vmem:[#allocation5 + $0x4c4] ss:$16 sps:$4 sm:$0xff]  }
  0xf6   : > { %2296 = vmatprep.mubr.bf16.mxu0 %v6744_v47  ;;  %2349 = vmatprep.mubr.bf16.mxu1 %v6746_v48  ;;  %v5718_v34 = vld [vmem:[#allocation5 + $0x7c0] ss:$16 sps:$4 sm:$0xff]   ;;  %v5723_v35 = vld [vmem:[#allocation5 + $0x5a4] ss:$16 sps:$4 sm:$0xff]  }
  0xf8   : > { %2273 = vmatpush1.bf16.msra.mxu0 %v5589_v49  ;;  %2326 = vmatpush1.bf16.msra.mxu1 %v5592_v50  ;;  %v5672_v49 = vld [vmem:[#allocation5 + $0x6c4] ss:$16 sps:$4 sm:$0xff]   ;;  %v5667_v50 = vld [vmem:[#allocation5 + $0x4c0] ss:$16 sps:$4 sm:$0xff]  }
  0xf9   : > { %2274 = vmatprep.subr.bf16.mxu0 %v5597_v51  ;;  %2327 = vmatprep.subr.bf16.mxu1 %v5600_v52  ;;  %v5670_v51 = vld [vmem:[#allocation5 + $0x6c0] ss:$16 sps:$4 sm:$0xff]   ;;  %v6764_v52 = vpack.c.bf16 %v705_v39, %v697_v38  ;;  %v5729_v39 = vld [vmem:[#allocation5 + $0x584] ss:$16 sps:$4 sm:$0xff]  }
  0xfa   : > { %v5724_v38 = vld [vmem:[#allocation5 + $0x7a0] ss:$16 sps:$4 sm:$0xff]  }
  0xfc   : > { %2275 = vmatpush1.bf16.msra.mxu0 %v5595_v53  ;;  %2328 = vmatpush1.bf16.msra.mxu1 %v5598_v54  ;;  %v696_v53 = vld [vmem:[%s6673_s23 + $0x80] sm:$0xff] }
  0xfd   : > { %2276 = vmatprep.subr.bf16.mxu0 %v5603_v55  ;;  %2329 = vmatprep.subr.bf16.mxu1 %v5606_v56  ;;  %v704_v54 = vld [vmem:[%s6673_s23 + $0xc0] sm:$0xff]  ;;  %v6768_v55 = vpack.c.bf16 %v707_v41, %v699_v40  ;;  %v698_v56 = vld [vmem:[%s6673_s23 + $0x90] sm:$0xff] }
  0xfe   : > { %v5732_v40 = vld [vmem:[#allocation5 + $0x784] ss:$16 sps:$4 sm:$0xff]   ;;  %v5727_v41 = vld [vmem:[#allocation5 + $0x580] ss:$16 sps:$4 sm:$0xff]  }
 0x100   : > { %2277 = vmatpush1.bf16.msra.mxu0 %v5601_v57  ;;  %2330 = vmatpush1.bf16.msra.mxu1 %v5604_v58  ;;  %v706_v57 = vld [vmem:[%s6673_s23 + $0xd0] sm:$0xff] }
 0x101   : > { %2278 = vmatprep.subr.bf16.mxu0 %v5609_v59  ;;  %2331 = vmatprep.subr.bf16.mxu1 %v5612_v60  ;;  %v5675_v58 = vld [vmem:[#allocation5 + $0x4a4] ss:$16 sps:$4 sm:$0xff]   ;;  %v685_v60 = vld [vmem:[%s6673_s23 + $0x28] sm:$0xff] }
 0x102   : > { %v5678_v59 = vld [vmem:[#allocation5 + $0x6a4] ss:$16 sps:$4 sm:$0xff]  }
 0x104   : > { %2279 = vmatpush1.bf16.msra.mxu0 %v5607_v61  ;;  %2332 = vmatpush1.bf16.msra.mxu1 %v5610_v62  ;;  %v693_v61 = vld [vmem:[%s6673_s23 + $0x68] sm:$0xff]  ;;  %v687_v62 = vld [vmem:[%s6673_s23 + $0x38] sm:$0xff] }
 0x105   : > { %2280 = vmatprep.subr.bf16.mxu0 %v5615_v63  ;;  %2333 = vmatprep.subr.bf16.mxu1 %v5618_v0  ;;  %v5673_v63 = vld [vmem:[#allocation5 + $0x4a0] ss:$16 sps:$4 sm:$0xff]  }
 0x106   : > { %v5676_v0 = vld [vmem:[#allocation5 + $0x6a0] ss:$16 sps:$4 sm:$0xff]  }
 0x108   : > { %2281 = vmatpush2.bf16.msra.mxu0 %v5613_v1  ;;  %2334 = vmatpush2.bf16.msra.mxu1 %v5616_v2  ;;  %v695_v1 = vld [vmem:[%s6673_s23 + $0x78] sm:$0xff]  ;;  %v6780_v2 = vpack.c.bf16 %v704_v54, %v696_v53  ;;  %v5744_v53 = vld [vmem:[#allocation5 + $0x744] ss:$16 sps:$4 sm:$0xff]   ;;  %v5739_v54 = vld [vmem:[#allocation5 + $0x540] ss:$16 sps:$4 sm:$0xff]  }
 0x109   : > { %2282 = vmatprep.subr.bf16.mxu0 %v5621_v3  ;;  %2335 = vmatprep.subr.bf16.mxu1 %v5624_v4  ;;  %v6782_v3 = vpack.c.bf16 %v706_v57, %v698_v56  ;;  %v5681_v4 = vld [vmem:[#allocation5 + $0x484] ss:$16 sps:$4 sm:$0xff]   ;;  %v5742_v56 = vld [vmem:[#allocation5 + $0x740] ss:$16 sps:$4 sm:$0xff]  }
 0x10a   : > { %v5747_v57 = vld [vmem:[#allocation5 + $0x524] ss:$16 sps:$4 sm:$0xff]  }
 0x10c   : > { %2283 = vmatpush2.bf16.msra.mxu0 %v5619_v5  ;;  %2336 = vmatpush2.bf16.msra.mxu1 %v5622_v6  ;;  %v5684_v5 = vld [vmem:[#allocation5 + $0x684] ss:$16 sps:$4 sm:$0xff]   ;;  %v6784_v6 = vpack.c.bf16 %v693_v61, %v685_v60  ;;  %v5748_v60 = vld [vmem:[#allocation5 + $0x720] ss:$16 sps:$4 sm:$0xff]  }
 0x10d   : > { %2284 = vmatprep.subr.bf16.mxu0 %v5627_v7  ;;  %2337 = vmatprep.subr.bf16.mxu1 %v5630_v8  ;;  %v6786_v7 = vpack.c.bf16 %v695_v1, %v687_v62  ;;  %v5679_v8 = vld [vmem:[#allocation5 + $0x480] ss:$16 sps:$4 sm:$0xff]   ;;  %v5753_v61 = vld [vmem:[#allocation5 + $0x504] ss:$16 sps:$4 sm:$0xff]  }
 0x10e   : > { %v5756_v62 = vld [vmem:[#allocation5 + $0x704] ss:$16 sps:$4 sm:$0xff]  }
 0x10f   : > { %v684_v1 = vld [vmem:[%s6673_s23 + $0x20] sm:$0xff] }
 0x110   : > { %2285 = vmatpush2.bf16.msra.mxu0 %v5625_v9  ;;  %2338 = vmatpush2.bf16.msra.mxu1 %v5628_v10  ;;  %v5682_v9 = vld [vmem:[#allocation5 + $0x680] ss:$16 sps:$4 sm:$0xff]   ;;  %v5687_v10 = vld [vmem:[#allocation5 + $0x464] ss:$16 sps:$4 sm:$0xff]  }
 0x111   : > { %2286 = vmatprep.subr.bf16.mxu0 %v5633_v11  ;;  %2339 = vmatprep.subr.bf16.mxu1 %v5636_v12  ;;  %v5690_v11 = vld [vmem:[#allocation5 + $0x664] ss:$16 sps:$4 sm:$0xff]   ;;  %v5685_v12 = vld [vmem:[#allocation5 + $0x460] ss:$16 sps:$4 sm:$0xff]  }
 0x114   : > { %2287 = vmatpush2.bf16.msra.mxu0 %v5631_v13  ;;  %2340 = vmatpush2.bf16.msra.mxu1 %v5634_v14  ;;  %v5688_v13 = vld [vmem:[#allocation5 + $0x660] ss:$16 sps:$4 sm:$0xff]   ;;  %v5693_v14 = vld [vmem:[#allocation5 + $0x444] ss:$16 sps:$4 sm:$0xff]  }
 0x115   : > { %2288 = vmatprep.subr.bf16.mxu0 %v5639_v15  ;;  %2341 = vmatprep.subr.bf16.mxu1 %v5642_v16  ;;  %v5696_v15 = vld [vmem:[#allocation5 + $0x644] ss:$16 sps:$4 sm:$0xff]   ;;  %v5691_v16 = vld [vmem:[#allocation5 + $0x440] ss:$16 sps:$4 sm:$0xff]  }
 0x118   : > { %2289 = vmatpush2.bf16.msra.mxu0 %v5637_v18  ;;  %2342 = vmatpush2.bf16.msra.mxu1 %v5640_v19  ;;  %v5694_v18 = vld [vmem:[#allocation5 + $0x640] ss:$16 sps:$4 sm:$0xff]   ;;  %v5699_v19 = vld [vmem:[#allocation5 + $0x424] ss:$16 sps:$4 sm:$0xff]  }
 0x119   : > { %2290 = vmatprep.subr.bf16.mxu0 %v5645_v20  ;;  %2343 = vmatprep.subr.bf16.mxu1 %v5648_v21  ;;  %v5702_v20 = vld [vmem:[#allocation5 + $0x624] ss:$16 sps:$4 sm:$0xff]   ;;  %v5697_v21 = vld [vmem:[#allocation5 + $0x420] ss:$16 sps:$4 sm:$0xff]  }
 0x11c   : > { %2291 = vmatpush2.bf16.msra.mxu0 %v5643_v22  ;;  %2344 = vmatpush2.bf16.msra.mxu1 %v5646_v23  ;;  %v5700_v22 = vld [vmem:[#allocation5 + $0x620] ss:$16 sps:$4 sm:$0xff]   ;;  %v5705_v23 = vld [vmem:[#allocation5 + $0x404] ss:$16 sps:$4 sm:$0xff]  }
 0x11d   : > { %2292 = vmatprep.subr.bf16.mxu0 %v5651_v24  ;;  %2345 = vmatprep.subr.bf16.mxu1 %v5654_v25  ;;  %v5708_v24 = vld [vmem:[#allocation5 + $0x604] ss:$16 sps:$4 sm:$0xff]   ;;  %v5703_v25 = vld [vmem:[#allocation5 + $0x400] ss:$16 sps:$4 sm:$0xff]  }
 0x120   : > { %2293 = vmatpush2.bf16.msra.mxu0 %v5649_v26  ;;  %2346 = vmatpush2.bf16.msra.mxu1 %v5652_v27  ;;  %v5706_v26 = vld [vmem:[#allocation5 + $0x600] ss:$16 sps:$4 sm:$0xff]   ;;  %v5711_v27 = vld [vmem:[#allocation5 + $0x5e4] ss:$16 sps:$4 sm:$0xff]  }
 0x121   : > { %2294 = vmatprep.subr.bf16.mxu0 %v5657_v28  ;;  %2347 = vmatprep.subr.bf16.mxu1 %v5660_v29  ;;  %v5714_v28 = vld [vmem:[#allocation5 + $0x7e4] ss:$16 sps:$4 sm:$0xff]   ;;  %v5709_v29 = vld [vmem:[#allocation5 + $0x5e0] ss:$16 sps:$4 sm:$0xff]  }
 0x124   : > { %2295 = vmatpush2.bf16.msra.mxu0 %v5655_v30  ;;  %2348 = vmatpush2.bf16.msra.mxu1 %v5658_v31  ;;  %v5712_v30 = vld [vmem:[#allocation5 + $0x7e0] ss:$16 sps:$4 sm:$0xff]   ;;  %v5717_v31 = vld [vmem:[#allocation5 + $0x5c4] ss:$16 sps:$4 sm:$0xff]  }
 0x125   : > { %2370 = vmatprep.subr.bf16.mxu0 %v5663_v36  ;;  %2423 = vmatprep.subr.bf16.mxu1 %v5666_v37  ;;  %v5726_v36 = vld [vmem:[#allocation5 + $0x7a4] ss:$16 sps:$4 sm:$0xff]   ;;  %v5721_v37 = vld [vmem:[#allocation5 + $0x5a0] ss:$16 sps:$4 sm:$0xff]  }
 0x127   : > { %2297 = vmatmul.mubr.bf16.vlgmr.msra.gmra.mxu0 %v6760_v44  ;;  %2350 = vmatmul.mubr.bf16.vlgmr.msra.gmra.mxu1 %v6762_v45 }
 0x128   : > { %2371 = vmatpush1.bf16.msra.mxu0 %v5661_v42  ;;  %2424 = vmatpush1.bf16.msra.mxu1 %v5664_v43  ;;  %v5730_v42 = vld [vmem:[#allocation5 + $0x780] ss:$16 sps:$4 sm:$0xff]   ;;  %v5735_v43 = vld [vmem:[#allocation5 + $0x564] ss:$16 sps:$4 sm:$0xff]  }
 0x129   : > { %2372 = vmatprep.subr.bf16.mxu0 %v5669_v46  ;;  %2425 = vmatprep.subr.bf16.mxu1 %v5672_v49  ;;  %v5738_v46 = vld [vmem:[#allocation5 + $0x764] ss:$16 sps:$4 sm:$0xff]   ;;  %v5733_v49 = vld [vmem:[#allocation5 + $0x560] ss:$16 sps:$4 sm:$0xff]  }
 0x12a   : > { %2306 = vmatprep.mubr.bf16.mxu0 %v6764_v52  ;;  %2359 = vmatprep.mubr.bf16.mxu1 %v6768_v55 }
 0x12c   : > { %2373 = vmatpush1.bf16.msra.mxu0 %v5667_v50  ;;  %2426 = vmatpush1.bf16.msra.mxu1 %v5670_v51  ;;  %v5736_v50 = vld [vmem:[#allocation5 + $0x760] ss:$16 sps:$4 sm:$0xff]   ;;  %v5741_v51 = vld [vmem:[#allocation5 + $0x544] ss:$16 sps:$4 sm:$0xff]  }
 0x12d   : > { %2374 = vmatprep.subr.bf16.mxu0 %v5675_v58  ;;  %2427 = vmatprep.subr.bf16.mxu1 %v5678_v59  ;;  %v5750_v58 = vld [vmem:[#allocation5 + $0x724] ss:$16 sps:$4 sm:$0xff]   ;;  %v5745_v59 = vld [vmem:[#allocation5 + $0x520] ss:$16 sps:$4 sm:$0xff]  }
 0x12f   : > { %2307 = vmatmul.mubr.bf16.gmra.mxu0 %v6780_v2  ;;  %2360 = vmatmul.mubr.bf16.gmra.mxu1 %v6782_v3 }
 0x130   : > { %2375 = vmatpush1.bf16.msra.mxu0 %v5673_v63  ;;  %2428 = vmatpush1.bf16.msra.mxu1 %v5676_v0  ;;  %v5751_v63 = vld [vmem:[#allocation5 + $0x500] ss:$16 sps:$4 sm:$0xff]  }
 0x131   : > { %2376 = vmatprep.subr.bf16.mxu0 %v5681_v4  ;;  %2429 = vmatprep.subr.bf16.mxu1 %v5684_v5  ;;  %v5754_v0 = vld [vmem:[#allocation5 + $0x700] ss:$16 sps:$4 sm:$0xff]  }
 0x132   : > { %2402 = vmatprep.mubr.bf16.mxu0 %v6784_v6  ;;  %2455 = vmatprep.mubr.bf16.mxu1 %v6786_v7  ;;  %v692_v4 = vld [vmem:[%s6673_s23 + $0x60] sm:$0xff]  ;;  %v686_v5 = vld [vmem:[%s6673_s23 + $0x30] sm:$0xff] }
 0x134   : > { %2377 = vmatpush1.bf16.msra.mxu0 %v5679_v8  ;;  %2430 = vmatpush1.bf16.msra.mxu1 %v5682_v9  ;;  %v694_v8 = vld [vmem:[%s6673_s23 + $0x70] sm:$0xff]  ;;  %v5759_v9 = vld [vmem:[#allocation5 + $0xec] ss:$16 sps:$4 sm:$0xff]  }
 0x135   : > { %2378 = vmatprep.subr.bf16.mxu0 %v5687_v10  ;;  %2431 = vmatprep.subr.bf16.mxu1 %v5690_v11  ;;  %v5762_v10 = vld [vmem:[#allocation5 + $0x2ec] ss:$16 sps:$4 sm:$0xff]  }
 0x136   : > { %v701_v11 = vld [vmem:[%s6673_s23 + $0xa8] sm:$0xff] }
 0x138   : > { %2379 = vmatpush1.bf16.msra.mxu0 %v5685_v12  ;;  %2432 = vmatpush1.bf16.msra.mxu1 %v5688_v13  ;;  %v709_v12 = vld [vmem:[%s6673_s23 + $0xe8] sm:$0xff]  ;;  %v703_v13 = vld [vmem:[%s6673_s23 + $0xb8] sm:$0xff] }
 0x139   : > { %2380 = vmatprep.subr.bf16.mxu0 %v5693_v14  ;;  %2433 = vmatprep.subr.bf16.mxu1 %v5696_v15  ;;  %v711_v14 = vld [vmem:[%s6673_s23 + $0xf8] sm:$0xff] }
 0x13a   : > { %v5757_v15 = vld [vmem:[#allocation5 + $0xe8] ss:$16 sps:$4 sm:$0xff]  }
 0x13c   : > { %2381 = vmatpush1.bf16.msra.mxu0 %v5691_v16  ;;  %2434 = vmatpush1.bf16.msra.mxu1 %v5694_v18  ;;  %v5760_v16 = vld [vmem:[#allocation5 + $0x2e8] ss:$16 sps:$4 sm:$0xff]   ;;  %v6800_v18 = vpack.c.bf16 %v692_v4, %v684_v1  ;;  %v5816_v1 = vld [vmem:[#allocation5 + $0x3cc] ss:$16 sps:$4 sm:$0xff]  }
 0x13d   : > { %2382 = vmatprep.subr.bf16.mxu0 %v5699_v19  ;;  %2435 = vmatprep.subr.bf16.mxu1 %v5702_v20  ;;  %v6802_v19 = vpack.c.bf16 %v694_v8, %v686_v5  ;;  %v5765_v20 = vld [vmem:[#allocation5 + $0xcc] ss:$16 sps:$4 sm:$0xff]   ;;  %v5811_v4 = vld [vmem:[#allocation5 + $0x1c8] ss:$16 sps:$4 sm:$0xff]  }
 0x13e   : > { %v5814_v5 = vld [vmem:[#allocation5 + $0x3c8] ss:$16 sps:$4 sm:$0xff]   ;;  %v5819_v8 = vld [vmem:[#allocation5 + $0x1ac] ss:$16 sps:$4 sm:$0xff]  }
 0x140   : > { %2383 = vmatpush1.bf16.msra.mxu0 %v5697_v21  ;;  %2436 = vmatpush1.bf16.msra.mxu1 %v5700_v22  ;;  %v5768_v21 = vld [vmem:[#allocation5 + $0x2cc] ss:$16 sps:$4 sm:$0xff]   ;;  %v5763_v22 = vld [vmem:[#allocation5 + $0xc8] ss:$16 sps:$4 sm:$0xff]  }
 0x141   : > { %2384 = vmatprep.subr.bf16.mxu0 %v5705_v23  ;;  %2437 = vmatprep.subr.bf16.mxu1 %v5708_v24  ;;  %v5766_v23 = vld [vmem:[#allocation5 + $0x2c8] ss:$16 sps:$4 sm:$0xff]   ;;  %v6804_v24 = vpack.c.bf16 %v709_v12, %v701_v11  ;;  %v5825_v12 = vld [vmem:[#allocation5 + $0x18c] ss:$16 sps:$4 sm:$0xff]  }
 0x142   : > { %v5820_v11 = vld [vmem:[#allocation5 + $0x3a8] ss:$16 sps:$4 sm:$0xff]  }
 0x144   : > { %2385 = vmatpush1.bf16.msra.mxu0 %v5703_v25  ;;  %2438 = vmatpush1.bf16.msra.mxu1 %v5706_v26  ;;  %v700_v25 = vld [vmem:[%s6673_s23 + $0xa0] sm:$0xff] }
 0x145   : > { %2386 = vmatprep.subr.bf16.mxu0 %v5711_v27  ;;  %2439 = vmatprep.subr.bf16.mxu1 %v5714_v28  ;;  %v708_v26 = vld [vmem:[%s6673_s23 + $0xe0] sm:$0xff]  ;;  %v6808_v27 = vpack.c.bf16 %v711_v14, %v703_v13  ;;  %v702_v28 = vld [vmem:[%s6673_s23 + $0xb0] sm:$0xff]  ;;  %v5828_v13 = vld [vmem:[#allocation5 + $0x38c] ss:$16 sps:$4 sm:$0xff]  }
 0x146   : > { %v5823_v14 = vld [vmem:[#allocation5 + $0x188] ss:$16 sps:$4 sm:$0xff]  }
 0x148   : > { %2387 = vmatpush2.bf16.msra.mxu0 %v5709_v29  ;;  %2440 = vmatpush2.bf16.msra.mxu1 %v5712_v30  ;;  %v710_v29 = vld [vmem:[%s6673_s23 + $0xf0] sm:$0xff]  ;;  %v5771_v30 = vld [vmem:[#allocation5 + $0xac] ss:$16 sps:$4 sm:$0xff]  }
 0x149   : > { %2388 = vmatprep.subr.bf16.mxu0 %v5717_v31  ;;  %2441 = vmatprep.subr.bf16.mxu1 %v5720_v32  ;;  %v5774_v31 = vld [vmem:[#allocation5 + $0x2ac] ss:$16 sps:$4 sm:$0xff]   ;;  %v5769_v32 = vld [vmem:[#allocation5 + $0xa8] ss:$16 sps:$4 sm:$0xff]  }
 0x14c   : > { %2389 = vmatpush2.bf16.msra.mxu0 %v5715_v33  ;;  %2442 = vmatpush2.bf16.msra.mxu1 %v5718_v34  ;;  %v5772_v33 = vld [vmem:[#allocation5 + $0x2a8] ss:$16 sps:$4 sm:$0xff]   ;;  %v6816_v34 = vpack.c.bf16 %v708_v26, %v700_v25  ;;  %v5840_v25 = vld [vmem:[#allocation5 + $0x34c] ss:$16 sps:$4 sm:$0xff]  }
 0x14d   : > { %2390 = vmatprep.subr.bf16.mxu0 %v5723_v35  ;;  %2443 = vmatprep.subr.bf16.mxu1 %v5726_v36  ;;  %v6818_v35 = vpack.c.bf16 %v710_v29, %v702_v28  ;;  %v5777_v36 = vld [vmem:[#allocation5 + $0x8c] ss:$16 sps:$4 sm:$0xff]   ;;  %v5835_v26 = vld [vmem:[#allocation5 + $0x148] ss:$16 sps:$4 sm:$0xff]  }
 0x14e   : > { %v5838_v28 = vld [vmem:[#allocation5 + $0x348] ss:$16 sps:$4 sm:$0xff]   ;;  %v5843_v29 = vld [vmem:[#allocation5 + $0x12c] ss:$16 sps:$4 sm:$0xff]  }
 0x150   : > { %2391 = vmatpush2.bf16.msra.mxu0 %v5721_v37  ;;  %2444 = vmatpush2.bf16.msra.mxu1 %v5724_v38  ;;  %v5780_v37 = vld [vmem:[#allocation5 + $0x28c] ss:$16 sps:$4 sm:$0xff]   ;;  %v5775_v38 = vld [vmem:[#allocation5 + $0x88] ss:$16 sps:$4 sm:$0xff]  }
 0x151   : > { %2392 = vmatprep.subr.bf16.mxu0 %v5729_v39  ;;  %2445 = vmatprep.subr.bf16.mxu1 %v5732_v40  ;;  %v5778_v39 = vld [vmem:[#allocation5 + $0x288] ss:$16 sps:$4 sm:$0xff]   ;;  %v5783_v40 = vld [vmem:[#allocation5 + $0x6c] ss:$16 sps:$4 sm:$0xff]  }
 0x154   : > { %2393 = vmatpush2.bf16.msra.mxu0 %v5727_v41  ;;  %2446 = vmatpush2.bf16.msra.mxu1 %v5730_v42  ;;  %v5786_v41 = vld [vmem:[#allocation5 + $0x26c] ss:$16 sps:$4 sm:$0xff]   ;;  %v5781_v42 = vld [vmem:[#allocation5 + $0x68] ss:$16 sps:$4 sm:$0xff]  }
 0x155   : > { %2394 = vmatprep.subr.bf16.mxu0 %v5735_v43  ;;  %2447 = vmatprep.subr.bf16.mxu1 %v5738_v46  ;;  %v5784_v43 = vld [vmem:[#allocation5 + $0x268] ss:$16 sps:$4 sm:$0xff]   ;;  %v5789_v46 = vld [vmem:[#allocation5 + $0x4c] ss:$16 sps:$4 sm:$0xff]  }
 0x158   : > { %2395 = vmatpush2.bf16.msra.mxu0 %v5733_v49  ;;  %2448 = vmatpush2.bf16.msra.mxu1 %v5736_v50  ;;  %v5792_v49 = vld [vmem:[#allocation5 + $0x24c] ss:$16 sps:$4 sm:$0xff]   ;;  %v5787_v50 = vld [vmem:[#allocation5 + $0x48] ss:$16 sps:$4 sm:$0xff]  }
 0x159   : > { %2396 = vmatprep.subr.bf16.mxu0 %v5741_v51  ;;  %2449 = vmatprep.subr.bf16.mxu1 %v5744_v53  ;;  %v5790_v51 = vld [vmem:[#allocation5 + $0x248] ss:$16 sps:$4 sm:$0xff]   ;;  %v5795_v53 = vld [vmem:[#allocation5 + $0x2c] ss:$16 sps:$4 sm:$0xff]  }
 0x15c   : > { %2397 = vmatpush2.bf16.msra.mxu0 %v5739_v54  ;;  %2450 = vmatpush2.bf16.msra.mxu1 %v5742_v56  ;;  %v5798_v54 = vld [vmem:[#allocation5 + $0x22c] ss:$16 sps:$4 sm:$0xff]   ;;  %v5793_v56 = vld [vmem:[#allocation5 + $0x28] ss:$16 sps:$4 sm:$0xff]  }
 0x15d   : > { %2398 = vmatprep.subr.bf16.mxu0 %v5747_v57  ;;  %2451 = vmatprep.subr.bf16.mxu1 %v5750_v58  ;;  %v5804_v57 = vld [vmem:[#allocation5 + $0x20c] ss:$16 sps:$4 sm:$0xff]   ;;  %v5799_v58 = vld [vmem:[#allocation5 + $0x8] ss:$16 sps:$4 sm:$0xff]  }
 0x160   : > { %2399 = vmatpush2.bf16.msra.mxu0 %v5745_v59  ;;  %2452 = vmatpush2.bf16.msra.mxu1 %v5748_v60  ;;  %v5802_v59 = vld [vmem:[#allocation5 + $0x208] ss:$16 sps:$4 sm:$0xff]   ;;  %v5807_v60 = vld [vmem:[#allocation5 + $0x1ec] ss:$16 sps:$4 sm:$0xff]  }
 0x161   : > { %2400 = vmatprep.subr.bf16.mxu0 %v5753_v61  ;;  %2453 = vmatprep.subr.bf16.mxu1 %v5756_v62  ;;  %v5810_v61 = vld [vmem:[#allocation5 + $0x3ec] ss:$16 sps:$4 sm:$0xff]   ;;  %v5805_v62 = vld [vmem:[#allocation5 + $0x1e8] ss:$16 sps:$4 sm:$0xff]  }
 0x164   : > { %2401 = vmatpush2.bf16.msra.mxu0 %v5751_v63  ;;  %2454 = vmatpush2.bf16.msra.mxu1 %v5754_v0  ;;  %v5808_v63 = vld [vmem:[#allocation5 + $0x3e8] ss:$16 sps:$4 sm:$0xff]   ;;  %v5813_v0 = vld [vmem:[#allocation5 + $0x1cc] ss:$16 sps:$4 sm:$0xff]  }
 0x165   : > { %2476 = vmatprep.subr.bf16.mxu0 %v5759_v9  ;;  %2529 = vmatprep.subr.bf16.mxu1 %v5762_v10  ;;  %v5822_v9 = vld [vmem:[#allocation5 + $0x3ac] ss:$16 sps:$4 sm:$0xff]   ;;  %v5817_v10 = vld [vmem:[#allocation5 + $0x1a8] ss:$16 sps:$4 sm:$0xff]  }
 0x167   : > { %2403 = vmatmul.mubr.bf16.vlgmr.msra.gmra.mxu0 %v6800_v18  ;;  %2456 = vmatmul.mubr.bf16.vlgmr.msra.gmra.mxu1 %v6802_v19 }
 0x168   : > { %2477 = vmatpush1.bf16.msra.mxu0 %v5757_v15  ;;  %2530 = vmatpush1.bf16.msra.mxu1 %v5760_v16  ;;  %v5826_v15 = vld [vmem:[#allocation5 + $0x388] ss:$16 sps:$4 sm:$0xff]   ;;  %v5831_v16 = vld [vmem:[#allocation5 + $0x16c] ss:$16 sps:$4 sm:$0xff]  }
 0x169   : > { %2478 = vmatprep.subr.bf16.mxu0 %v5765_v20  ;;  %2531 = vmatprep.subr.bf16.mxu1 %v5768_v21  ;;  %v5834_v20 = vld [vmem:[#allocation5 + $0x36c] ss:$16 sps:$4 sm:$0xff]   ;;  %v5829_v21 = vld [vmem:[#allocation5 + $0x168] ss:$16 sps:$4 sm:$0xff]  }
 0x16a   : > { %2412 = vmatprep.mubr.bf16.mxu0 %v6804_v24  ;;  %2465 = vmatprep.mubr.bf16.mxu1 %v6808_v27 }
 0x16c   : > { %2479 = vmatpush1.bf16.msra.mxu0 %v5763_v22  ;;  %2532 = vmatpush1.bf16.msra.mxu1 %v5766_v23  ;;  %v5832_v22 = vld [vmem:[#allocation5 + $0x368] ss:$16 sps:$4 sm:$0xff]   ;;  %v5837_v23 = vld [vmem:[#allocation5 + $0x14c] ss:$16 sps:$4 sm:$0xff]  }
 0x16d   : > { %2480 = vmatprep.subr.bf16.mxu0 %v5771_v30  ;;  %2533 = vmatprep.subr.bf16.mxu1 %v5774_v31  ;;  %v5846_v30 = vld [vmem:[#allocation5 + $0x32c] ss:$16 sps:$4 sm:$0xff]   ;;  %v5841_v31 = vld [vmem:[#allocation5 + $0x128] ss:$16 sps:$4 sm:$0xff]  }
 0x16f   : > { %2413 = vmatmul.mubr.bf16.gmra.mxu0 %v6816_v34  ;;  %2466 = vmatmul.mubr.bf16.gmra.mxu1 %v6818_v35 }
 0x170   : > { %2481 = vmatpush1.bf16.msra.mxu0 %v5769_v32  ;;  %2534 = vmatpush1.bf16.msra.mxu1 %v5772_v33  ;;  %v5844_v32 = vld [vmem:[#allocation5 + $0x328] ss:$16 sps:$4 sm:$0xff]   ;;  %v5849_v33 = vld [vmem:[#allocation5 + $0x10c] ss:$16 sps:$4 sm:$0xff]  }
 0x171   : > { %2482 = vmatprep.subr.bf16.mxu0 %v5777_v36  ;;  %2535 = vmatprep.subr.bf16.mxu1 %v5780_v37  ;;  %v5852_v36 = vld [vmem:[#allocation5 + $0x30c] ss:$16 sps:$4 sm:$0xff]   ;;  %v5847_v37 = vld [vmem:[#allocation5 + $0x108] ss:$16 sps:$4 sm:$0xff]  }
 0x172   : > { %2508 = vmatprep.mubr.bf16.mxu0 %v6744_v47  ;;  %2561 = vmatprep.mubr.bf16.mxu1 %v6746_v48  ;;  %v5796_v47 = vld [vmem:[#allocation5 + $0x228] ss:$16 sps:$4 sm:$0xff]   ;;  %v5801_v48 = vld [vmem:[#allocation5 + $0xc] ss:$16 sps:$4 sm:$0xff]  }
 0x174   : > { %2483 = vmatpush1.bf16.msra.mxu0 %v5775_v38  ;;  %2536 = vmatpush1.bf16.msra.mxu1 %v5778_v39  ;;  %v5850_v38 = vld [vmem:[#allocation5 + $0x308] ss:$16 sps:$4 sm:$0xff]   ;;  %v5855_v39 = vld [vmem:[#allocation5 + $0x4ec] ss:$16 sps:$4 sm:$0xff]  }
 0x175   : > { %2484 = vmatprep.subr.bf16.mxu0 %v5783_v40  ;;  %2537 = vmatprep.subr.bf16.mxu1 %v5786_v41  ;;  %v5858_v40 = vld [vmem:[#allocation5 + $0x6ec] ss:$16 sps:$4 sm:$0xff]   ;;  %v5853_v41 = vld [vmem:[#allocation5 + $0x4e8] ss:$16 sps:$4 sm:$0xff]  }
 0x178   : > { %2485 = vmatpush1.bf16.msra.mxu0 %v5781_v42  ;;  %2538 = vmatpush1.bf16.msra.mxu1 %v5784_v43  ;;  %v5856_v42 = vld [vmem:[#allocation5 + $0x6e8] ss:$16 sps:$4 sm:$0xff]   ;;  %v5861_v43 = vld [vmem:[#allocation5 + $0x4cc] ss:$16 sps:$4 sm:$0xff]  }
 0x179   : > { %2486 = vmatprep.subr.bf16.mxu0 %v5789_v46  ;;  %2539 = vmatprep.subr.bf16.mxu1 %v5792_v49  ;;  %v5864_v46 = vld [vmem:[#allocation5 + $0x6cc] ss:$16 sps:$4 sm:$0xff]   ;;  %v5859_v49 = vld [vmem:[#allocation5 + $0x4c8] ss:$16 sps:$4 sm:$0xff]  }
 0x17c   : > { %2487 = vmatpush1.bf16.msra.mxu0 %v5787_v50  ;;  %2540 = vmatpush1.bf16.msra.mxu1 %v5790_v51  ;;  %v5862_v50 = vld [vmem:[#allocation5 + $0x6c8] ss:$16 sps:$4 sm:$0xff]   ;;  %v5867_v51 = vld [vmem:[#allocation5 + $0x4ac] ss:$16 sps:$4 sm:$0xff]  }
 0x17d   : > { %2488 = vmatprep.subr.bf16.mxu0 %v5795_v53  ;;  %2541 = vmatprep.subr.bf16.mxu1 %v5798_v54  ;;  %v5870_v53 = vld [vmem:[#allocation5 + $0x6ac] ss:$16 sps:$4 sm:$0xff]   ;;  %v5865_v54 = vld [vmem:[#allocation5 + $0x4a8] ss:$16 sps:$4 sm:$0xff]  }
 0x180   : > { %2489 = vmatpush1.bf16.msra.mxu0 %v5793_v56  ;;  %2542 = vmatpush1.bf16.msra.mxu1 %v5796_v47  ;;  %v5868_v56 = vld [vmem:[#allocation5 + $0x6a8] ss:$16 sps:$4 sm:$0xff]  }
 0x181   : > { %2490 = vmatprep.subr.bf16.mxu0 %v5801_v48  ;;  %2543 = vmatprep.subr.bf16.mxu1 %v5804_v57  ;;  %v5871_v47 = vld [vmem:[#allocation5 + $0x488] ss:$16 sps:$4 sm:$0xff]  }
 0x182   : > { %v5874_v48 = vld [vmem:[#allocation5 + $0x688] ss:$16 sps:$4 sm:$0xff]  }
 0x183   : > { %v5877_v57 = vld [vmem:[#allocation5 + $0x468] ss:$16 sps:$4 sm:$0xff]  }
 0x184   : > { %2491 = vmatpush1.bf16.msra.mxu0 %v5799_v58  ;;  %2544 = vmatpush1.bf16.msra.mxu1 %v5802_v59  ;;  %v5880_v58 = vld [vmem:[#allocation5 + $0x668] ss:$16 sps:$4 sm:$0xff]  }
 0x185   : > { %2492 = vmatprep.subr.bf16.mxu0 %v5807_v60  ;;  %2545 = vmatprep.subr.bf16.mxu1 %v5810_v61  ;;  %v5883_v59 = vld [vmem:[#allocation5 + $0x448] ss:$16 sps:$4 sm:$0xff]   ;;  %v5891_v61 = vld [vmem:[#allocation5 + $0x42c] ss:$16 sps:$4 sm:$0xff]  }
 0x186   : > { %v5886_v60 = vld [vmem:[#allocation5 + $0x648] ss:$16 sps:$4 sm:$0xff]  }
 0x188   : > { %2493 = vmatpush2.bf16.msra.mxu0 %v5805_v62  ;;  %2546 = vmatpush2.bf16.msra.mxu1 %v5808_v63  ;;  %v5894_v62 = vld [vmem:[#allocation5 + $0x62c] ss:$16 sps:$4 sm:$0xff]  }
 0x189   : > { %2494 = vmatprep.subr.bf16.mxu0 %v5813_v0  ;;  %2547 = vmatprep.subr.bf16.mxu1 %v5816_v1  ;;  %v5897_v63 = vld [vmem:[#allocation5 + $0x40c] ss:$16 sps:$4 sm:$0xff]   ;;  %v5895_v1 = vld [vmem:[#allocation5 + $0x408] ss:$16 sps:$4 sm:$0xff]  }
 0x18a   : > { %v5900_v0 = vld [vmem:[#allocation5 + $0x60c] ss:$16 sps:$4 sm:$0xff]  }
 0x18c   : > { %2495 = vmatpush2.bf16.msra.mxu0 %v5811_v4  ;;  %2548 = vmatpush2.bf16.msra.mxu1 %v5814_v5  ;;  %v5898_v4 = vld [vmem:[#allocation5 + $0x608] ss:$16 sps:$4 sm:$0xff]   ;;  %v5903_v5 = vld [vmem:[#allocation5 + $0x5ec] ss:$16 sps:$4 sm:$0xff]  }
 0x18d   : > { %2496 = vmatprep.subr.bf16.mxu0 %v5819_v8  ;;  %2549 = vmatprep.subr.bf16.mxu1 %v5822_v9  ;;  %v5906_v8 = vld [vmem:[#allocation5 + $0x7ec] ss:$16 sps:$4 sm:$0xff]   ;;  %v5901_v9 = vld [vmem:[#allocation5 + $0x5e8] ss:$16 sps:$4 sm:$0xff]  }
 0x190   : > { %2497 = vmatpush2.bf16.msra.mxu0 %v5817_v10  ;;  %2550 = vmatpush2.bf16.msra.mxu1 %v5820_v11  ;;  %v5904_v10 = vld [vmem:[#allocation5 + $0x7e8] ss:$16 sps:$4 sm:$0xff]   ;;  %v5909_v11 = vld [vmem:[#allocation5 + $0x5cc] ss:$16 sps:$4 sm:$0xff]  }
 0x191   : > { %2498 = vmatprep.subr.bf16.mxu0 %v5825_v12  ;;  %2551 = vmatprep.subr.bf16.mxu1 %v5828_v13  ;;  %v5912_v12 = vld [vmem:[#allocation5 + $0x7cc] ss:$16 sps:$4 sm:$0xff]   ;;  %v5907_v13 = vld [vmem:[#allocation5 + $0x5c8] ss:$16 sps:$4 sm:$0xff]  }
 0x194   : > { %2499 = vmatpush2.bf16.msra.mxu0 %v5823_v14  ;;  %2552 = vmatpush2.bf16.msra.mxu1 %v5826_v15  ;;  %v5910_v14 = vld [vmem:[#allocation5 + $0x7c8] ss:$16 sps:$4 sm:$0xff]   ;;  %v5915_v15 = vld [vmem:[#allocation5 + $0x5ac] ss:$16 sps:$4 sm:$0xff]  }
 0x195   : > { %2500 = vmatprep.subr.bf16.mxu0 %v5831_v16  ;;  %2553 = vmatprep.subr.bf16.mxu1 %v5834_v20  ;;  %v5918_v16 = vld [vmem:[#allocation5 + $0x7ac] ss:$16 sps:$4 sm:$0xff]   ;;  %v5913_v20 = vld [vmem:[#allocation5 + $0x5a8] ss:$16 sps:$4 sm:$0xff]  }
 0x198   : > { %2501 = vmatpush2.bf16.msra.mxu0 %v5829_v21  ;;  %2554 = vmatpush2.bf16.msra.mxu1 %v5832_v22  ;;  %v5916_v21 = vld [vmem:[#allocation5 + $0x7a8] ss:$16 sps:$4 sm:$0xff]   ;;  %v5921_v22 = vld [vmem:[#allocation5 + $0x58c] ss:$16 sps:$4 sm:$0xff]  }
 0x199   : > { %2502 = vmatprep.subr.bf16.mxu0 %v5837_v23  ;;  %2555 = vmatprep.subr.bf16.mxu1 %v5840_v25  ;;  %v5924_v23 = vld [vmem:[#allocation5 + $0x78c] ss:$16 sps:$4 sm:$0xff]   ;;  %v5919_v25 = vld [vmem:[#allocation5 + $0x588] ss:$16 sps:$4 sm:$0xff]  }
 0x19c   : > { %2503 = vmatpush2.bf16.msra.mxu0 %v5835_v26  ;;  %2556 = vmatpush2.bf16.msra.mxu1 %v5838_v28  ;;  %v5922_v26 = vld [vmem:[#allocation5 + $0x788] ss:$16 sps:$4 sm:$0xff]   ;;  %v5927_v28 = vld [vmem:[#allocation5 + $0x56c] ss:$16 sps:$4 sm:$0xff]  }
 0x19d   : > { %2504 = vmatprep.subr.bf16.mxu0 %v5843_v29  ;;  %2557 = vmatprep.subr.bf16.mxu1 %v5846_v30  ;;  %v5930_v29 = vld [vmem:[#allocation5 + $0x76c] ss:$16 sps:$4 sm:$0xff]   ;;  %v5925_v30 = vld [vmem:[#allocation5 + $0x568] ss:$16 sps:$4 sm:$0xff]  }
 0x1a0   : > { %2505 = vmatpush2.bf16.msra.mxu0 %v5841_v31  ;;  %2558 = vmatpush2.bf16.msra.mxu1 %v5844_v32  ;;  %v5928_v31 = vld [vmem:[#allocation5 + $0x768] ss:$16 sps:$4 sm:$0xff]   ;;  %v5933_v32 = vld [vmem:[#allocation5 + $0x54c] ss:$16 sps:$4 sm:$0xff]  }
 0x1a1   : > { %2506 = vmatprep.subr.bf16.mxu0 %v5849_v33  ;;  %2559 = vmatprep.subr.bf16.mxu1 %v5852_v36  ;;  %v5936_v33 = vld [vmem:[#allocation5 + $0x74c] ss:$16 sps:$4 sm:$0xff]   ;;  %v5931_v36 = vld [vmem:[#allocation5 + $0x548] ss:$16 sps:$4 sm:$0xff]  }
 0x1a4   : > { %2507 = vmatpush2.bf16.msra.mxu0 %v5847_v37  ;;  %2560 = vmatpush2.bf16.msra.mxu1 %v5850_v38  ;;  %v5934_v37 = vld [vmem:[#allocation5 + $0x748] ss:$16 sps:$4 sm:$0xff]   ;;  %v5939_v38 = vld [vmem:[#allocation5 + $0x52c] ss:$16 sps:$4 sm:$0xff]  }
 0x1a5   : > { %2582 = vmatprep.subr.bf16.mxu0 %v5855_v39  ;;  %2635 = vmatprep.subr.bf16.mxu1 %v5858_v40  ;;  %v5942_v39 = vld [vmem:[#allocation5 + $0x72c] ss:$16 sps:$4 sm:$0xff]   ;;  %v5937_v40 = vld [vmem:[#allocation5 + $0x528] ss:$16 sps:$4 sm:$0xff]  }
 0x1a7   : > { %2509 = vmatmul.mubr.bf16.vlgmr.msra.gmra.mxu0 %v6760_v44  ;;  %2562 = vmatmul.mubr.bf16.vlgmr.msra.gmra.mxu1 %v6762_v45  ;;  %v5873_v44 = vld [vmem:[#allocation5 + $0x48c] ss:$16 sps:$4 sm:$0xff]  }
 0x1a8   : > { %2583 = vmatpush1.bf16.msra.mxu0 %v5853_v41  ;;  %2636 = vmatpush1.bf16.msra.mxu1 %v5856_v42  ;;  %v5876_v45 = vld [vmem:[#allocation5 + $0x68c] ss:$16 sps:$4 sm:$0xff]   ;;  %v5940_v41 = vld [vmem:[#allocation5 + $0x728] ss:$16 sps:$4 sm:$0xff]  }
 0x1a9   : > { %2584 = vmatprep.subr.bf16.mxu0 %v5861_v43  ;;  %2637 = vmatprep.subr.bf16.mxu1 %v5864_v46  ;;  %v5945_v42 = vld [vmem:[#allocation5 + $0x50c] ss:$16 sps:$4 sm:$0xff]   ;;  %v5943_v46 = vld [vmem:[#allocation5 + $0x508] ss:$16 sps:$4 sm:$0xff]  }
 0x1aa   : > { %2518 = vmatprep.mubr.bf16.mxu0 %v6764_v52  ;;  %2571 = vmatprep.mubr.bf16.mxu1 %v6768_v55  ;;  %v5879_v52 = vld [vmem:[#allocation5 + $0x46c] ss:$16 sps:$4 sm:$0xff]  }
 0x1ab   : > { %v5882_v55 = vld [vmem:[#allocation5 + $0x66c] ss:$16 sps:$4 sm:$0xff]  }
 0x1ac   : > { %2585 = vmatpush1.bf16.msra.mxu0 %v5859_v49  ;;  %2638 = vmatpush1.bf16.msra.mxu1 %v5862_v50  ;;  %v5948_v43 = vld [vmem:[#allocation5 + $0x70c] ss:$16 sps:$4 sm:$0xff]   ;;  %v5946_v49 = vld [vmem:[#allocation5 + $0x708] ss:$16 sps:$4 sm:$0xff]   ;;  %v5951_v50 = vld [vmem:[#allocation7 + $0xe4] ss:$16 sps:$4 sm:$0xff]  }
 0x1ad   : > { %2586 = vmatprep.subr.bf16.mxu0 %v5867_v51  ;;  %2639 = vmatprep.subr.bf16.mxu1 %v5870_v53  ;;  %v5949_v51 = vld [vmem:[#allocation7 + $0xe0] ss:$16 sps:$4 sm:$0xff]   ;;  %v5954_v53 = vld [vmem:[#allocation7 + $0xc4] ss:$16 sps:$4 sm:$0xff]  }
 0x1af   : > { %2519 = vmatmul.mubr.bf16.gmra.mxu0 %v6780_v2  ;;  %2572 = vmatmul.mubr.bf16.gmra.mxu1 %v6782_v3  ;;  %v5885_v2 = vld [vmem:[#allocation5 + $0x44c] ss:$16 sps:$4 sm:$0xff]  }
 0x1b0   : > { %2587 = vmatpush1.bf16.msra.mxu0 %v5865_v54  ;;  %2640 = vmatpush1.bf16.msra.mxu1 %v5868_v56  ;;  %v5888_v3 = vld [vmem:[#allocation5 + $0x64c] ss:$16 sps:$4 sm:$0xff]   ;;  %v5952_v54 = vld [vmem:[#allocation7 + $0xc0] ss:$16 sps:$4 sm:$0xff]   ;;  %v5957_v56 = vld [vmem:[#allocation7 + $0xa4] ss:$16 sps:$4 sm:$0xff]  }
 0x1b1   : > { %2588 = vmatprep.subr.bf16.mxu0 %v5873_v44  ;;  %2641 = vmatprep.subr.bf16.mxu1 %v5876_v45  ;;  %v6836_v44 = vpop.f32.mrf.mxu0  ;;  %v5955_v45 = vld [vmem:[#allocation7 + $0xa0] ss:$16 sps:$4 sm:$0xff]  }
 0x1b2   : > { %2614 = vmatprep.mubr.bf16.mxu0 %v6784_v6  ;;  %2667 = vmatprep.mubr.bf16.mxu1 %v6786_v7  ;;  %v5889_v6 = vld [vmem:[#allocation5 + $0x428] ss:$16 sps:$4 sm:$0xff]  }
 0x1b3   : > { %v5892_v7 = vld [vmem:[#allocation5 + $0x628] ss:$16 sps:$4 sm:$0xff]  }
 0x1b4   : > { %2589 = vmatpush1.bf16.msra.mxu0 %v5871_v47  ;;  %2642 = vmatpush1.bf16.msra.mxu1 %v5874_v48  ;;  %v5960_v47 = vld [vmem:[#allocation7 + $0x84] ss:$16 sps:$4 sm:$0xff]   ;;  %v6838_v48 = vpop.f32.mrf.mxu1 }
 0x1b5   : > { %2590 = vmatprep.subr.bf16.mxu0 %v5879_v52  ;;  %2643 = vmatprep.subr.bf16.mxu1 %v5882_v55  ;;  %v5961_v55 = vld [vmem:[#allocation7 + $0x60] ss:$16 sps:$4 sm:$0xff]  }
 0x1b8   : > { %2591 = vmatpush1.bf16.msra.mxu0 %v5877_v57  ;;  %2644 = vmatpush1.bf16.msra.mxu1 %v5880_v58  ;;  %v6047_v57 = vld [vmem:[#allocation7 + $0x2e4] ss:$16 sps:$4 sm:$0xff]  }
 0x1b9   : > { %2592 = vmatprep.subr.bf16.mxu0 %v5885_v2  ;;  %2645 = vmatprep.subr.bf16.mxu1 %v5888_v3  ;;  %v5966_v58 = vld [vmem:[#allocation7 + $0x44] ss:$16 sps:$4 sm:$0xff]   ;;  %v6045_v2 = vld [vmem:[#allocation7 + $0x2e0] ss:$16 sps:$4 sm:$0xff]  }
 0x1bc   : > { %2593 = vmatpush1.bf16.msra.mxu0 %v5883_v59  ;;  %2646 = vmatpush1.bf16.msra.mxu1 %v5886_v60  ;;  %v5964_v60 = vld [vmem:[#allocation7 + $0x40] ss:$16 sps:$4 sm:$0xff]  }
 0x1bd   : > { %2594 = vmatprep.subr.bf16.mxu0 %v5891_v61  ;;  %2647 = vmatprep.subr.bf16.mxu1 %v5894_v62  ;;  %v6053_v61 = vld [vmem:[#allocation7 + $0x2a4] ss:$16 sps:$4 sm:$0xff]  }
 0x1be   : > { %v5969_v62 = vld [vmem:[#allocation7 + $0x24] ss:$16 sps:$4 sm:$0xff]  }
 0x1c0   : > { %2595 = vmatpush1.bf16.msra.mxu0 %v5889_v6  ;;  %2648 = vmatpush1.bf16.msra.mxu1 %v5892_v7 }
 0x1c1   : > { %2596 = vmatprep.subr.bf16.mxu0 %v5897_v63  ;;  %2649 = vmatprep.subr.bf16.mxu1 %v5900_v0  ;;  %v6051_v63 = vld [vmem:[#allocation7 + $0x2a0] ss:$16 sps:$4 sm:$0xff]  }
 0x1c4   : > { %2597 = vmatpush1.bf16.msra.mxu0 %v5895_v1  ;;  %2650 = vmatpush1.bf16.msra.mxu1 %v5898_v4  ;;  %v5967_v1 = vld [vmem:[#allocation7 + $0x20] ss:$16 sps:$4 sm:$0xff]   ;;  %v5972_v4 = vld [vmem:[#allocation7 + $0x4] ss:$16 sps:$4 sm:$0xff]  }
 0x1c5   : > { %2598 = vmatprep.subr.bf16.mxu0 %v5903_v5  ;;  %2651 = vmatprep.subr.bf16.mxu1 %v5906_v8  ;;  %v6056_v8 = vld [vmem:[#allocation7 + $0x284] ss:$16 sps:$4 sm:$0xff]  }
 0x1c8   : > { %2599 = vmatpush2.bf16.msra.mxu0 %v5901_v9  ;;  %2652 = vmatpush2.bf16.msra.mxu1 %v5904_v10  ;;  %v6054_v9 = vld [vmem:[#allocation7 + $0x280] ss:$16 sps:$4 sm:$0xff]  }
 0x1c9   : > { %2600 = vmatprep.subr.bf16.mxu0 %v5909_v11  ;;  %2653 = vmatprep.subr.bf16.mxu1 %v5912_v12  ;;  %v5970_v11 = vld [vmem:[#allocation7] ss:$16 sps:$4 sm:$0xff]   ;;  %v6059_v12 = vld [vmem:[#allocation7 + $0x264] ss:$16 sps:$4 sm:$0xff]  }
 0x1cc   : > { %2601 = vmatpush2.bf16.msra.mxu0 %v5907_v13  ;;  %2654 = vmatpush2.bf16.msra.mxu1 %v5910_v14  ;;  %v5975_v13 = vld [vmem:[#allocation7 + $0x1e4] ss:$16 sps:$4 sm:$0xff]  }
 0x1cd   : > { %2602 = vmatprep.subr.bf16.mxu0 %v5915_v15  ;;  %2655 = vmatprep.subr.bf16.mxu1 %v5918_v16  ;;  %v6057_v15 = vld [vmem:[#allocation7 + $0x260] ss:$16 sps:$4 sm:$0xff]  }
 0x1d0   : > { %2603 = vmatpush2.bf16.msra.mxu0 %v5913_v20  ;;  %2656 = vmatpush2.bf16.msra.mxu1 %v5916_v21  ;;  %v5973_v20 = vld [vmem:[#allocation7 + $0x1e0] ss:$16 sps:$4 sm:$0xff]   ;;  %v6062_v21 = vld [vmem:[#allocation7 + $0x244] ss:$16 sps:$4 sm:$0xff]  }
 0x1d1   : > { %2604 = vmatprep.subr.bf16.mxu0 %v5921_v22  ;;  %2657 = vmatprep.subr.bf16.mxu1 %v5924_v23  ;;  %v5978_v22 = vld [vmem:[#allocation7 + $0x1c4] ss:$16 sps:$4 sm:$0xff]  }
 0x1d4   : > { %2605 = vmatpush2.bf16.msra.mxu0 %v5919_v25  ;;  %2658 = vmatpush2.bf16.msra.mxu1 %v5922_v26  ;;  %v6060_v25 = vld [vmem:[#allocation7 + $0x240] ss:$16 sps:$4 sm:$0xff]  }
 0x1d5   : > { %2606 = vmatprep.subr.bf16.mxu0 %v5927_v28  ;;  %2659 = vmatprep.subr.bf16.mxu1 %v5930_v29  ;;  %v5976_v29 = vld [vmem:[#allocation7 + $0x1c0] ss:$16 sps:$4 sm:$0xff]  }
 0x1d8   : > { %2607 = vmatpush2.bf16.msra.mxu0 %v5925_v30  ;;  %2660 = vmatpush2.bf16.msra.mxu1 %v5928_v31  ;;  %v6065_v30 = vld [vmem:[#allocation7 + $0x224] ss:$16 sps:$4 sm:$0xff]  }
 0x1d9   : > { %2608 = vmatprep.subr.bf16.mxu0 %v5933_v32  ;;  %2661 = vmatprep.subr.bf16.mxu1 %v5936_v33  ;;  %v5981_v31 = vld [vmem:[#allocation7 + $0x1a4] ss:$16 sps:$4 sm:$0xff]   ;;  %v6063_v33 = vld [vmem:[#allocation7 + $0x220] ss:$16 sps:$4 sm:$0xff]  }
 0x1dc   : > { %2609 = vmatpush2.bf16.msra.mxu0 %v5931_v36  ;;  %2662 = vmatpush2.bf16.msra.mxu1 %v5934_v37  ;;  %v5979_v37 = vld [vmem:[#allocation7 + $0x1a0] ss:$16 sps:$4 sm:$0xff]  }
 0x1dd   : > { %2610 = vmatprep.subr.bf16.mxu0 %v5939_v38  ;;  %2663 = vmatprep.subr.bf16.mxu1 %v5942_v39  ;;  %v6068_v38 = vld [vmem:[#allocation7 + $0x204] ss:$16 sps:$4 sm:$0xff]  }
 0x1de   : > { %v5984_v39 = vld [vmem:[#allocation7 + $0x184] ss:$16 sps:$4 sm:$0xff]  }
 0x1e0   : > { %2611 = vmatpush2.bf16.msra.mxu0 %v5937_v40  ;;  %2664 = vmatpush2.bf16.msra.mxu1 %v5940_v41  ;;  %v6066_v41 = vld [vmem:[#allocation7 + $0x200] ss:$16 sps:$4 sm:$0xff]  }
 0x1e1   : > { %2612 = vmatprep.subr.bf16.mxu0 %v5945_v42  ;;  %2665 = vmatprep.subr.bf16.mxu1 %v5948_v43  ;;  %v5982_v43 = vld [vmem:[#allocation7 + $0x180] ss:$16 sps:$4 sm:$0xff]  }
 0x1e4   : > { %2613 = vmatpush2.bf16.msra.mxu0 %v5943_v46  ;;  %2666 = vmatpush2.bf16.msra.mxu1 %v5946_v49  ;;  %v6071_v46 = vld [vmem:[#allocation7 + $0x3e4] ss:$16 sps:$4 sm:$0xff]  }
 0x1e5   : > { %3502 = vmatprep.subr.bf16.mxu0 %v5951_v50  ;;  %3555 = vmatprep.subr.bf16.mxu1 %v6047_v57  ;;  %v5987_v49 = vld [vmem:[#allocation7 + $0x164] ss:$16 sps:$4 sm:$0xff]   ;;  %v5988_v57 = vld [vmem:[#allocation7 + $0x140] ss:$16 sps:$4 sm:$0xff]  }
 0x1e7   : > { %2615 = vmatmul.mubr.bf16.vlgmr.msra.gmra.mxu0 %v6800_v18  ;;  %2668 = vmatmul.mubr.bf16.vlgmr.msra.gmra.mxu1 %v6802_v19  ;;  %v6842_v18 = vpop.f32.mrf.mxu0  ;;  %v5958_v19 = vld [vmem:[#allocation7 + $0x80] ss:$16 sps:$4 sm:$0xff]  }
 0x1e8   : > { %2624 = vmatprep.mubr.bf16.mxu0 %v6804_v24  ;;  %2677 = vmatprep.mubr.bf16.mxu1 %v6808_v27  ;;  %v5963_v24 = vld [vmem:[#allocation7 + $0x64] ss:$16 sps:$4 sm:$0xff]   ;;  %v6844_v27 = vpop.f32.mrf.mxu1 }
 0x1e9   : > { %3503 = vmatpush1.bf16.msra.mxu0 %v5949_v51  ;;  %v6846_v52 = vpop.f32.mrf.mxu0  ;;  %3556 = vmatpush1.bf16.msra.mxu1 %v6045_v2  ;;  %v6069_v51 = vld [vmem:[#allocation7 + $0x3e0] ss:$16 sps:$4 sm:$0xff]   ;;  %v5993_v2 = vld [vmem:[#allocation7 + $0x124] ss:$16 sps:$4 sm:$0xff]  }
 0x1ea   : > { %3504 = vmatprep.subr.bf16.mxu0 %v5954_v53  ;;  %v6848_v3 = vpop.f32.mrf.mxu1 }
 0x1eb   : > { %v6850_v59 = vpop.f32.mrf.mxu0 }
 0x1ec   : > { %v6852_v6 = vpop.f32.mrf.mxu1 }
 0x1ed   : > { %3505 = vmatpush1.bf16.msra.mxu0 %v5952_v54  ;;  %v6854_v7 = vpop.f32.mrf.mxu0  ;;  %v5985_v54 = vld [vmem:[#allocation7 + $0x160] ss:$16 sps:$4 sm:$0xff]  }
 0x1ee   : > { %3506 = vmatprep.subr.bf16.mxu0 %v5957_v56  ;;  %v6856_v0 = vpop.f32.mrf.mxu1  ;;  %v6074_v56 = vld [vmem:[#allocation7 + $0x3c4] ss:$16 sps:$4 sm:$0xff]  }
 0x1ef   : > { %2625 = vmatmul.mubr.bf16.gmra.mxu0 %v6816_v34  ;;  %2678 = vmatmul.mubr.bf16.gmra.mxu1 %v6818_v35  ;;  %v6048_v34 = vld [vmem:[#allocation7 + $0x2c0] ss:$16 sps:$4 sm:$0xff]   ;;  %v6050_v35 = vld [vmem:[#allocation7 + $0x2c4] ss:$16 sps:$4 sm:$0xff]   ;;  %v6858_v5 = vpop.f32.mrf.mxu0 }
 0x1f0   : > { %3557 = vmatprep.subr.bf16.mxu1 %v6050_v35  ;;  %v6860_v10 = vpop.f32.mrf.mxu1 }
 0x1f1   : > { %3507 = vmatpush1.bf16.msra.mxu0 %v5955_v45  ;;  %3558 = vmatpush1.bf16.msra.mxu1 %v6048_v34  ;;  %v6862_v14 = vpop.f32.mrf.mxu0  ;;  %v5990_v45 = vld [vmem:[#allocation7 + $0x144] ss:$16 sps:$4 sm:$0xff]   ;;  %v6075_v34 = vld [vmem:[#allocation7 + $0x3a0] ss:$16 sps:$4 sm:$0xff]  }
 0x1f2   : > { %3508 = vmatprep.subr.bf16.mxu0 %v5960_v47  ;;  %3559 = vmatprep.subr.bf16.mxu1 %v6053_v61  ;;  %v6864_v16 = vpop.f32.mrf.mxu1  ;;  %v5991_v61 = vld [vmem:[#allocation7 + $0x120] ss:$16 sps:$4 sm:$0xff]  }
 0x1f3   : > { %v6866_v23 = vpop.f32.mrf.mxu0 }
 0x1f4   : > { %v6868_v26 = vpop.f32.mrf.mxu1 }
 0x1f5   : > { %3509 = vmatpush1.bf16.msra.mxu0 %v5958_v19  ;;  %3560 = vmatpush1.bf16.msra.mxu1 %v6051_v63  ;;  %v6870_v28 = vpop.f32.mrf.mxu0  ;;  %v6072_v19 = vld [vmem:[#allocation7 + $0x3c0] ss:$16 sps:$4 sm:$0xff]   ;;  %v5996_v63 = vld [vmem:[#allocation7 + $0x104] ss:$16 sps:$4 sm:$0xff]  }
 0x1f6   : > { %3510 = vmatprep.subr.bf16.mxu0 %v5963_v24  ;;  %3561 = vmatprep.subr.bf16.mxu1 %v6056_v8  ;;  %v6872_v32 = vpop.f32.mrf.mxu1 }
 0x1f7   : > { %v2300_v36 = vpop.f32.mrf.mxu0 }
 0x1f8   : > { %v6874_v40 = vpop.f32.mrf.mxu1 }
 0x1f9   : > { %3511 = vmatpush1.bf16.msra.mxu0 %v5961_v55  ;;  %3562 = vmatpush1.bf16.msra.mxu1 %v6054_v9  ;;  %v2302_v42 = vpop.f32.mrf.mxu0  ;;  %v5994_v9 = vld [vmem:[#allocation7 + $0x100] ss:$16 sps:$4 sm:$0xff]  }
 0x1fa   : > { %3512 = vmatprep.subr.bf16.mxu0 %v5966_v58  ;;  %3563 = vmatprep.subr.bf16.mxu1 %v6059_v12  ;;  %v2355_v50 = vpop.f32.mrf.mxu1  ;;  %v6077_v58 = vld [vmem:[#allocation7 + $0x3a4] ss:$16 sps:$4 sm:$0xff]   ;;  %v5999_v12 = vld [vmem:[#allocation7 + $0xec] ss:$16 sps:$4 sm:$0xff]  }
 0x1fb   : > { %v2304_v53 = vpop.f32.mrf.mxu0 }
 0x1fc   : > { %v2357_v47 = vpop.f32.mrf.mxu1 }
 0x1fd   : > { %3513 = vmatpush1.bf16.msra.mxu0 %v5964_v60  ;;  %3564 = vmatpush1.bf16.msra.mxu1 %v6057_v15  ;;  %v2308_v24 = vpop.f32.mrf.mxu0  ;;  %v6081_v15 = vld [vmem:[#allocation7 + $0x360] ss:$16 sps:$4 sm:$0xff]  }
 0x1fe   : > { %3514 = vmatprep.subr.bf16.mxu0 %v5969_v62  ;;  %3565 = vmatprep.subr.bf16.mxu1 %v6062_v21  ;;  %v6876_v55 = vpop.f32.mrf.mxu1  ;;  %v6080_v62 = vld [vmem:[#allocation7 + $0x384] ss:$16 sps:$4 sm:$0xff]  }
 0x1ff   : > { %v2310_v35 = vpop.f32.mrf.mxu0 }
 0x200   : > { %v2363_v60 = vpop.f32.mrf.mxu1 }
 0x201   : > { %3515 = vmatpush1.bf16.msra.mxu0 %v5967_v1  ;;  %3566 = vmatpush1.bf16.msra.mxu1 %v6060_v25  ;;  %v6078_v1 = vld [vmem:[#allocation7 + $0x380] ss:$16 sps:$4 sm:$0xff]   ;;  %v2303_v25 = vadd.f32 %v2302_v42, %v6846_v52  ;;  %v2311_v42 = vadd.f32 %v2310_v35, %v6858_v5 }
 0x202   : > { %3516 = vmatprep.subr.bf16.mxu0 %v5972_v4  ;;  %3567 = vmatprep.subr.bf16.mxu1 %v6065_v30  ;;  %v2312_v4 = vpop.f32.mrf.mxu0  ;;  %v2365_v8 = vpop.f32.mrf.mxu1 }
 0x204   : > { %v2314_v21 = vpop.f32.mrf.mxu0 }
 0x205   : > { %3517 = vmatpush1.bf16.msra.mxu0 %v5970_v11  ;;  %3568 = vmatpush1.bf16.msra.mxu1 %v6063_v33  ;;  %v6083_v11 = vld [vmem:[#allocation7 + $0x364] ss:$16 sps:$4 sm:$0xff]   ;;  %v2305_v33 = vadd.f32 %v2304_v53, %v6850_v59  ;;  %v2309_v59 = vadd.f32 %v2308_v24, %v6854_v7  ;;  %v2313_v53 = vadd.f32 %v2312_v4, %v6862_v14  ;;  %v6090_v4 = vld [vmem:[#allocation7 + $0x300] ss:$16 sps:$4 sm:$0xff]  }
 0x206   : > { %3518 = vmatprep.subr.bf16.mxu0 %v5975_v13  ;;  %3569 = vmatprep.subr.bf16.mxu1 %v6068_v38  ;;  %v2301_v13 = vadd.f32 %v2300_v36, %v6842_v18  ;;  %v6086_v38 = vld [vmem:[#allocation7 + $0x344] ss:$16 sps:$4 sm:$0xff]   ;;  %v2315_v5 = vadd.f32 %v2314_v21, %v6866_v23 }
 0x207   : > { %v2358_v52 = vadd.f32 %v2357_v47, %v2305_v33  ;;  %v2364_v47 = vadd.f32 %v2363_v60, %v2311_v42  ;;  %v2362_v7 = vadd.f32 %v6876_v55, %v2309_v59  ;;  %v2366_v14 = vadd.f32 %v2365_v8, %v2313_v53  ;;  %v6095_v8 = vld [vmem:[#allocation7 + $0x2ec] ss:$16 sps:$4 sm:$0xff]   ;;  %v6006_v42 = vld [vmem:[#allocation7 + $0x88] ss:$16 sps:$4 sm:$0xff]  }
 0x208   : > { %v6009_v59 = vld [vmem:[#allocation7 + $0x68] ss:$16 sps:$4 sm:$0xff]  }
 0x209   : > { %3519 = vmatpush2.bf16.msra.mxu0 %v5973_v20  ;;  %3570 = vmatpush1.bf16.msra.mxu1 %v6066_v41  ;;  %v2299_v20 = vadd.f32 %v6870_v28, %v6836_v44  ;;  %v2356_v44 = vadd.f32 %v2355_v50, %v2303_v25  ;;  %v6015_v53 = vld [vmem:[#allocation7 + $0x28] ss:$16 sps:$4 sm:$0xff]  }
 0x20a   : > { %3520 = vmatprep.subr.bf16.mxu0 %v5978_v22  ;;  %3571 = vmatprep.subr.bf16.mxu1 %v6071_v46  ;;  %v2367_v22 = vpop.f32.mrf.mxu1 }
 0x20b   : > { %v2352_v18 = vadd.f32 %v6872_v32, %v2299_v20  ;;  %v6089_v32 = vld [vmem:[#allocation7 + $0x324] ss:$16 sps:$4 sm:$0xff]   ;;  %v2368_v60 = vadd.f32 %v2367_v22, %v2315_v5  ;;  %v5997_v20 = vld [vmem:[#allocation7 + $0xe8] ss:$16 sps:$4 sm:$0xff]   ;;  %v6032_v5 = vld [vmem:[#allocation7 + $0x18c] ss:$16 sps:$4 sm:$0xff]  }
 0x20c   : > { %v6000_v22 = vld [vmem:[#allocation7 + $0xc8] ss:$16 sps:$4 sm:$0xff]  }
 0x20d   : > { %3521 = vmatpush2.bf16.msra.mxu0 %v5976_v29  ;;  %3572 = vmatpush2.bf16.msra.mxu1 %v6069_v51 }
 0x20e   : > { %3522 = vmatprep.subr.bf16.mxu0 %v5981_v31  ;;  %3573 = vmatprep.subr.bf16.mxu1 %v6074_v56  ;;  %v2354_v31 = vadd.f32 %v6874_v40, %v2301_v13 }
 0x211   : > { %3523 = vmatpush2.bf16.msra.mxu0 %v5979_v37  ;;  %3574 = vmatpush2.bf16.msra.mxu1 %v6072_v19 }
 0x212   : > { %3524 = vmatprep.subr.bf16.mxu0 %v5984_v39  ;;  %3575 = vmatprep.subr.bf16.mxu1 %v6077_v58  ;;  %v6084_v39 = vld [vmem:[#allocation7 + $0x340] ss:$16 sps:$4 sm:$0xff]  }
 0x215   : > { %3525 = vmatpush2.bf16.msra.mxu0 %v5982_v43  ;;  %3576 = vmatpush2.bf16.msra.mxu1 %v6075_v34 }
 0x216   : > { %3526 = vmatprep.subr.bf16.mxu0 %v5987_v49  ;;  %3577 = vmatprep.subr.bf16.mxu1 %v6080_v62 }
 0x219   : > { %3527 = vmatpush2.bf16.msra.mxu0 %v5985_v54  ;;  %3578 = vmatpush2.bf16.msra.mxu1 %v6078_v1 }
 0x21a   : > { %3528 = vmatprep.subr.bf16.mxu0 %v5990_v45  ;;  %3579 = vmatprep.subr.bf16.mxu1 %v6083_v11  ;;  %v6087_v45 = vld [vmem:[#allocation7 + $0x320] ss:$16 sps:$4 sm:$0xff]  }
 0x21d   : > { %3529 = vmatpush2.bf16.msra.mxu0 %v5988_v57  ;;  %3580 = vmatpush2.bf16.msra.mxu1 %v6081_v15 }
 0x21e   : > { %3530 = vmatprep.subr.bf16.mxu0 %v5993_v2  ;;  %3581 = vmatprep.subr.bf16.mxu1 %v6086_v38  ;;  %v6005_v38 = vld [vmem:[#allocation7 + $0xac] ss:$16 sps:$4 sm:$0xff]  }
 0x221   : > { %3531 = vmatpush2.bf16.msra.mxu0 %v5991_v61  ;;  %3582 = vmatpush2.bf16.msra.mxu1 %v6084_v39  ;;  %v6092_v61 = vld [vmem:[#allocation7 + $0x304] ss:$16 sps:$4 sm:$0xff]  }
 0x222   : > { %3532 = vmatprep.subr.bf16.mxu0 %v5996_v63  ;;  %3583 = vmatprep.subr.bf16.mxu1 %v6089_v32  ;;  %v6017_v32 = vld [vmem:[#allocation7 + $0x2c] ss:$16 sps:$4 sm:$0xff]  }
 0x225   : > { %3533 = vmatpush2.bf16.msra.mxu0 %v5994_v9  ;;  %3584 = vmatpush2.bf16.msra.mxu1 %v6087_v45  ;;  %v6021_v45 = vld [vmem:[#allocation7 + $0x1e8] ss:$16 sps:$4 sm:$0xff]  }
 0x226   : > { %3608 = vmatprep.subr.bf16.mxu0 %v5999_v12  ;;  %3585 = vmatprep.subr.bf16.mxu1 %v6092_v61  ;;  %v6041_v61 = vld [vmem:[#allocation7 + $0x12c] ss:$16 sps:$4 sm:$0xff]  }
 0x227   : > { %v2404_v29 = vpop.f32.mrf.mxu0  ;;  %v2457_v30 = vpop.f32.mrf.mxu1 }
 0x228   : > { %v2405_v41 = vadd.f32 %v2404_v29, %v2352_v18  ;;  %v6002_v29 = vld [vmem:[#allocation7 + $0xcc] ss:$16 sps:$4 sm:$0xff]  }
 0x229   : > { %v2406_v36 = vpop.f32.mrf.mxu0  ;;  %v2459_v37 = vpop.f32.mrf.mxu1  ;;  %3586 = vmatpush2.bf16.msra.mxu1 %v6090_v4 }
 0x22a   : > { %v2407_v28 = vadd.f32 %v2406_v36, %v2354_v31  ;;  %v2458_v19 = vadd.f32 %v2457_v30, %v2405_v41  ;;  %3661 = vmatprep.subr.bf16.mxu1 %v6095_v8 }
 0x22b   : > { %v2408_v43 = vpop.f32.mrf.mxu0  ;;  %v2461_v46 = vpop.f32.mrf.mxu1 }
 0x22c   : > { %v2409_v49 = vadd.f32 %v2408_v43, %v2356_v44  ;;  %v2460_v54 = vadd.f32 %v2459_v37, %v2407_v28  ;;  %v2688_v9 = vmax.f32 %v2458_v19, 0.0  ;;  %v6003_v43 = vld [vmem:[#allocation7 + $0xa8] ss:$16 sps:$4 sm:$0xff]   ;;  %v6026_v19 = vld [vmem:[#allocation7 + $0x1cc] ss:$16 sps:$4 sm:$0xff]  }
 0x22d   : > { %v2410_v40 = vpop.f32.mrf.mxu0  ;;  %v2463_v51 = vpop.f32.mrf.mxu1 }
 0x22e   : > { %v2462_v50 = vadd.f32 %v2461_v46, %v2409_v49  ;;  %v2411_v56 = vadd.f32 %v2410_v40, %v2358_v52  ;;  %v2689_v62 = vmax.f32 %v2460_v54, 0.0  ;;  %v6008_v52 = vld [vmem:[#allocation7 + $0x8c] ss:$16 sps:$4 sm:$0xff]  }
 0x22f   : > { %v2414_v57 = vpop.f32.mrf.mxu0  ;;  %v2467_v58 = vpop.f32.mrf.mxu1  ;;  %v6011_v49 = vld [vmem:[#allocation7 + $0x6c] ss:$16 sps:$4 sm:$0xff]  }
 0x230   : > { %v2464_v2 = vadd.f32 %v2463_v51, %v2411_v56  ;;  %v2692_v24 = vmax.f32 %v2462_v50, 0.0  ;;  %v2415_v11 = vadd.f32 %v2414_v57, %v2362_v7  ;;  %v6014_v40 = vld [vmem:[#allocation7 + $0x4c] ss:$16 sps:$4 sm:$0xff]   ;;  %v6012_v51 = vld [vmem:[#allocation7 + $0x48] ss:$16 sps:$4 sm:$0xff]  }
 0x231   : > { %v2416_v34 = vpop.f32.mrf.mxu0  ;;  %v2469_v35 = vpop.f32.mrf.mxu1  ;;  %v6020_v54 = vld [vmem:[#allocation7 + $0xc] ss:$16 sps:$4 sm:$0xff]   ;;  %v6018_v50 = vld [vmem:[#allocation7 + $0x8] ss:$16 sps:$4 sm:$0xff]  }
 0x232   : > { %v2693_v63 = vmax.f32 %v2464_v2, 0.0  ;;  %v2417_v1 = vadd.f32 %v2416_v34, %v2364_v47  ;;  %v6890_v55 = vpack.c.bf16 %v2692_v24, %v2688_v9  ;;  %v2468_v18 = vadd.f32 %v2467_v58, %v2415_v11  ;;  %v6023_v56 = vld [vmem:[#allocation7 + $0x1ec] ss:$16 sps:$4 sm:$0xff]   ;;  %v6024_v57 = vld [vmem:[#allocation7 + $0x1c8] ss:$16 sps:$4 sm:$0xff]  }
 0x233   : > { %v2418_v12 = vpop.f32.mrf.mxu0  ;;  %v2471_v13 = vpop.f32.mrf.mxu1  ;;  %v6029_v58 = vld [vmem:[#allocation7 + $0x1ac] ss:$16 sps:$4 sm:$0xff]   ;;  %v6027_v47 = vld [vmem:[#allocation7 + $0x1a8] ss:$16 sps:$4 sm:$0xff]  }
 0x234   : > { %v2705_v23 = vpack.c.bf16 %v2693_v63, %v2689_v62  ;;  %v2419_v15 = vadd.f32 %v2418_v12, %v2366_v14  ;;  %v2470_v30 = vadd.f32 %v2469_v35, %v2417_v1  ;;  %v2696_v39 = vmax.f32 %v2468_v18, 0.0  ;;  %v6030_v2 = vld [vmem:[#allocation7 + $0x188] ss:$16 sps:$4 sm:$0xff]   ;;  %v6035_v7 = vld [vmem:[#allocation7 + $0x16c] ss:$16 sps:$4 sm:$0xff]  }
 0x235   : > { %v2420_v21 = vpop.f32.mrf.mxu0  ;;  %v2473_v25 = vpop.f32.mrf.mxu1  ;;  %v6033_v24 = vld [vmem:[#allocation7 + $0x168] ss:$16 sps:$4 sm:$0xff]   ;;  %v6038_v34 = vld [vmem:[#allocation7 + $0x14c] ss:$16 sps:$4 sm:$0xff]  }
 0x236   : > { %v2421_v31 = vadd.f32 %v2420_v21, %v2368_v60  ;;  %v2472_v33 = vadd.f32 %v2471_v13, %v2419_v15  ;;  %3534 = vmatprep.mubr.bf16.mxu0 %v2705_v23  ;;  %v2697_v44 = vmax.f32 %v2470_v30, 0.0  ;;  %v6036_v35 = vld [vmem:[#allocation7 + $0x148] ss:$16 sps:$4 sm:$0xff]   ;;  %v6044_v62 = vld [vmem:[#allocation7 + $0x10c] ss:$16 sps:$4 sm:$0xff]  }
 0x237   : > { %3535 = vmatmul.mubr.bf16.vlgmr.msra.gmra.mxu0 %v6890_v55  ;;  %v6039_v14 = vld [vmem:[#allocation7 + $0x128] ss:$16 sps:$4 sm:$0xff]  }
 0x238   : > { %v2474_v36 = vadd.f32 %v2473_v25, %v2421_v31  ;;  %3609 = vmatpush1.bf16.msra.mxu0 %v5997_v20  ;;  %v2700_v37 = vmax.f32 %v2472_v33, 0.0  ;;  %v6042_v63 = vld [vmem:[#allocation7 + $0x108] ss:$16 sps:$4 sm:$0xff]  }
 0x239   : > { %3610 = vmatprep.subr.bf16.mxu0 %v6002_v29 }
 0x23a   : > { %v2701_v28 = vmax.f32 %v2474_v36, 0.0  ;;  %v2708_v46 = vpack.c.bf16 %v2700_v37, %v2696_v39 }
 0x23c   : > { %v2709_v41 = vpack.c.bf16 %v2701_v28, %v2697_v44  ;;  %3611 = vmatpush1.bf16.msra.mxu0 %v6000_v22 }
 0x23d   : > { %3612 = vmatprep.subr.bf16.mxu0 %v6005_v38 }
 0x23e   : > { %3544 = vmatprep.mubr.bf16.mxu0 %v2709_v41 }
 0x23f   : > { %3545 = vmatmul.mubr.bf16.gmra.mxu0 %v2708_v46 }
 0x240   : > { %3613 = vmatpush1.bf16.msra.mxu0 %v6003_v43  ;;  %3640 = vmatprep.mubr.bf16.mxu0 %v2705_v23 }
 0x241   : > { %3614 = vmatprep.subr.bf16.mxu0 %v6008_v52 }
 0x244   : > { %3615 = vmatpush1.bf16.msra.mxu0 %v6006_v42 }
 0x245   : > { %3616 = vmatprep.subr.bf16.mxu0 %v6011_v49 }
 0x248   : > { %3617 = vmatpush1.bf16.msra.mxu0 %v6009_v59 }
 0x249   : > { %3618 = vmatprep.subr.bf16.mxu0 %v6014_v40 }
 0x24c   : > { %3619 = vmatpush1.bf16.msra.mxu0 %v6012_v51 }
 0x24d   : > { %3620 = vmatprep.subr.bf16.mxu0 %v6017_v32 }
 0x250   : > { %3621 = vmatpush1.bf16.msra.mxu0 %v6015_v53 }
 0x251   : > { %3622 = vmatprep.subr.bf16.mxu0 %v6020_v54 }
 0x254   : > { %3623 = vmatpush1.bf16.msra.mxu0 %v6018_v50 }
 0x255   : > { %3624 = vmatprep.subr.bf16.mxu0 %v6023_v56 }
 0x258   : > { %3625 = vmatpush2.bf16.msra.mxu0 %v6021_v45 }
 0x259   : > { %3626 = vmatprep.subr.bf16.mxu0 %v6026_v19 }
 0x25c   : > { %3627 = vmatpush2.bf16.msra.mxu0 %v6024_v57 }
 0x25d   : > { %3628 = vmatprep.subr.bf16.mxu0 %v6029_v58 }
 0x260   : > { %3629 = vmatpush2.bf16.msra.mxu0 %v6027_v47 }
 0x261   : > { %3630 = vmatprep.subr.bf16.mxu0 %v6032_v5 }
 0x264   : > { %3631 = vmatpush2.bf16.msra.mxu0 %v6030_v2 }
 0x265   : > { %3632 = vmatprep.subr.bf16.mxu0 %v6035_v7 }
 0x267   : > { %v2510_v1 = vpop.f32.mrf.mxu0  ;;  %v2563_v4 = vpop.f32.mrf.mxu1 }
 0x268   : > { %3633 = vmatpush2.bf16.msra.mxu0 %v6033_v24 }
 0x269   : > { %3634 = vmatprep.subr.bf16.mxu0 %v6038_v34  ;;  %v2512_v9 = vpop.f32.mrf.mxu0  ;;  %v2565_v11 = vpop.f32.mrf.mxu1 }
 0x26a   : > { %v2513_v30 = vadd.f32 %v2512_v9, %v6844_v27 }
 0x26b   : > { %v2514_v12 = vpop.f32.mrf.mxu0  ;;  %v2567_v13 = vpop.f32.mrf.mxu1 }
 0x26c   : > { %3635 = vmatpush2.bf16.msra.mxu0 %v6036_v35  ;;  %v2515_v18 = vadd.f32 %v2514_v12, %v6848_v3  ;;  %v2566_v37 = vadd.f32 %v2565_v11, %v2513_v30  ;;  %v6098_v11 = vld [vmem:[#allocation7 + $0x2cc] ss:$16 sps:$4 sm:$0xff]  }
 0x26d   : > { %3636 = vmatprep.subr.bf16.mxu0 %v6041_v61  ;;  %v2516_v60 = vpop.f32.mrf.mxu0  ;;  %v2569_v23 = vpop.f32.mrf.mxu1 }
 0x26e   : > { %v2517_v38 = vadd.f32 %v2516_v60, %v6852_v6 }
 0x26f   : > { %v2520_v15 = vpop.f32.mrf.mxu0  ;;  %v2573_v20 = vpop.f32.mrf.mxu1 }
 0x270   : > { %3637 = vmatpush2.bf16.msra.mxu0 %v6039_v14  ;;  %v2570_v27 = vadd.f32 %v2569_v23, %v2517_v38  ;;  %v2521_v59 = vadd.f32 %v2520_v15, %v6856_v0  ;;  %v6105_v38 = vld [vmem:[#allocation7 + $0x268] ss:$16 sps:$4 sm:$0xff]  }
 0x271   : > { %3638 = vmatprep.subr.bf16.mxu0 %v6044_v62  ;;  %v2522_v21 = vpop.f32.mrf.mxu0  ;;  %v2575_v25 = vpop.f32.mrf.mxu1 }
 0x272   : > { %v2574_v58 = vadd.f32 %v2573_v20, %v2521_v59  ;;  %v6096_v20 = vld [vmem:[#allocation7 + $0x2c8] ss:$16 sps:$4 sm:$0xff]   ;;  %v6150_v59 = vld [vmem:[#allocation8 + $0x80] ss:$16 sps:$4 sm:$0xff]  }
 0x273   : > { %v2524_v29 = vpop.f32.mrf.mxu0  ;;  %v2577_v8 = vpop.f32.mrf.mxu1 }
 0x274   : > { %3639 = vmatpush2.bf16.msra.mxu0 %v6042_v63  ;;  %v2525_v51 = vadd.f32 %v2524_v29, %v6864_v16 }
 0x275   : > { %v2526_v31 = vpop.f32.mrf.mxu0  ;;  %v2579_v33 = vpop.f32.mrf.mxu1 }
 0x276   : > { %v2527_v19 = vadd.f32 %v2526_v31, %v6868_v26  ;;  %v2578_v2 = vadd.f32 %v2577_v8, %v2525_v51  ;;  %v6099_v31 = vld [vmem:[#allocation7 + $0x2a8] ss:$16 sps:$4 sm:$0xff]   ;;  %v6119_v51 = vld [vmem:[#allocation7 + $0x3ec] ss:$16 sps:$4 sm:$0xff]  }
 0x277   : > { %3641 = vmatmul.mubr.bf16.vlgmr.msra.gmra.mxu0 %v6890_v55  ;;  %v2511_v55 = vadd.f32 %v2510_v1, %v6838_v48  ;;  %v2523_v48 = vadd.f32 %v2522_v21, %v6860_v10  ;;  %v6093_v1 = vld [vmem:[#allocation7 + $0x2e8] ss:$16 sps:$4 sm:$0xff]  }
 0x278   : > { %3650 = vmatprep.mubr.bf16.mxu0 %v2709_v41  ;;  %v2568_v41 = vadd.f32 %v2567_v13, %v2515_v18  ;;  %v2580_v14 = vadd.f32 %v2579_v33, %v2527_v19  ;;  %v6104_v18 = vld [vmem:[#allocation7 + $0x28c] ss:$16 sps:$4 sm:$0xff]  }
 0x279   : > { %v2564_v44 = vadd.f32 %v2563_v4, %v2511_v55  ;;  %v2576_v45 = vadd.f32 %v2575_v25, %v2523_v48  ;;  %v6101_v25 = vld [vmem:[#allocation7 + $0x2ac] ss:$16 sps:$4 sm:$0xff]   ;;  %v6111_v48 = vld [vmem:[#allocation7 + $0x228] ss:$16 sps:$4 sm:$0xff]  }
 0x27a   : > { %v6125_v19 = vld [vmem:[#allocation7 + $0x3ac] ss:$16 sps:$4 sm:$0xff]  }
 0x27f   : > { %3651 = vmatmul.mubr.bf16.gmra.mxu0 %v2708_v46 }
 0x2a7   : > { %v2616_v36 = vpop.f32.mrf.mxu0  ;;  %v2669_v22 = vpop.f32.mrf.mxu1 }
 0x2a8   : > { %v2617_v46 = vadd.f32 %v2616_v36, %v2564_v44  ;;  %v6102_v36 = vld [vmem:[#allocation7 + $0x288] ss:$16 sps:$4 sm:$0xff]   ;;  %v6141_v44 = vld [vmem:[#allocation8 + $0xe0] ss:$16 sps:$4 sm:$0xff]  }
 0x2a9   : > { %v2618_v28 = vpop.f32.mrf.mxu0  ;;  %v2671_v39 = vpop.f32.mrf.mxu1 }
 0x2aa   : > { %v2619_v43 = vadd.f32 %v2618_v28, %v2566_v37  ;;  %v2670_v54 = vadd.f32 %v2669_v22, %v2617_v46  ;;  %v6107_v22 = vld [vmem:[#allocation7 + $0x26c] ss:$16 sps:$4 sm:$0xff]   ;;  %v6143_v37 = vld [vmem:[#allocation8 + $0xe4] ss:$16 sps:$4 sm:$0xff]   ;;  %v6108_v46 = vld [vmem:[#allocation7 + $0x248] ss:$16 sps:$4 sm:$0xff]  }
 0x2ab   : > { %v2620_v52 = vpop.f32.mrf.mxu0  ;;  %v2673_v42 = vpop.f32.mrf.mxu1  ;;  %v6110_v28 = vld [vmem:[#allocation7 + $0x24c] ss:$16 sps:$4 sm:$0xff]   ;;  %4528 = vmatprep.subr.bf16.mxu0 %v6143_v37  ;;  %v6207_v37 = vld [vmem:[#allocation8 + $0x280] ss:$16 sps:$4 sm:$0xff]  }
 0x2ac   : > { %v2621_v49 = vadd.f32 %v2620_v52, %v2568_v41  ;;  %v2672_v32 = vadd.f32 %v2671_v39, %v2619_v43  ;;  %v2690_v34 = vmax.f32 %v2670_v54, 0.0  ;;  %4529 = vmatpush1.bf16.msra.mxu0 %v6141_v44  ;;  %v6144_v39 = vld [vmem:[#allocation8 + $0xc0] ss:$16 sps:$4 sm:$0xff]   ;;  %v6146_v41 = vld [vmem:[#allocation8 + $0xc4] ss:$16 sps:$4 sm:$0xff]  }
 0x2ad   : > { %v2622_v3 = vpop.f32.mrf.mxu0  ;;  %v2675_v40 = vpop.f32.mrf.mxu1  ;;  %v6149_v43 = vld [vmem:[#allocation8 + $0xa4] ss:$16 sps:$4 sm:$0xff]   ;;  %4530 = vmatprep.subr.bf16.mxu0 %v6146_v41  ;;  %v6113_v52 = vld [vmem:[#allocation7 + $0x22c] ss:$16 sps:$4 sm:$0xff]   ;;  %v6225_v41 = vld [vmem:[#allocation8 + $0x220] ss:$16 sps:$4 sm:$0xff]  }
 0x2ae   : > { %v2674_v6 = vadd.f32 %v2673_v42, %v2621_v49  ;;  %v2623_v53 = vadd.f32 %v2622_v3, %v2570_v27  ;;  %v2691_v0 = vmax.f32 %v2672_v32, 0.0  ;;  %v6147_v42 = vld [vmem:[#allocation8 + $0xa0] ss:$16 sps:$4 sm:$0xff]   ;;  %v6152_v27 = vld [vmem:[#allocation8 + $0x84] ss:$16 sps:$4 sm:$0xff]  }
 0x2af   : > { %v2626_v50 = vpop.f32.mrf.mxu0  ;;  %v2679_v56 = vpop.f32.mrf.mxu1  ;;  %v6116_v49 = vld [vmem:[#allocation7 + $0x20c] ss:$16 sps:$4 sm:$0xff]   ;;  %v6155_v3 = vld [vmem:[#allocation8 + $0x64] ss:$16 sps:$4 sm:$0xff]   ;;  %v6153_v32 = vld [vmem:[#allocation8 + $0x60] ss:$16 sps:$4 sm:$0xff]  }
 0x2b0   : > { %v2676_v57 = vadd.f32 %v2675_v40, %v2623_v53  ;;  %v2694_v47 = vmax.f32 %v2674_v6, 0.0  ;;  %v2627_v16 = vadd.f32 %v2626_v50, %v2574_v58  ;;  %4531 = vmatpush1.bf16.msra.mxu0 %v6144_v39  ;;  %v6114_v40 = vld [vmem:[#allocation7 + $0x208] ss:$16 sps:$4 sm:$0xff]   ;;  %v6158_v6 = vld [vmem:[#allocation8 + $0x44] ss:$16 sps:$4 sm:$0xff]  }
 0x2b1   : > { %v2628_v10 = vpop.f32.mrf.mxu0  ;;  %v2681_v5 = vpop.f32.mrf.mxu1  ;;  %4532 = vmatprep.subr.bf16.mxu0 %v6149_v43  ;;  %v6117_v53 = vld [vmem:[#allocation7 + $0x3e8] ss:$16 sps:$4 sm:$0xff]   ;;  %v6122_v54 = vld [vmem:[#allocation7 + $0x3cc] ss:$16 sps:$4 sm:$0xff]   ;;  %v6156_v50 = vld [vmem:[#allocation8 + $0x40] ss:$16 sps:$4 sm:$0xff]  }
 0x2b2   : > { %v2695_v7 = vmax.f32 %v2676_v57, 0.0  ;;  %v2629_v24 = vadd.f32 %v2628_v10, %v2576_v45  ;;  %v6902_v4 = vpack.c.bf16 %v2694_v47, %v2690_v34  ;;  %v2680_v23 = vadd.f32 %v2679_v56, %v2627_v16  ;;  %v6161_v56 = vld [vmem:[#allocation8 + $0x24] ss:$16 sps:$4 sm:$0xff]   ;;  %v6120_v45 = vld [vmem:[#allocation7 + $0x3c8] ss:$16 sps:$4 sm:$0xff]  }
 0x2b3   : > { %v2630_v35 = vpop.f32.mrf.mxu0  ;;  %v2683_v61 = vpop.f32.mrf.mxu1  ;;  %v6159_v57 = vld [vmem:[#allocation8 + $0x20] ss:$16 sps:$4 sm:$0xff]   ;;  %v6164_v58 = vld [vmem:[#allocation8 + $0x4] ss:$16 sps:$4 sm:$0xff]   ;;  %v6123_v47 = vld [vmem:[#allocation7 + $0x3a8] ss:$16 sps:$4 sm:$0xff]  }
 0x2b4   : > { %v2707_v62 = vpack.c.bf16 %v2695_v7, %v2691_v0  ;;  %v2631_v63 = vadd.f32 %v2630_v35, %v2578_v2  ;;  %v2682_v12 = vadd.f32 %v2681_v5, %v2629_v24  ;;  %v2698_v30 = vmax.f32 %v2680_v23, 0.0  ;;  %4533 = vmatpush1.bf16.msra.mxu0 %v6147_v42  ;;  %v6128_v10 = vld [vmem:[#allocation7 + $0x38c] ss:$16 sps:$4 sm:$0xff]   ;;  %v6162_v5 = vld [vmem:[#allocation8] ss:$16 sps:$4 sm:$0xff]  }
 0x2b5   : > { %v2632_v26 = vpop.f32.mrf.mxu0  ;;  %v2685_v9 = vpop.f32.mrf.mxu1  ;;  %4534 = vmatprep.subr.bf16.mxu0 %v6152_v27  ;;  %v6167_v2 = vld [vmem:[#allocation8 + $0x1e4] ss:$16 sps:$4 sm:$0xff]   ;;  %v6126_v0 = vld [vmem:[#allocation7 + $0x388] ss:$16 sps:$4 sm:$0xff]   ;;  %v6131_v7 = vld [vmem:[#allocation7 + $0x36c] ss:$16 sps:$4 sm:$0xff]  }
 0x2b6   : > { %v2633_v13 = vadd.f32 %v2632_v26, %v2580_v14  ;;  %v2684_v60 = vadd.f32 %v2683_v61, %v2631_v63  ;;  %3587 = vmatprep.mubr.bf16.mxu1 %v2707_v62  ;;  %v2699_v29 = vmax.f32 %v2682_v12, 0.0  ;;  %v6165_v24 = vld [vmem:[#allocation8 + $0x1e0] ss:$16 sps:$4 sm:$0xff]   ;;  %v6170_v34 = vld [vmem:[#allocation8 + $0x1c4] ss:$16 sps:$4 sm:$0xff]  }
 0x2b7   : > { %3588 = vmatmul.mubr.bf16.vlgmr.msra.gmra.mxu1 %v6902_v4  ;;  %v6129_v16 = vld [vmem:[#allocation7 + $0x368] ss:$16 sps:$4 sm:$0xff]   ;;  %v6134_v35 = vld [vmem:[#allocation7 + $0x34c] ss:$16 sps:$4 sm:$0xff]   ;;  %v6168_v61 = vld [vmem:[#allocation8 + $0x1c0] ss:$16 sps:$4 sm:$0xff]  }
 0x2b8   : > { %v2686_v15 = vadd.f32 %v2685_v9, %v2633_v13  ;;  %3662 = vmatpush1.bf16.msra.mxu1 %v6093_v1  ;;  %v2702_v21 = vmax.f32 %v2684_v60, 0.0  ;;  %4535 = vmatpush1.bf16.msra.mxu0 %v6150_v59  ;;  %v6173_v14 = vld [vmem:[#allocation8 + $0x1a4] ss:$16 sps:$4 sm:$0xff]   ;;  %v6137_v63 = vld [vmem:[#allocation7 + $0x32c] ss:$16 sps:$4 sm:$0xff]  }
 0x2b9   : > { %3663 = vmatprep.subr.bf16.mxu1 %v6098_v11  ;;  %4536 = vmatprep.subr.bf16.mxu0 %v6155_v3  ;;  %v6171_v1 = vld [vmem:[#allocation8 + $0x1a0] ss:$16 sps:$4 sm:$0xff]   ;;  %v6176_v26 = vld [vmem:[#allocation8 + $0x184] ss:$16 sps:$4 sm:$0xff]   ;;  %v6135_v9 = vld [vmem:[#allocation7 + $0x328] ss:$16 sps:$4 sm:$0xff]  }
 0x2ba   : > { %v2703_v8 = vmax.f32 %v2686_v15, 0.0  ;;  %v6907_v33 = vpack.c.bf16 %v2702_v21, %v2698_v30  ;;  %v6140_v11 = vld [vmem:[#allocation7 + $0x30c] ss:$16 sps:$4 sm:$0xff]   ;;  %v6174_v12 = vld [vmem:[#allocation8 + $0x180] ss:$16 sps:$4 sm:$0xff]  }
 0x2bb   : > { %v6179_v13 = vld [vmem:[#allocation8 + $0x164] ss:$16 sps:$4 sm:$0xff]   ;;  %v6138_v60 = vld [vmem:[#allocation7 + $0x308] ss:$16 sps:$4 sm:$0xff]   ;;  %v6177_v23 = vld [vmem:[#allocation8 + $0x160] ss:$16 sps:$4 sm:$0xff]  }
 0x2bc   : > { %v6905_v55 = vpack.c.bf16 %v2703_v8, %v2699_v29  ;;  %3664 = vmatpush1.bf16.msra.mxu1 %v6096_v20  ;;  %4537 = vmatpush1.bf16.msra.mxu0 %v6153_v32  ;;  %v6182_v15 = vld [vmem:[#allocation8 + $0x144] ss:$16 sps:$4 sm:$0xff]   ;;  %v6180_v20 = vld [vmem:[#allocation8 + $0x140] ss:$16 sps:$4 sm:$0xff]  }
 0x2bd   : > { %3665 = vmatprep.subr.bf16.mxu1 %v6101_v25  ;;  %4538 = vmatprep.subr.bf16.mxu0 %v6158_v6  ;;  %v6185_v21 = vld [vmem:[#allocation8 + $0x124] ss:$16 sps:$4 sm:$0xff]   ;;  %v6183_v25 = vld [vmem:[#allocation8 + $0x120] ss:$16 sps:$4 sm:$0xff]  }
 0x2be   : > { %3597 = vmatprep.mubr.bf16.mxu1 %v6905_v55  ;;  %v6188_v29 = vld [vmem:[#allocation8 + $0x104] ss:$16 sps:$4 sm:$0xff]   ;;  %v6186_v8 = vld [vmem:[#allocation8 + $0x100] ss:$16 sps:$4 sm:$0xff]  }
 0x2bf   : > { %3598 = vmatmul.mubr.bf16.gmra.mxu1 %v6907_v33  ;;  %v6191_v30 = vld [vmem:[#allocation8 + $0x2e4] ss:$16 sps:$4 sm:$0xff]   ;;  %v6237_v42 = vld [vmem:[#allocation8 + $0x3e0] ss:$16 sps:$4 sm:$0xff]  }
 0x2c0   : > { %3666 = vmatpush1.bf16.msra.mxu1 %v6099_v31  ;;  %3693 = vmatprep.mubr.bf16.mxu1 %v2707_v62  ;;  %v6132_v62 = vld [vmem:[#allocation7 + $0x348] ss:$16 sps:$4 sm:$0xff]   ;;  %v6189_v31 = vld [vmem:[#allocation8 + $0x2e0] ss:$16 sps:$4 sm:$0xff]   ;;  %v6215_v44 = vld [vmem:[#allocation8 + $0x264] ss:$16 sps:$4 sm:$0xff]  }
 0x2c1   : > { %3667 = vmatprep.subr.bf16.mxu1 %v6104_v18  ;;  %4539 = vmatpush1.bf16.msra.mxu0 %v6156_v50  ;;  %v6194_v18 = vld [vmem:[#allocation8 + $0xec] ss:$16 sps:$4 sm:$0xff]   ;;  %v6221_v39 = vld [vmem:[#allocation8 + $0x244] ss:$16 sps:$4 sm:$0xff]   ;;  %v6249_v59 = vld [vmem:[#allocation8 + $0x3a0] ss:$16 sps:$4 sm:$0xff]  }
 0x2c2   : > { %4540 = vmatprep.subr.bf16.mxu0 %v6161_v56  ;;  %v6227_v43 = vld [vmem:[#allocation8 + $0x224] ss:$16 sps:$4 sm:$0xff]   ;;  %v6261_v32 = vld [vmem:[#allocation8 + $0x360] ss:$16 sps:$4 sm:$0xff]  }
 0x2c3   : > { %v6239_v27 = vld [vmem:[#allocation8 + $0x3e4] ss:$16 sps:$4 sm:$0xff]   ;;  %v6273_v56 = vld [vmem:[#allocation8 + $0x320] ss:$16 sps:$4 sm:$0xff]  }
 0x2c4   : > { %3668 = vmatpush1.bf16.msra.mxu1 %v6102_v36  ;;  %v6201_v36 = vld [vmem:[#allocation8 + $0x2a0] ss:$16 sps:$4 sm:$0xff]   ;;  %v6251_v3 = vld [vmem:[#allocation8 + $0x3a4] ss:$16 sps:$4 sm:$0xff]  }
 0x2c5   : > { %3669 = vmatprep.subr.bf16.mxu1 %v6107_v22  ;;  %4541 = vmatpush1.bf16.msra.mxu0 %v6159_v57  ;;  %v6203_v22 = vld [vmem:[#allocation8 + $0x2a4] ss:$16 sps:$4 sm:$0xff]   ;;  %v6287_v57 = vld [vmem:[#allocation8 + $0x2ec] ss:$16 sps:$4 sm:$0xff]  }
 0x2c6   : > { %4542 = vmatprep.subr.bf16.mxu0 %v6164_v58  ;;  %v6263_v6 = vld [vmem:[#allocation8 + $0x364] ss:$16 sps:$4 sm:$0xff]  }
 0x2c7   : > { %v6275_v50 = vld [vmem:[#allocation8 + $0x324] ss:$16 sps:$4 sm:$0xff]  }
 0x2c8   : > { %3670 = vmatpush1.bf16.msra.mxu1 %v6105_v38  ;;  %v6213_v38 = vld [vmem:[#allocation8 + $0x260] ss:$16 sps:$4 sm:$0xff]  }
 0x2c9   : > { %3671 = vmatprep.subr.bf16.mxu1 %v6110_v28  ;;  %4543 = vmatpush1.bf16.msra.mxu0 %v6162_v5  ;;  %v6219_v28 = vld [vmem:[#allocation8 + $0x240] ss:$16 sps:$4 sm:$0xff]   ;;  %v6915_v5 = vshrl.u32 %v455_v17, 7 }
 0x2ca   : > { %4544 = vmatprep.subr.bf16.mxu0 %v6167_v2 }
 0x2cc   : > { %3672 = vmatpush1.bf16.msra.mxu1 %v6108_v46  ;;  %v6231_v46 = vld [vmem:[#allocation8 + $0x200] ss:$16 sps:$4 sm:$0xff]  }
 0x2cd   : > { %3673 = vmatprep.subr.bf16.mxu1 %v6113_v52  ;;  %4545 = vmatpush2.bf16.msra.mxu0 %v6165_v24  ;;  %v6233_v52 = vld [vmem:[#allocation8 + $0x204] ss:$16 sps:$4 sm:$0xff]   ;;  %v6926_v24 = vld [vmem:[%s7031_s5] sm:$0xf] }
 0x2ce   : > { %4546 = vmatprep.subr.bf16.mxu0 %v6170_v34 }
 0x2d0   : > { %3674 = vmatpush1.bf16.msra.mxu1 %v6111_v48  ;;  %v6243_v48 = vld [vmem:[#allocation8 + $0x3c0] ss:$16 sps:$4 sm:$0xff]  }
 0x2d1   : > { %3675 = vmatprep.subr.bf16.mxu1 %v6116_v49  ;;  %4547 = vmatpush2.bf16.msra.mxu0 %v6168_v61  ;;  %v6245_v49 = vld [vmem:[#allocation8 + $0x3c4] ss:$16 sps:$4 sm:$0xff]  }
 0x2d2   : > { %4548 = vmatprep.subr.bf16.mxu0 %v6173_v14 }
 0x2d4   : > { %3676 = vmatpush1.bf16.msra.mxu1 %v6114_v40  ;;  %v6255_v40 = vld [vmem:[#allocation8 + $0x380] ss:$16 sps:$4 sm:$0xff]  }
 0x2d5   : > { %3677 = vmatprep.subr.bf16.mxu1 %v6119_v51  ;;  %4549 = vmatpush2.bf16.msra.mxu0 %v6171_v1  ;;  %v6257_v51 = vld [vmem:[#allocation8 + $0x384] ss:$16 sps:$4 sm:$0xff]  }
 0x2d6   : > { %4550 = vmatprep.subr.bf16.mxu0 %v6176_v26 }
 0x2d8   : > { %3678 = vmatpush2.bf16.msra.mxu1 %v6117_v53  ;;  %v6269_v53 = vld [vmem:[#allocation8 + $0x344] ss:$16 sps:$4 sm:$0xff]  }
 0x2d9   : > { %3679 = vmatprep.subr.bf16.mxu1 %v6122_v54  ;;  %4551 = vmatpush2.bf16.msra.mxu0 %v6174_v12  ;;  %v6267_v54 = vld [vmem:[#allocation8 + $0x340] ss:$16 sps:$4 sm:$0xff]  }
 0x2da   : > { %4552 = vmatprep.subr.bf16.mxu0 %v6179_v13 }
 0x2dc   : > { %3680 = vmatpush2.bf16.msra.mxu1 %v6120_v45  ;;  %v6281_v45 = vld [vmem:[#allocation8 + $0x304] ss:$16 sps:$4 sm:$0xff]  }
 0x2dd   : > { %3681 = vmatprep.subr.bf16.mxu1 %v6125_v19  ;;  %4553 = vmatpush2.bf16.msra.mxu0 %v6177_v23  ;;  %v6279_v19 = vld [vmem:[#allocation8 + $0x300] ss:$16 sps:$4 sm:$0xff]  }
 0x2de   : > { %4554 = vmatprep.subr.bf16.mxu0 %v6182_v15 }
 0x2e0   : > { %3682 = vmatpush2.bf16.msra.mxu1 %v6123_v47 }
 0x2e1   : > { %3683 = vmatprep.subr.bf16.mxu1 %v6128_v10  ;;  %4555 = vmatpush2.bf16.msra.mxu0 %v6180_v20 }
 0x2e2   : > { %4556 = vmatprep.subr.bf16.mxu0 %v6185_v21 }
 0x2e4   : > { %3684 = vmatpush2.bf16.msra.mxu1 %v6126_v0  ;;  %v6918_v0 = vsub.s32 1, %v6915_v5 }
 0x2e5   : > { %3685 = vmatprep.subr.bf16.mxu1 %v6131_v7  ;;  %4557 = vmatpush2.bf16.msra.mxu0 %v6183_v25  ;;  %v6921_v7 = vsub.s32 0, %v6915_v5 }
 0x2e6   : > { %4558 = vmatprep.subr.bf16.mxu0 %v6188_v29 }
 0x2e7   : > { %v2845_v17 = vrot.slane %v6926_v24, %v6921_v7 }
 0x2e8   : > { %3686 = vmatpush2.bf16.msra.mxu1 %v6129_v16  ;;  %v2849_v16 = vrot.slane %v6926_v24, %v6918_v0 }
 0x2e9   : > { %3687 = vmatprep.subr.bf16.mxu1 %v6134_v35  ;;  %4559 = vmatpush2.bf16.msra.mxu0 %v6186_v8 }
 0x2ea   : > { %4634 = vmatprep.subr.bf16.mxu0 %v6194_v18 }
 0x2ec   : > { %3688 = vmatpush2.bf16.msra.mxu1 %v6132_v62 }
 0x2ed   : > { %3689 = vmatprep.subr.bf16.mxu1 %v6137_v63 }
 0x2f0   : > { %3690 = vmatpush2.bf16.msra.mxu1 %v6135_v9 }
 0x2f1   : > { %3691 = vmatprep.subr.bf16.mxu1 %v6140_v11 }
 0x2f4   : > { %3692 = vmatpush2.bf16.msra.mxu1 %v6138_v60 }
 0x2f5   : > { %4581 = vmatprep.subr.bf16.mxu1 %v6191_v30 }
 0x2f7   : > { %3694 = vmatmul.mubr.bf16.vlgmr.msra.gmra.mxu1 %v6902_v4  ;;  %v6197_v4 = vld [vmem:[#allocation8 + $0x2c4] ss:$16 sps:$4 sm:$0xff]   ;;  %v3536_v58 = vpop.f32.mrf.mxu0 }
 0x2f8   : > { %3703 = vmatprep.mubr.bf16.mxu1 %v6905_v55  ;;  %4582 = vmatpush1.bf16.msra.mxu1 %v6189_v31  ;;  %v6195_v55 = vld [vmem:[#allocation8 + $0x2c0] ss:$16 sps:$4 sm:$0xff]   ;;  %v3537_v1 = vadd.f32 %v3536_v58, %v2845_v17  ;;  %v6234_v58 = vld [vmem:[#allocation8 + $0x8] ss:$16 sps:$4 sm:$0xff]  }
 0x2f9   : > { %4583 = vmatprep.subr.bf16.mxu1 %v6197_v4  ;;  %v3538_v47 = vpop.f32.mrf.mxu0 }
 0x2fa   : > { %v3539_v62 = vadd.f32 %v3538_v47, %v2849_v16  ;;  %v6242_v47 = vld [vmem:[#allocation8 + $0x1ec] ss:$16 sps:$4 sm:$0xff]  }
 0x2fb   : > { %v3540_v10 = vpop.f32.mrf.mxu0 }
 0x2fc   : > { %4584 = vmatpush1.bf16.msra.mxu1 %v6195_v55  ;;  %v3541_v63 = vadd.f32 %v3540_v10, %v2845_v17  ;;  %v6240_v10 = vld [vmem:[#allocation8 + $0x1e8] ss:$16 sps:$4 sm:$0xff]  }
 0x2fd   : > { %4585 = vmatprep.subr.bf16.mxu1 %v6203_v22  ;;  %v3542_v2 = vpop.f32.mrf.mxu0 }
 0x2fe   : > { %v3543_v9 = vadd.f32 %v3542_v2, %v2849_v16  ;;  %v6248_v2 = vld [vmem:[#allocation8 + $0x1cc] ss:$16 sps:$4 sm:$0xff]  }
 0x2ff   : > { %3704 = vmatmul.mubr.bf16.gmra.mxu1 %v6907_v33  ;;  %v6209_v33 = vld [vmem:[#allocation8 + $0x284] ss:$16 sps:$4 sm:$0xff]   ;;  %v3546_v34 = vpop.f32.mrf.mxu0 }
 0x300   : > { %4586 = vmatpush1.bf16.msra.mxu1 %v6201_v36  ;;  %v6192_v36 = vld [vmem:[#allocation8 + $0xe8] ss:$16 sps:$4 sm:$0xff]   ;;  %v3547_v22 = vadd.f32 %v3546_v34, %v2845_v17 }
 0x301   : > { %4587 = vmatprep.subr.bf16.mxu1 %v6209_v33  ;;  %v3548_v61 = vpop.f32.mrf.mxu0 }
 0x302   : > { %v3549_v18 = vadd.f32 %v3548_v61, %v2849_v16  ;;  %v6252_v61 = vld [vmem:[#allocation8 + $0x1a8] ss:$16 sps:$4 sm:$0xff]  }
 0x303   : > { %v3550_v13 = vpop.f32.mrf.mxu0 }
 0x304   : > { %4588 = vmatpush1.bf16.msra.mxu1 %v6207_v37  ;;  %v3551_v4 = vadd.f32 %v3550_v13, %v2845_v17  ;;  %v6254_v17 = vld [vmem:[#allocation8 + $0x1ac] ss:$16 sps:$4 sm:$0xff]  }
 0x305   : > { %4589 = vmatprep.subr.bf16.mxu1 %v6215_v44  ;;  %v3552_v8 = vpop.f32.mrf.mxu0  ;;  %v6272_v13 = vld [vmem:[#allocation8 + $0x14c] ss:$16 sps:$4 sm:$0xff]  }
 0x306   : > { %v3553_v44 = vadd.f32 %v3552_v8, %v2849_v16  ;;  %v6246_v16 = vld [vmem:[#allocation8 + $0x1c8] ss:$16 sps:$4 sm:$0xff]  }
 0x308   : > { %4590 = vmatpush1.bf16.msra.mxu1 %v6213_v38  ;;  %v6200_v38 = vld [vmem:[#allocation8 + $0xcc] ss:$16 sps:$4 sm:$0xff]  }
 0x309   : > { %4591 = vmatprep.subr.bf16.mxu1 %v6221_v39 }
 0x30c   : > { %4592 = vmatpush1.bf16.msra.mxu1 %v6219_v28 }
 0x30d   : > { %4593 = vmatprep.subr.bf16.mxu1 %v6227_v43 }
 0x310   : > { %4594 = vmatpush1.bf16.msra.mxu1 %v6225_v41 }
 0x311   : > { %4595 = vmatprep.subr.bf16.mxu1 %v6233_v52  ;;  %v6198_v52 = vld [vmem:[#allocation8 + $0xc8] ss:$16 sps:$4 sm:$0xff]  }
 0x314   : > { %4596 = vmatpush1.bf16.msra.mxu1 %v6231_v46 }
 0x315   : > { %4597 = vmatprep.subr.bf16.mxu1 %v6239_v27  ;;  %v6206_v27 = vld [vmem:[#allocation8 + $0xac] ss:$16 sps:$4 sm:$0xff]  }
 0x318   : > { %4598 = vmatpush2.bf16.msra.mxu1 %v6237_v42 }
 0x319   : > { %4599 = vmatprep.subr.bf16.mxu1 %v6245_v49 }
 0x31c   : > { %4600 = vmatpush2.bf16.msra.mxu1 %v6243_v48 }
 0x31d   : > { %4601 = vmatprep.subr.bf16.mxu1 %v6251_v3 }
 0x320   : > { %4602 = vmatpush2.bf16.msra.mxu1 %v6249_v59 }
 0x321   : > { %4603 = vmatprep.subr.bf16.mxu1 %v6257_v51 }
 0x324   : > { %4604 = vmatpush2.bf16.msra.mxu1 %v6255_v40  ;;  %v6204_v40 = vld [vmem:[#allocation8 + $0xa8] ss:$16 sps:$4 sm:$0xff]  }
 0x325   : > { %4605 = vmatprep.subr.bf16.mxu1 %v6263_v6  ;;  %v6210_v6 = vld [vmem:[#allocation8 + $0x88] ss:$16 sps:$4 sm:$0xff]  }
 0x328   : > { %4606 = vmatpush2.bf16.msra.mxu1 %v6261_v32  ;;  %v6212_v32 = vld [vmem:[#allocation8 + $0x8c] ss:$16 sps:$4 sm:$0xff]  }
 0x329   : > { %4607 = vmatprep.subr.bf16.mxu1 %v6269_v53  ;;  %v6218_v53 = vld [vmem:[#allocation8 + $0x6c] ss:$16 sps:$4 sm:$0xff]  }
 0x32c   : > { %4608 = vmatpush2.bf16.msra.mxu1 %v6267_v54  ;;  %v6216_v54 = vld [vmem:[#allocation8 + $0x68] ss:$16 sps:$4 sm:$0xff]  }
 0x32d   : > { %4609 = vmatprep.subr.bf16.mxu1 %v6275_v50  ;;  %v6224_v50 = vld [vmem:[#allocation8 + $0x4c] ss:$16 sps:$4 sm:$0xff]  }
 0x330   : > { %4610 = vmatpush2.bf16.msra.mxu1 %v6273_v56  ;;  %v6222_v56 = vld [vmem:[#allocation8 + $0x48] ss:$16 sps:$4 sm:$0xff]  }
 0x331   : > { %4611 = vmatprep.subr.bf16.mxu1 %v6281_v45  ;;  %v6230_v45 = vld [vmem:[#allocation8 + $0x2c] ss:$16 sps:$4 sm:$0xff]  }
 0x334   : > { %4612 = vmatpush2.bf16.msra.mxu1 %v6279_v19  ;;  %v6228_v19 = vld [vmem:[#allocation8 + $0x28] ss:$16 sps:$4 sm:$0xff]  }
 0x335   : > { %4687 = vmatprep.subr.bf16.mxu1 %v6287_v57  ;;  %v6236_v57 = vld [vmem:[#allocation8 + $0xc] ss:$16 sps:$4 sm:$0xff]  }
 0x337   : > { %v3642_v34 = vpop.f32.mrf.mxu0 }
 0x377   : > { %v3589_v35 = vpop.f32.mrf.mxu1 }
 0x378   : > { %v3590_v60 = vadd.f32 %v3589_v35, %v3537_v1  ;;  %v3644_v35 = vpop.f32.mrf.mxu0  ;;  %v6266_v1 = vld [vmem:[#allocation8 + $0x16c] ss:$16 sps:$4 sm:$0xff]  }
 0x379   : > { %v3591_v14 = vpop.f32.mrf.mxu1 }
 0x37a   : > { %v3592_v11 = vadd.f32 %v3591_v14, %v3539_v62  ;;  %v3714_v30 = vmax.f32 %v3590_v60, 0.0  ;;  %v6260_v14 = vld [vmem:[#allocation8 + $0x18c] ss:$16 sps:$4 sm:$0xff]   ;;  %v3646_v62 = vpop.f32.mrf.mxu0 }
 0x37b   : > { %v3593_v26 = vpop.f32.mrf.mxu1 }
 0x37c   : > { %v3594_v12 = vadd.f32 %v3593_v26, %v3541_v63  ;;  %v3715_v25 = vmax.f32 %v3592_v11, 0.0  ;;  %v6258_v63 = vld [vmem:[#allocation8 + $0x188] ss:$16 sps:$4 sm:$0xff]   ;;  %v3648_v26 = vpop.f32.mrf.mxu0 }
 0x37d   : > { %v3595_v23 = vpop.f32.mrf.mxu1  ;;  %v6264_v11 = vld [vmem:[#allocation8 + $0x168] ss:$16 sps:$4 sm:$0xff]  }
 0x37e   : > { %v3596_v15 = vadd.f32 %v3595_v23, %v3543_v9  ;;  %v3718_v20 = vmax.f32 %v3594_v12, 0.0  ;;  %v6942_v9 = vsub.s32 3, %v6915_v5  ;;  %v6945_v12 = vsub.s32 2, %v6915_v5  ;;  %v3652_v60 = vpop.f32.mrf.mxu0  ;;  %v6276_v5 = vld [vmem:[#allocation8 + $0x128] ss:$16 sps:$4 sm:$0xff]  }
 0x37f   : > { %v3599_v21 = vpop.f32.mrf.mxu1 }
 0x380   : > { %v3719_v29 = vmax.f32 %v3596_v15, 0.0  ;;  %v6932_v37 = vpack.c.bf16 %v3718_v20, %v3714_v30  ;;  %v3600_v41 = vadd.f32 %v3599_v21, %v3547_v22  ;;  %v2857_v23 = vrot.slane %v6926_v24, %v6942_v9  ;;  %v6270_v15 = vld [vmem:[#allocation8 + $0x148] ss:$16 sps:$4 sm:$0xff]  }
 0x381   : > { %v3601_v31 = vpop.f32.mrf.mxu1  ;;  %v2853_v20 = vrot.slane %v6926_v24, %v6945_v12 }
 0x382   : > { %v3731_v55 = vpack.c.bf16 %v3719_v29, %v3715_v25  ;;  %v3602_v28 = vadd.f32 %v3601_v31, %v3549_v18  ;;  %v3722_v59 = vmax.f32 %v3600_v41, 0.0  ;;  %v6278_v25 = vld [vmem:[#allocation8 + $0x12c] ss:$16 sps:$4 sm:$0xff]   ;;  %v3654_v29 = vpop.f32.mrf.mxu0  ;;  %v3645_v30 = vadd.f32 %v3644_v35, %v2857_v23 }
 0x383   : > { %v3603_v33 = vpop.f32.mrf.mxu1  ;;  %v3647_v31 = vadd.f32 %v3646_v62, %v2853_v20  ;;  %v3643_v18 = vadd.f32 %v3642_v34, %v2853_v20  ;;  %v6293_v34 = vld [vmem:[#allocation8 + $0x2ac] ss:$16 sps:$4 sm:$0xff]  }
 0x384   : > { %v3604_v39 = vadd.f32 %v3603_v33, %v3551_v4  ;;  %4560 = vmatprep.mubr.bf16.mxu0 %v3731_v55  ;;  %v3723_v48 = vmax.f32 %v3602_v28, 0.0 }
 0x385   : > { %v3605_v43 = vpop.f32.mrf.mxu1  ;;  %4561 = vmatmul.mubr.bf16.vlgmr.msra.gmra.mxu0 %v6932_v37 }
 0x386   : > { %v3606_v46 = vadd.f32 %v3605_v43, %v3553_v44  ;;  %4635 = vmatpush1.bf16.msra.mxu0 %v6192_v36  ;;  %v3726_v42 = vmax.f32 %v3604_v39, 0.0  ;;  %v3649_v36 = vadd.f32 %v3648_v26, %v2857_v23  ;;  %v6282_v39 = vld [vmem:[#allocation8 + $0x108] ss:$16 sps:$4 sm:$0xff]   ;;  %v6302_v26 = vld [vmem:[#allocation8 + $0x24c] ss:$16 sps:$4 sm:$0xff]  }
 0x387   : > { %4636 = vmatprep.subr.bf16.mxu0 %v6200_v38  ;;  %v3656_v38 = vpop.f32.mrf.mxu0 }
 0x388   : > { %v3727_v49 = vmax.f32 %v3606_v46, 0.0  ;;  %v6937_v51 = vpack.c.bf16 %v3726_v42, %v3722_v59  ;;  %v3657_v59 = vadd.f32 %v3656_v38, %v2853_v20  ;;  %v6330_v38 = vld [vmem:[#allocation8 + $0x308] ss:$16 sps:$4 sm:$0xff]  }
 0x389   : > { %v3658_v42 = vpop.f32.mrf.mxu0 }
 0x38a   : > { %v6935_v3 = vpack.c.bf16 %v3727_v49, %v3723_v48  ;;  %4637 = vmatpush1.bf16.msra.mxu0 %v6198_v52  ;;  %v3655_v49 = vadd.f32 %v3654_v29, %v2857_v23  ;;  %v6317_v29 = vld [vmem:[#allocation8 + $0x3ac] ss:$16 sps:$4 sm:$0xff]  }
 0x38b   : > { %4638 = vmatprep.subr.bf16.mxu0 %v6206_v27 }
 0x38c   : > { %4570 = vmatprep.mubr.bf16.mxu0 %v6935_v3 }
 0x38d   : > { %4571 = vmatmul.mubr.bf16.gmra.mxu0 %v6937_v51 }
 0x38e   : > { %4639 = vmatpush1.bf16.msra.mxu0 %v6204_v40  ;;  %4666 = vmatprep.mubr.bf16.mxu0 %v3731_v55  ;;  %v6284_v55 = vld [vmem:[#allocation8 + $0x10c] ss:$16 sps:$4 sm:$0xff]  }
 0x38f   : > { %4640 = vmatprep.subr.bf16.mxu0 %v6212_v32  ;;  %v6285_v32 = vld [vmem:[#allocation8 + $0x2e8] ss:$16 sps:$4 sm:$0xff]  }
 0x392   : > { %4641 = vmatpush1.bf16.msra.mxu0 %v6210_v6  ;;  %v3653_v6 = vadd.f32 %v3652_v60, %v2853_v20  ;;  %v6303_v60 = vld [vmem:[#allocation8 + $0x228] ss:$16 sps:$4 sm:$0xff]  }
 0x393   : > { %4642 = vmatprep.subr.bf16.mxu0 %v6218_v53  ;;  %v6309_v20 = vld [vmem:[#allocation8 + $0x3e8] ss:$16 sps:$4 sm:$0xff]  }
 0x396   : > { %4643 = vmatpush1.bf16.msra.mxu0 %v6216_v54 }
 0x397   : > { %4644 = vmatprep.subr.bf16.mxu0 %v6224_v50  ;;  %v6290_v50 = vld [vmem:[#allocation8 + $0x2cc] ss:$16 sps:$4 sm:$0xff]  }
 0x39a   : > { %4645 = vmatpush1.bf16.msra.mxu0 %v6222_v56  ;;  %v3659_v56 = vadd.f32 %v3658_v42, %v2857_v23  ;;  %v6308_v23 = vld [vmem:[#allocation8 + $0x20c] ss:$16 sps:$4 sm:$0xff]  }
 0x39b   : > { %4646 = vmatprep.subr.bf16.mxu0 %v6230_v45 }
 0x39e   : > { %4647 = vmatpush1.bf16.msra.mxu0 %v6228_v19 }
 0x39f   : > { %4648 = vmatprep.subr.bf16.mxu0 %v6236_v57 }
 0x3a2   : > { %4649 = vmatpush1.bf16.msra.mxu0 %v6234_v58 }
 0x3a3   : > { %4650 = vmatprep.subr.bf16.mxu0 %v6242_v47 }
 0x3a6   : > { %4651 = vmatpush2.bf16.msra.mxu0 %v6240_v10  ;;  %v6288_v10 = vld [vmem:[#allocation8 + $0x2c8] ss:$16 sps:$4 sm:$0xff]  }
 0x3a7   : > { %4652 = vmatprep.subr.bf16.mxu0 %v6248_v2 }
 0x3aa   : > { %4653 = vmatpush2.bf16.msra.mxu0 %v6246_v16 }
 0x3ab   : > { %4654 = vmatprep.subr.bf16.mxu0 %v6254_v17 }
 0x3ae   : > { %4655 = vmatpush2.bf16.msra.mxu0 %v6252_v61 }
 0x3af   : > { %4656 = vmatprep.subr.bf16.mxu0 %v6260_v14  ;;  %v6291_v14 = vld [vmem:[#allocation8 + $0x2a8] ss:$16 sps:$4 sm:$0xff]  }
 0x3b2   : > { %4657 = vmatpush2.bf16.msra.mxu0 %v6258_v63  ;;  %v6296_v63 = vld [vmem:[#allocation8 + $0x28c] ss:$16 sps:$4 sm:$0xff]  }
 0x3b3   : > { %4658 = vmatprep.subr.bf16.mxu0 %v6266_v1  ;;  %v6297_v1 = vld [vmem:[#allocation8 + $0x268] ss:$16 sps:$4 sm:$0xff]  }
 0x3b6   : > { %4659 = vmatpush2.bf16.msra.mxu0 %v6264_v11  ;;  %v6300_v11 = vld [vmem:[#allocation8 + $0x248] ss:$16 sps:$4 sm:$0xff]  }
 0x3b7   : > { %v3695_v21 = vpop.f32.mrf.mxu1  ;;  %4660 = vmatprep.subr.bf16.mxu0 %v6272_v13  ;;  %v6305_v13 = vld [vmem:[#allocation8 + $0x22c] ss:$16 sps:$4 sm:$0xff]  }
 0x3b8   : > { %v3696_v44 = vadd.f32 %v3695_v21, %v3643_v18  ;;  %v6314_v21 = vld [vmem:[#allocation8 + $0x3cc] ss:$16 sps:$4 sm:$0xff]   ;;  %v6321_v18 = vld [vmem:[#allocation8 + $0x368] ss:$16 sps:$4 sm:$0xff]  }
 0x3b9   : > { %v3697_v8 = vpop.f32.mrf.mxu1 }
 0x3ba   : > { %4661 = vmatpush2.bf16.msra.mxu0 %v6270_v15  ;;  %v3698_v22 = vadd.f32 %v3697_v8, %v3645_v30  ;;  %v3716_v27 = vmax.f32 %v3696_v44, 0.0  ;;  %v6306_v15 = vld [vmem:[#allocation8 + $0x208] ss:$16 sps:$4 sm:$0xff]   ;;  %v6320_v30 = vld [vmem:[#allocation8 + $0x38c] ss:$16 sps:$4 sm:$0xff]  }
 0x3bb   : > { %v3699_v4 = vpop.f32.mrf.mxu1  ;;  %4662 = vmatprep.subr.bf16.mxu0 %v6278_v25  ;;  %v6312_v25 = vld [vmem:[#allocation8 + $0x3c8] ss:$16 sps:$4 sm:$0xff]  }
 0x3bc   : > { %v3700_v33 = vadd.f32 %v3699_v4, %v3647_v31  ;;  %v3717_v46 = vmax.f32 %v3698_v22, 0.0  ;;  %v6315_v8 = vld [vmem:[#allocation8 + $0x3a8] ss:$16 sps:$4 sm:$0xff]   ;;  %v6326_v4 = vld [vmem:[#allocation8 + $0x34c] ss:$16 sps:$4 sm:$0xff]  }
 0x3bd   : > { %v3701_v28 = vpop.f32.mrf.mxu1  ;;  %v6318_v31 = vld [vmem:[#allocation8 + $0x388] ss:$16 sps:$4 sm:$0xff]  }
 0x3be   : > { %v3702_v24 = vadd.f32 %v3701_v28, %v3649_v36  ;;  %4663 = vmatpush2.bf16.msra.mxu0 %v6276_v5  ;;  %v3720_v41 = vmax.f32 %v3700_v33, 0.0  ;;  %v6323_v5 = vld [vmem:[#allocation8 + $0x36c] ss:$16 sps:$4 sm:$0xff]   ;;  %v6327_v22 = vld [vmem:[#allocation8 + $0x328] ss:$16 sps:$4 sm:$0xff]  }
 0x3bf   : > { %v3705_v43 = vpop.f32.mrf.mxu1  ;;  %4664 = vmatprep.subr.bf16.mxu0 %v6284_v55  ;;  %v6324_v55 = vld [vmem:[#allocation8 + $0x348] ss:$16 sps:$4 sm:$0xff]   ;;  %v6329_v36 = vld [vmem:[#allocation8 + $0x32c] ss:$16 sps:$4 sm:$0xff]  }
 0x3c0   : > { %v3721_v52 = vmax.f32 %v3702_v24, 0.0  ;;  %v6951_v53 = vpack.c.bf16 %v3720_v41, %v3716_v27  ;;  %v3706_v57 = vadd.f32 %v3705_v43, %v3653_v6  ;;  %v6332_v33 = vld [vmem:[#allocation8 + $0x30c] ss:$16 sps:$4 sm:$0xff]  }
 0x3c1   : > { %v3707_v48 = vpop.f32.mrf.mxu1 }
 0x3c2   : > { %v3733_v40 = vpack.c.bf16 %v3721_v52, %v3717_v46  ;;  %4665 = vmatpush2.bf16.msra.mxu0 %v6282_v39  ;;  %v3708_v45 = vadd.f32 %v3707_v48, %v3655_v49  ;;  %v3724_v35 = vmax.f32 %v3706_v57, 0.0 }
 0x3c3   : > { %v3709_v54 = vpop.f32.mrf.mxu1 }
 0x3c4   : > { %v3710_v19 = vadd.f32 %v3709_v54, %v3657_v59  ;;  %4613 = vmatprep.mubr.bf16.mxu1 %v3733_v40  ;;  %v3725_v16 = vmax.f32 %v3708_v45, 0.0 }
 0x3c5   : > { %v3711_v58 = vpop.f32.mrf.mxu1  ;;  %4614 = vmatmul.mubr.bf16.vlgmr.msra.gmra.mxu1 %v6951_v53  ;;  %4667 = vmatmul.mubr.bf16.vlgmr.msra.gmra.mxu0 %v6932_v37  ;;  %v6294_v37 = vld [vmem:[#allocation8 + $0x288] ss:$16 sps:$4 sm:$0xff]  }
 0x3c6   : > { %v3712_v47 = vadd.f32 %v3711_v58, %v3659_v56  ;;  %4688 = vmatpush1.bf16.msra.mxu1 %v6285_v32  ;;  %4676 = vmatprep.mubr.bf16.mxu0 %v6935_v3  ;;  %v3728_v2 = vmax.f32 %v3710_v19, 0.0  ;;  %v6299_v3 = vld [vmem:[#allocation8 + $0x26c] ss:$16 sps:$4 sm:$0xff]  }
 0x3c7   : > { %4689 = vmatprep.subr.bf16.mxu1 %v6290_v50  ;;  %v3866_v32 = vld [vmem:[%s7033_s7] sm:$0xf] }
 0x3c8   : > { %v3729_v17 = vmax.f32 %v3712_v47, 0.0  ;;  %v3736_v62 = vpack.c.bf16 %v3728_v2, %v3724_v35  ;;  %v3871_v54 = vrot.slane %v3866_v32, %v6921_v7 }
 0x3ca   : > { %v3737_v61 = vpack.c.bf16 %v3729_v17, %v3725_v16  ;;  %4690 = vmatpush1.bf16.msra.mxu1 %v6288_v10  ;;  %v4756_v17 = vld [vmem:[%s7034_s8] sm:$0xf] }
 0x3cb   : > { %4691 = vmatprep.subr.bf16.mxu1 %v6293_v34  ;;  %v6964_v34 = vrot.slane %v3866_v32, %v6945_v12 }
 0x3cc   : > { %4623 = vmatprep.mubr.bf16.mxu1 %v3737_v61 }
 0x3cd   : > { %4624 = vmatmul.mubr.bf16.gmra.mxu1 %v3736_v62  ;;  %4677 = vmatmul.mubr.bf16.gmra.mxu0 %v6937_v51  ;;  %v6311_v51 = vld [vmem:[#allocation8 + $0x3ec] ss:$16 sps:$4 sm:$0xff]  }
 0x3ce   : > { %4692 = vmatpush1.bf16.msra.mxu1 %v6291_v14  ;;  %4719 = vmatprep.mubr.bf16.mxu1 %v3733_v40  ;;  %v6970_v14 = vrot.slane %v4756_v17, %v6918_v0 }
 0x3cf   : > { %4693 = vmatprep.subr.bf16.mxu1 %v6296_v63 }
 0x3d2   : > { %4694 = vmatpush1.bf16.msra.mxu1 %v6294_v37 }
 0x3d3   : > { %4695 = vmatprep.subr.bf16.mxu1 %v6299_v3 }
 0x3d6   : > { %4696 = vmatpush1.bf16.msra.mxu1 %v6297_v1 }
 0x3d7   : > { %4697 = vmatprep.subr.bf16.mxu1 %v6302_v26 }
 0x3da   : > { %4698 = vmatpush1.bf16.msra.mxu1 %v6300_v11  ;;  %v6976_v11 = vrot.slane %v4756_v17, %v6921_v7 }
 0x3db   : > { %4699 = vmatprep.subr.bf16.mxu1 %v6305_v13 }
 0x3de   : > { %4700 = vmatpush1.bf16.msra.mxu1 %v6303_v60 }
 0x3df   : > { %4701 = vmatprep.subr.bf16.mxu1 %v6308_v23 }
 0x3e2   : > { %4702 = vmatpush1.bf16.msra.mxu1 %v6306_v15 }
 0x3e3   : > { %4703 = vmatprep.subr.bf16.mxu1 %v6311_v51 }
 0x3e6   : > { %4704 = vmatpush2.bf16.msra.mxu1 %v6309_v20 }
 0x3e7   : > { %4705 = vmatprep.subr.bf16.mxu1 %v6314_v21 }
 0x3ea   : > { %4706 = vmatpush2.bf16.msra.mxu1 %v6312_v25 }
 0x3eb   : > { %4707 = vmatprep.subr.bf16.mxu1 %v6317_v29 }
 0x3ee   : > { %4708 = vmatpush2.bf16.msra.mxu1 %v6315_v8  ;;  %v6985_v8 = vrot.slane %v4756_v17, %v6942_v9 }
 0x3ef   : > { %4709 = vmatprep.subr.bf16.mxu1 %v6320_v30 }
 0x3f2   : > { %4710 = vmatpush2.bf16.msra.mxu1 %v6318_v31 }
 0x3f3   : > { %4711 = vmatprep.subr.bf16.mxu1 %v6323_v5 }
 0x3f6   : > { %4712 = vmatpush2.bf16.msra.mxu1 %v6321_v18 }
 0x3f7   : > { %4713 = vmatprep.subr.bf16.mxu1 %v6326_v4 }
 0x3fa   : > { %4714 = vmatpush2.bf16.msra.mxu1 %v6324_v55 }
 0x3fb   : > { %4715 = vmatprep.subr.bf16.mxu1 %v6329_v36 }
 0x3fe   : > { %4716 = vmatpush2.bf16.msra.mxu1 %v6327_v22 }
 0x3ff   : > { %4717 = vmatprep.subr.bf16.mxu1 %v6332_v33 }
 0x402   : > { %4718 = vmatpush2.bf16.msra.mxu1 %v6330_v38 }
 0x405   : > { %4720 = vmatmul.mubr.bf16.vlgmr.msra.gmra.mxu1 %v6951_v53  ;;  %v3875_v53 = vrot.slane %v3866_v32, %v6918_v0  ;;  %v6980_v0 = vrot.slane %v4756_v17, %v6945_v12 }
 0x406   : > { %4729 = vmatprep.mubr.bf16.mxu1 %v3737_v61 }
 0x40d   : > { %4730 = vmatmul.mubr.bf16.gmra.mxu1 %v3736_v62  ;;  %v6973_v62 = vrot.slane %v3866_v32, %v6942_v9 }
 0x445   : > { %v4562_v44 = vpop.f32.mrf.mxu0 }
 0x446   : > { %v4563_v19 = vadd.f32 %v4562_v44, %v3871_v54 }
 0x447   : > { %v4564_v28 = vpop.f32.mrf.mxu0 }
 0x448   : > { %v4565_v45 = vadd.f32 %v4564_v28, %v3875_v53 }
 0x449   : > { %v4566_v24 = vpop.f32.mrf.mxu0 }
 0x44a   : > { %v4567_v16 = vadd.f32 %v4566_v24, %v3871_v54 }
 0x44b   : > { %v4568_v39 = vpop.f32.mrf.mxu0 }
 0x44c   : > { %v4569_v47 = vadd.f32 %v4568_v39, %v3875_v53 }
 0x44d   : > { %v4572_v41 = vpop.f32.mrf.mxu0 }
 0x44e   : > { %v4573_v60 = vadd.f32 %v4572_v41, %v3871_v54 }
 0x44f   : > { %v4574_v46 = vpop.f32.mrf.mxu0 }
 0x450   : > { %v4575_v37 = vadd.f32 %v4574_v46, %v3875_v53 }
 0x451   : > { %v4576_v42 = vpop.f32.mrf.mxu0 }
 0x452   : > { %v4577_v7 = vadd.f32 %v4576_v42, %v3871_v54 }
 0x453   : > { %v4578_v48 = vpop.f32.mrf.mxu0 }
 0x454   : > { %v4579_v30 = vadd.f32 %v4578_v48, %v3875_v53 }
 0x485   : > { %v4615_v43 = vpop.f32.mrf.mxu1  ;;  %v4668_v49 = vpop.f32.mrf.mxu0 }
 0x486   : > { %v4616_v2 = vadd.f32 %v4615_v43, %v4563_v19  ;;  %v4669_v13 = vadd.f32 %v4668_v49, %v6964_v34 }
 0x487   : > { %v4617_v52 = vpop.f32.mrf.mxu1  ;;  %v4670_v40 = vpop.f32.mrf.mxu0 }
 0x488   : > { %v4618_v57 = vadd.f32 %v4617_v52, %v4565_v45  ;;  %v4740_v26 = vmax.f32 %v4616_v2, 0.0  ;;  %v4671_v21 = vadd.f32 %v4670_v40, %v6973_v62 }
 0x489   : > { %v4619_v27 = vpop.f32.mrf.mxu1  ;;  %v4672_v50 = vpop.f32.mrf.mxu0 }
 0x48a   : > { %v4741_v61 = vmax.f32 %v4618_v57, 0.0  ;;  %v4620_v3 = vadd.f32 %v4619_v27, %v4567_v16  ;;  %v4778_v4 = vmul.f32 %v6976_v11, %v4740_v26  ;;  %v4673_v55 = vadd.f32 %v4672_v50, %v6964_v34 }
 0x48b   : > { %v4621_v59 = vpop.f32.mrf.mxu1  ;;  %v4674_v58 = vpop.f32.mrf.mxu0 }
 0x48c   : > { %v4622_v35 = vadd.f32 %v4621_v59, %v4569_v47  ;;  %v4779_v20 = vmul.f32 %v6970_v14, %v4741_v61  ;;  %v4744_v31 = vmax.f32 %v4620_v3, 0.0  ;;  %v4675_v33 = vadd.f32 %v4674_v58, %v6973_v62 }
 0x48d   : > { %v4625_v6 = vpop.f32.mrf.mxu1  ;;  %v4678_v63 = vpop.f32.mrf.mxu0 }
 0x48e   : > { %v4745_v23 = vmax.f32 %v4622_v35, 0.0  ;;  %v4626_v5 = vadd.f32 %v4625_v6, %v4573_v60  ;;  %v4794_v9 = vadd.f32 %v4779_v20, %v4778_v4  ;;  %v4782_v46 = vmul.f32 %v6976_v11, %v4744_v31 }
 0x48f   : > { %v4627_v56 = vpop.f32.mrf.mxu1  ;;  %v4680_v25 = vpop.f32.mrf.mxu0  ;;  %v4679_v42 = vadd.f32 %v4678_v63, %v6964_v34 }
 0x490   : > { %v4628_v15 = vadd.f32 %v4627_v56, %v4575_v37  ;;  %v4783_v22 = vmul.f32 %v6970_v14, %v4745_v23  ;;  %v4748_v52 = vmax.f32 %v4626_v5, 0.0  ;;  %v4681_v54 = vadd.f32 %v4680_v25, %v6973_v62 }
 0x491   : > { %v4629_v10 = vpop.f32.mrf.mxu1  ;;  %v4682_v24 = vpop.f32.mrf.mxu0 }
 0x492   : > { %v4749_v38 = vmax.f32 %v4628_v15, 0.0  ;;  %v4630_v27 = vadd.f32 %v4629_v10, %v4577_v7  ;;  %v4799_v6 = vadd.f32 %v4783_v22, %v4782_v46  ;;  %v4786_v10 = vmul.f32 %v6976_v11, %v4748_v52 }
 0x493   : > { %v4631_v1 = vpop.f32.mrf.mxu1  ;;  %v4684_v45 = vpop.f32.mrf.mxu0  ;;  %v4683_v16 = vadd.f32 %v4682_v24, %v6964_v34 }
 0x494   : > { %v4632_v44 = vadd.f32 %v4631_v1, %v4579_v30  ;;  %v4787_v53 = vmul.f32 %v6970_v14, %v4749_v38  ;;  %v4752_v2 = vmax.f32 %v4630_v27, 0.0  ;;  %v4685_v26 = vadd.f32 %v4684_v45, %v6973_v62 }
 0x496   : > { %v4753_v50 = vmax.f32 %v4632_v44, 0.0  ;;  %v4804_v3 = vadd.f32 %v4787_v53, %v4786_v10  ;;  %v4790_v34 = vmul.f32 %v6976_v11, %v4752_v2  ;;  %v5482_v11 = vld [vmem:[#allocation2] ss:$0 sm:$0xff] }
 0x498   : > { %v4791_v1 = vmul.f32 %v6970_v14, %v4753_v50 }
 0x49a   : > { %v4809_v30 = vadd.f32 %v4791_v1, %v4790_v34 }
 0x4c5   : > { %v4721_v51 = vpop.f32.mrf.mxu1 }
 0x4c6   : > { %v4722_v29 = vadd.f32 %v4721_v51, %v4669_v13 }
 0x4c7   : > { %v4723_v18 = vpop.f32.mrf.mxu1 }
 0x4c8   : > { %v4742_v12 = vmax.f32 %v4722_v29, 0.0  ;;  %v4724_v36 = vadd.f32 %v4723_v18, %v4671_v21 }
 0x4c9   : > { %v4725_v28 = vpop.f32.mrf.mxu1 }
 0x4ca   : > { %v4780_v39 = vmul.f32 %v6980_v0, %v4742_v12  ;;  %v4743_v41 = vmax.f32 %v4724_v36, 0.0  ;;  %v4726_v43 = vadd.f32 %v4725_v28, %v4673_v55 }
 0x4cb   : > { %v4727_v48 = vpop.f32.mrf.mxu1 }
 0x4cc   : > { %v4781_v49 = vmul.f32 %v6985_v8, %v4743_v41  ;;  %v4746_v59 = vmax.f32 %v4726_v43, 0.0  ;;  %v4728_v40 = vadd.f32 %v4727_v48, %v4675_v33  ;;  %v4795_v32 = vadd.f32 %v4794_v9, %v4780_v39 }
 0x4cd   : > { %v4731_v56 = vpop.f32.mrf.mxu1 }
 0x4ce   : > { %v4784_v19 = vmul.f32 %v6980_v0, %v4746_v59  ;;  %v4747_v57 = vmax.f32 %v4728_v40, 0.0  ;;  %v4732_v58 = vadd.f32 %v4731_v56, %v4679_v42  ;;  %v4796_v47 = vadd.f32 %v4795_v32, %v4781_v49 }
 0x4cf   : > { %v4733_v17 = vpop.f32.mrf.mxu1 }
 0x4d0   : > { %v4785_v35 = vmul.f32 %v6985_v8, %v4747_v57  ;;  %v4750_v61 = vmax.f32 %v4732_v58, 0.0  ;;  %v4734_v63 = vadd.f32 %v4733_v17, %v4681_v54  ;;  %4797 = vadd.xlane.f32.xlu0 %v4796_v47  ;;  %v4800_v37 = vadd.f32 %v4799_v6, %v4784_v19 }
 0x4d1   : > { %v4735_v13 = vpop.f32.mrf.mxu1 }
 0x4d2   : > { %v4788_v60 = vmul.f32 %v6980_v0, %v4750_v61  ;;  %v4751_v23 = vmax.f32 %v4734_v63, 0.0  ;;  %v4736_v15 = vadd.f32 %v4735_v13, %v4683_v16  ;;  %v4801_v51 = vadd.f32 %v4800_v37, %v4785_v35 }
 0x4d3   : > { %v4737_v20 = vpop.f32.mrf.mxu1 }
 0x4d4   : > { %v4789_v21 = vmul.f32 %v6985_v8, %v4751_v23  ;;  %v4754_v25 = vmax.f32 %v4736_v15, 0.0  ;;  %v4738_v29 = vadd.f32 %v4737_v20, %v4685_v26  ;;  %4802 = vadd.xlane.f32.xlu1 %v4801_v51  ;;  %v4805_v7 = vadd.f32 %v4804_v3, %v4788_v60 }
 0x4d6   : > { %v4792_v14 = vmul.f32 %v6980_v0, %v4754_v25  ;;  %v4755_v62 = vmax.f32 %v4738_v29, 0.0  ;;  %v4806_v31 = vadd.f32 %v4805_v7, %v4789_v21 }
 0x4d8   : > { %v4793_v5 = vmul.f32 %v6985_v8, %v4755_v62  ;;  %4807 = vadd.xlane.f32.xlu0 %v4806_v31  ;;  %v4810_v18 = vadd.f32 %v4809_v30, %v4792_v14 }
 0x4da   : > { %v4811_v4 = vadd.f32 %v4810_v18, %v4793_v5 }
 0x4dc   : > { %4812 = vadd.xlane.f32.xlu0 %v4811_v4 }
 0x559   : > { %v4798_v55 = vpop.xlane.xlu0 %4797 }
 0x55a   : > { %v4821_v12 = vadd.f32 %v5482_v11, %v4798_v55 }
 0x55c   : > { %4826 = vst.msk [vmem:[%s449_s9] sm:$0xff] %vm4825_vm5, %v4821_v12 }
 0x55d   : > { %v4803_v36 = vpop.xlane.xlu1 %4802 }
 0x55e   : > { %v4822_v0 = vadd.f32 %v5482_v11, %v4803_v36 }
 0x560   : > { %4827 = vst.msk [vmem:[%s449_s9 + $0x8] sm:$0xff] %vm4825_vm5, %v4822_v0 }
 0x561   : > { %v4808_v22 = vpop.xlane.xlu0 %4807 }
 0x562   : > { %v4823_v33 = vadd.f32 %v5482_v11, %v4808_v22 }
 0x564   : > { %4828 = vst.msk [vmem:[%s449_s9 + $0x10] sm:$0xff] %vm4825_vm5, %v4823_v33 }
 0x565   : > { %v4813_v8 = vpop.xlane.xlu0 %4812 }
 0x566   : > { %v4824_v38 = vadd.f32 %v5482_v11, %v4813_v8 }
 0x568   : > { %4829 = vst.msk [vmem:[%s449_s9 + $0x18] sm:$0xff] %vm4825_vm5, %v4824_v38 }
 0x569 PF: > { %p24_p3 = scmp.ge.s32.totalorder %s6624_s26, 4   ;;  %s7051_s15 = smov %s6473_s16 }
 0x56a   : > { %s7052_s16 = smov %s6477_s17  ;;  %s7053_s17 = smov %s6634_s24 }
 0x56b   : > { %s7054_s18 = smov %s6624_s26  ;;  %26 = sbr.rel (!%p24_p3) target bundleno = 8 (0x8), region = 115 }
 0x570   :  { %4852 = vsyncpa [#allocation4], 1 }
 0x571   :  { %4854 = vsyncpa [#allocation4 + $0x1], 1 }
 0x572   :  { %4855 = vsyncpa [#allocation6], 1 }
 0x573   :  { %4856 = vsyncpa [#allocation9], 1 }

</bundles_post_ra>
